<compile_context>
chip_gen: v6e
topology: v6e:2x2x1
jax: 0.10.0
libtpu: 0.0.40
codegen_flags: <defaults>
</compile_context>

<pallas_src>
import functools

import numpy as np
import jax
import jax.numpy as jnp
from jax.experimental import pallas as pl
from jax.experimental.pallas import tpu as pltpu


_SCAN_CHUNK = 8  # timesteps coalesced per state-history store (sublane-aligned)


# ----------------------------------------------------------------------------- helpers
def _gelu(x):
    c = 0.7978845608028654  # sqrt(2/pi)
    return 0.5 * x * (1.0 + jnp.tanh(c * (x + 0.044715 * x * x * x)))


def _layernorm(x, g, b):
    mu = jnp.mean(x, axis=-1, keepdims=True)
    var = jnp.mean((x - mu) ** 2, axis=-1, keepdims=True)
    return (x - mu) * jax.lax.rsqrt(var + 1e-5) * g + b


def _full_spec(a):
    nd = a.ndim
    return pl.BlockSpec(a.shape, lambda *_: (0,) * nd)


# ----------------------------------------------------------------------------- fused forward kernel
def fused_forward_kernel(x_ref, w1, s1, t1, w2, s2, t2, w3, s3, t3, wp, bp,
                         ln1g, ln1b, bcat, lamre, lamim, ccat, dvec,
                         ln2g, ln2b, ffag, ffd, cw, cb,
                         o_ref, pad_scr, h_scr):
    # Per grid step = one sequence:
    #   x_ref  : (L, K1)         host-side im2col of the raw 1-channel signal ('same')
    #   w1     : (K1, C) f32     conv1 weight (Cin=1 folded into rows)
    #   w2/w3  : (K*C, C) bf16   conv2/3 weights in im2col layout (row index = k*C + ci)
    #   s*/t*  : (1, C)          folded conv-bias + BatchNorm(eval) scale / shift
    #   wp     : (C, D) bf16, bp: (1, D)                      proj_in
    #   per-S5-block params stacked on a leading n_layers axis:
    #     ln1g/ln1b/ln2g/ln2b/dvec : (nl, 1, D)
    #     bcat : (nl, D, 2P) bf16 = [B_re | B_im]      lamre/lamim : (nl, 1, P)
    #     ccat : (nl, 2P, D) bf16 = [C_re ; -C_im]     ffag : (nl, D, 2D) = [ff_a | ff_g]
    #     ffd  : (nl, D, D) bf16
    #   cw : (D, 128) bf16, cb : (1, 128)              classifier (lane padded to 128)
    #   o_ref  : (L, 128) bf16
    #   pad_scr: (L + 2*PAD, C) f32  zero-bordered conv scratch
    #   h_scr  : (L, 2P) f32         SSM state history [re | im]
    L = o_ref.shape[0]
    C = s1.shape[-1]
    D = wp.shape[-1]
    P = lamre.shape[-1]
    n_layers = bcat.shape[0]
    PAD = (pad_scr.shape[0] - L) // 2

    # ---- CNN feature extractor --------------------------------------------------
    # conv1 (Cin=1): single small dot over the K1 im2col taps; f32 (raw signal).
    h = jnp.dot(x_ref[...], w1[...], preferred_element_type=jnp.float32)
    h = jnp.maximum(h * s1[...] + t1[...], 0.0)          # BN(eval) + ReLU; Dropout = id

    # conv2 / conv3: zero ONLY the PAD border rows once; interior rows are always
    # overwritten with the current activations before being read.
    pad_scr[0:PAD, :] = jnp.zeros((PAD, C), jnp.float32)
    pad_scr[PAD + L:PAD + L + PAD, :] = jnp.zeros((PAD, C), jnp.float32)

    def conv_bn_relu(h, w_ref, s_ref, t_ref):
        K = w_ref.shape[0] // C
        off = PAD - K // 2                                # 'same' padding (odd K)
        pad_scr[PAD:PAD + L, :] = h
        taps = [pad_scr[off + k:off + k + L, :] for k in range(K)]
        im2col = jnp.concatenate(taps, axis=-1).astype(jnp.bfloat16)   # (L, K*C)
        acc = jnp.dot(im2col, w_ref[...], preferred_element_type=jnp.float32)
        return jnp.maximum(acc * s_ref[...] + t_ref[...], 0.0)

    h = conv_bn_relu(h, w2, s2, t2)
    h = conv_bn_relu(h, w3, s3, t3)

    # ---- proj_in ------------------------------------------------------------------
    x = (jnp.dot(h.astype(jnp.bfloat16), wp[...],
                 preferred_element_type=jnp.float32) + bp[...])        # (L, D)

    # ---- N x S5Block ---------------------------------------------------------------
    for lyr in range(n_layers):
        fx = _layernorm(x, ln1g[lyr], ln1b[lyr])
        fxb = fx.astype(jnp.bfloat16)

        # hoisted input projection: ONE MXU pass for both Re and Im halves
        bu = jnp.dot(fxb, bcat[lyr], preferred_element_type=jnp.float32)   # (L, 2P)
        bu_re, bu_im = bu[:, :P], bu[:, P:]

        # diagonal complex recurrence (pure VPU); state-history stores coalesced in
        # sublane-aligned chunks of _SCAN_CHUNK timesteps.
        # TODO(synk): for long L switch the static chunk loop to lax.fori_loop (or a
        #             blocked associative scan) to bound code size / vreg live ranges.
        lre, lim = lamre[lyr], lamim[lyr]                                   # (1, P)
        sre = jnp.zeros((1, P), jnp.float32)
        sim = jnp.zeros((1, P), jnp.float32)
        t0 = 0
        while t0 < L:
            cs = min(_SCAN_CHUNK, L - t0)
            res, ims = [], []
            for i in range(cs):
                t = t0 + i
                sre, sim = (lre * sre - lim * sim + bu_re[t:t + 1, :],
                            lre * sim + lim * sre + bu_im[t:t + 1, :])
                res.append(sre)
                ims.append(sim)
            h_scr[t0:t0 + cs, :] = jnp.concatenate(
                [jnp.concatenate(res, axis=0), jnp.concatenate(ims, axis=0)],
                axis=-1)
            t0 += cs

        # hoisted output projection + feedthrough:  y = Re(C h) + D*u
        y = (jnp.dot(h_scr[...].astype(jnp.bfloat16), ccat[lyr],
                     preferred_element_type=jnp.float32) + dvec[lyr] * fx)
        x1 = _gelu(y) + fx          # residual = post-LN1 tensor (s5-pytorch convention)

        # LN2 + GEGLU feed-forward (+ post-LN2 residual, s5-pytorch convention)
        fx2 = _layernorm(x1, ln2g[lyr], ln2b[lyr])
        ag = jnp.dot(fx2.astype(jnp.bfloat16), ffag[lyr],
                     preferred_element_type=jnp.float32)               # (L, 2D)
        hg = (ag[:, :D] * _gelu(ag[:, D:])).astype(jnp.bfloat16)
        x = jnp.dot(hg, ffd[lyr], preferred_element_type=jnp.float32) + fx2

    # ---- classifier (fused; lane-dense 128-wide bf16 logits slab) -------------------
    o_ref[...] = (jnp.dot(x.astype(jnp.bfloat16), cw[...],
                          preferred_element_type=jnp.float32)
                  + cb[...]).astype(jnp.bfloat16)


# ----------------------------------------------------------------------------- parameter init (deterministic, synthetic)
def init_params(key, cnn_channels=32, s5_dim=32, num_s5_layers=2, num_classes=5,
                kernel_sizes=(7, 5, 3)):
    keys = iter(jax.random.split(key, 64))

    def nrm(shape, scale):
        return scale * jax.random.normal(next(keys), shape, jnp.float32)

    bn_eps = 1e-5
    chans = [1] + [cnn_channels] * len(kernel_sizes)
    cnn = []
    for i, K in enumerate(kernel_sizes):
        cin, cout = chans[i], chans[i + 1]
        w = nrm((K, cin, cout), 1.0 / np.sqrt(cin * K))
        conv_b = nrm((cout,), 0.02)
        gamma = jnp.ones((cout,), jnp.float32)
        beta = jnp.zeros((cout,), jnp.float32)
        run_mean = jnp.zeros((cout,), jnp.float32)
        run_var = jnp.ones((cout,), jnp.float32)
        scale = gamma / jnp.sqrt(run_var + bn_eps)        # fold conv bias + BN(eval)
        shift = beta + (conv_b - run_mean) * scale
        if cin == 1:
            w_k = w.reshape(K, cout)                                  # conv1: f32 (K1, C)
        else:
            w_k = w.reshape(K * cin, cout).astype(jnp.bfloat16)       # im2col (K*C, C)
        cnn.append({'w': w_k,
                    'scale': scale.reshape(1, cout),
                    'shift': shift.reshape(1, cout)})

    C, D, P = cnn_channels, s5_dim, s5_dim
    params = {'cnn': cnn,
              'proj_in': {'w': nrm((C, D), 1.0 / np.sqrt(C)).astype(jnp.bfloat16),
                          'b': jnp.zeros((1, D), jnp.float32)}}

    ln1g, ln1b, ln2g, ln2b = [], [], [], []
    lamre, lamim, bcat, ccat, dvec, ffag, ffd = [], [], [], [], [], [], []
    for _ in range(num_s5_layers):
        r = 0.8 + 0.15 * jax.random.uniform(next(keys), (P,), jnp.float32)   # |lambda| < 1
        theta = jnp.pi * jax.random.uniform(next(keys), (P,), jnp.float32)
        lamre.append((r * jnp.cos(theta)).reshape(1, P))
        lamim.append((r * jnp.sin(theta)).reshape(1, P))
        ln1g.append(jnp.ones((1, D), jnp.float32))
        ln1b.append(jnp.zeros((1, D), jnp.float32))
        ln2g.append(jnp.ones((1, D), jnp.float32))
        ln2b.append(jnp.zeros((1, D), jnp.float32))
        b_re = nrm((D, P), 1.0 / np.sqrt(D))
        b_im = nrm((D, P), 1.0 / np.sqrt(D))
        bcat.append(jnp.concatenate([b_re, b_im], axis=-1).astype(jnp.bfloat16))   # (D, 2P)
        c_re = nrm((P, D), 1.0 / np.sqrt(P))
        c_im = nrm((P, D), 1.0 / np.sqrt(P))
        ccat.append(jnp.concatenate([c_re, -c_im], axis=0).astype(jnp.bfloat16))   # (2P, D)
        dvec.append(nrm((1, D), 0.1))
        ff_a = nrm((D, D), 1.0 / np.sqrt(D))
        ff_g = nrm((D, D), 1.0 / np.sqrt(D))
        ffag.append(jnp.concatenate([ff_a, ff_g], axis=-1).astype(jnp.bfloat16))   # (D, 2D)
        ffd.append(nrm((D, D), 1.0 / np.sqrt(D)).astype(jnp.bfloat16))

    params['s5'] = {
        'ln1_g': jnp.stack(ln1g), 'ln1_b': jnp.stack(ln1b),
        'ln2_g': jnp.stack(ln2g), 'ln2_b': jnp.stack(ln2b),
        'lam_re': jnp.stack(lamre), 'lam_im': jnp.stack(lamim),
        'B_cat': jnp.stack(bcat), 'C_cat': jnp.stack(ccat), 'D': jnp.stack(dvec),
        'ff_ag': jnp.stack(ffag), 'ff_d': jnp.stack(ffd),
    }

    # classifier padded to a lane-dense 128-wide output slab (sliced in the wrapper)
    cw = nrm((D, num_classes), 1.0 / np.sqrt(D))
    cw_pad = jnp.zeros((D, 128), jnp.float32).at[:, :num_classes].set(cw)
    params['cls'] = {'w': cw_pad.astype(jnp.bfloat16),
                     'b': jnp.zeros((1, 128), jnp.float32)}
    return params


# ----------------------------------------------------------------------------- forward
def cnn_s5_forward(params, x, *, num_classes):
    # x: (B, L) raw 1-D signal
    B, L = x.shape
    cnn, s5, cls, proj = params['cnn'], params['s5'], params['cls'], params['proj_in']

    K1 = cnn[0]['w'].shape[0]
    C = cnn[1]['scale'].shape[-1]
    P = s5['lam_re'].shape[-1]
    Cp = cls['w'].shape[-1]
    k_pad = max(layer['w'].shape[0] // C for layer in cnn[1:]) // 2   # conv2/3 'same' pad

    # host-side im2col of the raw 1-channel signal (layout plumbing only; odd K1)
    p1 = K1 // 2
    x_pad = jnp.pad(x, ((0, 0), (p1, p1)))
    x_tap = jnp.stack([x_pad[:, k:k + L] for k in range(K1)], axis=-1)   # (B, L, K1)

    weights = (cnn[0]['w'], cnn[0]['scale'], cnn[0]['shift'],
               cnn[1]['w'], cnn[1]['scale'], cnn[1]['shift'],
               cnn[2]['w'], cnn[2]['scale'], cnn[2]['shift'],
               proj['w'], proj['b'],
               s5['ln1_g'], s5['ln1_b'], s5['B_cat'], s5['lam_re'], s5['lam_im'],
               s5['C_cat'], s5['D'], s5['ln2_g'], s5['ln2_b'], s5['ff_ag'], s5['ff_d'],
               cls['w'], cls['b'])

    logits_pad = pl.pallas_call(
        fused_forward_kernel,
        out_shape=jax.ShapeDtypeStruct((B, L, Cp), jnp.bfloat16),
        grid=(B,),
        in_specs=[pl.BlockSpec((None, L, K1), lambda b: (b, 0, 0))]
                 + [_full_spec(w) for w in weights],
        out_specs=pl.BlockSpec((None, L, Cp), lambda b: (b, 0, 0)),
        scratch_shapes=[pltpu.VMEM((L + 2 * k_pad, C), jnp.float32),
                        pltpu.VMEM((L, 2 * P), jnp.float32)],
        compiler_params=pltpu.CompilerParams(dimension_semantics=("parallel",)),
    )(x_tap, *weights)

    return logits_pad[:, :, :num_classes].astype(jnp.float32)


# ----------------------------------------------------------------------------- main
if __name__ == "__main__":
    key = jax.random.PRNGKey(0)
    pkey, xkey = jax.random.split(key)

    # small config consistent with CNNS5Model(num_classes=5, cnn_channels=32, s5_dim=32, num_s5_layers=2)
    params = init_params(pkey, cnn_channels=32, s5_dim=32, num_s5_layers=2, num_classes=5)
    x = jax.random.normal(xkey, (2, 16), jnp.float32)          # (batch=2, seq=16)

    fwd = jax.jit(functools.partial(cnn_s5_forward, num_classes=5))
    logits = fwd(params, x)
    jax.block_until_ready(logits)
    assert logits.shape == (2, 16, 5), logits.shape
    assert bool(jnp.all(jnp.isfinite(logits)))
    print("KERNEL_OK")
</pallas_src>

<mosaic_0001>
module attributes {stable_mosaic.version = 11 : i64} {
  func.func @fused_forward_kernel(%arg0: i32, %arg1: memref<1x16x7xf32, #tpu.memory_space<vmem>>, %arg2: memref<7x32xf32, #tpu.memory_space<vmem>>, %arg3: memref<1x32xf32, #tpu.memory_space<vmem>>, %arg4: memref<1x32xf32, #tpu.memory_space<vmem>>, %arg5: memref<160x32xbf16, #tpu.memory_space<vmem>>, %arg6: memref<1x32xf32, #tpu.memory_space<vmem>>, %arg7: memref<1x32xf32, #tpu.memory_space<vmem>>, %arg8: memref<96x32xbf16, #tpu.memory_space<vmem>>, %arg9: memref<1x32xf32, #tpu.memory_space<vmem>>, %arg10: memref<1x32xf32, #tpu.memory_space<vmem>>, %arg11: memref<32x32xbf16, #tpu.memory_space<vmem>>, %arg12: memref<1x32xf32, #tpu.memory_space<vmem>>, %arg13: memref<2x1x32xf32, #tpu.memory_space<vmem>>, %arg14: memref<2x1x32xf32, #tpu.memory_space<vmem>>, %arg15: memref<2x32x64xbf16, #tpu.memory_space<vmem>>, %arg16: memref<2x1x32xf32, #tpu.memory_space<vmem>>, %arg17: memref<2x1x32xf32, #tpu.memory_space<vmem>>, %arg18: memref<2x64x32xbf16, #tpu.memory_space<vmem>>, %arg19: memref<2x1x32xf32, #tpu.memory_space<vmem>>, %arg20: memref<2x1x32xf32, #tpu.memory_space<vmem>>, %arg21: memref<2x1x32xf32, #tpu.memory_space<vmem>>, %arg22: memref<2x32x64xbf16, #tpu.memory_space<vmem>>, %arg23: memref<2x32x32xbf16, #tpu.memory_space<vmem>>, %arg24: memref<32x128xbf16, #tpu.memory_space<vmem>>, %arg25: memref<1x128xf32, #tpu.memory_space<vmem>>, %arg26: memref<1x16x128xbf16, #tpu.memory_space<vmem>>, %arg27: memref<20x32xf32, #tpu.memory_space<vmem>>, %arg28: memref<16x64xf32, #tpu.memory_space<vmem>>) attributes {dimension_semantics = [#tpu.dimension_semantics<parallel>], iteration_bounds = array<i64: 2>, scalar_prefetch = 0 : i64, scratch_operands = 2 : i64, tpu.core_type = #tpu.core_type<tc>, window_params = [{transform_indices = @transform_0, window_bounds = array<i64: 1, 16, 7>}, {pipeline_mode = #tpu.pipeline_mode<synchronous>, transform_indices = @transform_1, window_bounds = array<i64: 7, 32>}, {pipeline_mode = #tpu.pipeline_mode<synchronous>, transform_indices = @transform_2, window_bounds = array<i64: 1, 32>}, {pipeline_mode = #tpu.pipeline_mode<synchronous>, transform_indices = @transform_3, window_bounds = array<i64: 1, 32>}, {pipeline_mode = #tpu.pipeline_mode<synchronous>, transform_indices = @transform_4, window_bounds = array<i64: 160, 32>}, {pipeline_mode = #tpu.pipeline_mode<synchronous>, transform_indices = @transform_5, window_bounds = array<i64: 1, 32>}, {pipeline_mode = #tpu.pipeline_mode<synchronous>, transform_indices = @transform_6, window_bounds = array<i64: 1, 32>}, {pipeline_mode = #tpu.pipeline_mode<synchronous>, transform_indices = @transform_7, window_bounds = array<i64: 96, 32>}, {pipeline_mode = #tpu.pipeline_mode<synchronous>, transform_indices = @transform_8, window_bounds = array<i64: 1, 32>}, {pipeline_mode = #tpu.pipeline_mode<synchronous>, transform_indices = @transform_9, window_bounds = array<i64: 1, 32>}, {pipeline_mode = #tpu.pipeline_mode<synchronous>, transform_indices = @transform_10, window_bounds = array<i64: 32, 32>}, {pipeline_mode = #tpu.pipeline_mode<synchronous>, transform_indices = @transform_11, window_bounds = array<i64: 1, 32>}, {pipeline_mode = #tpu.pipeline_mode<synchronous>, transform_indices = @transform_12, window_bounds = array<i64: 2, 1, 32>}, {pipeline_mode = #tpu.pipeline_mode<synchronous>, transform_indices = @transform_13, window_bounds = array<i64: 2, 1, 32>}, {pipeline_mode = #tpu.pipeline_mode<synchronous>, transform_indices = @transform_14, window_bounds = array<i64: 2, 32, 64>}, {pipeline_mode = #tpu.pipeline_mode<synchronous>, transform_indices = @transform_15, window_bounds = array<i64: 2, 1, 32>}, {pipeline_mode = #tpu.pipeline_mode<synchronous>, transform_indices = @transform_16, window_bounds = array<i64: 2, 1, 32>}, {pipeline_mode = #tpu.pipeline_mode<synchronous>, transform_indices = @transform_17, window_bounds = array<i64: 2, 64, 32>}, {pipeline_mode = #tpu.pipeline_mode<synchronous>, transform_indices = @transform_18, window_bounds = array<i64: 2, 1, 32>}, {pipeline_mode = #tpu.pipeline_mode<synchronous>, transform_indices = @transform_19, window_bounds = array<i64: 2, 1, 32>}, {pipeline_mode = #tpu.pipeline_mode<synchronous>, transform_indices = @transform_20, window_bounds = array<i64: 2, 1, 32>}, {pipeline_mode = #tpu.pipeline_mode<synchronous>, transform_indices = @transform_21, window_bounds = array<i64: 2, 32, 64>}, {pipeline_mode = #tpu.pipeline_mode<synchronous>, transform_indices = @transform_22, window_bounds = array<i64: 2, 32, 32>}, {pipeline_mode = #tpu.pipeline_mode<synchronous>, transform_indices = @transform_23, window_bounds = array<i64: 32, 128>}, {pipeline_mode = #tpu.pipeline_mode<synchronous>, transform_indices = @transform_24, window_bounds = array<i64: 1, 128>}, {transform_indices = @transform_25, window_bounds = array<i64: 1, 16, 128>}]} {
    %c0 = arith.constant 0 : index
    %c0_0 = arith.constant 0 : index
    %c0_1 = arith.constant 0 : index
    %0 = vector.load %arg1[%c0, %c0_0, %c0_1] : memref<1x16x7xf32, #tpu.memory_space<vmem>>, vector<1x16x7xf32>
    %1 = vector.shape_cast %0 : vector<1x16x7xf32> to vector<16x7xf32>
    %c0_2 = arith.constant 0 : index
    %c0_3 = arith.constant 0 : index
    %2 = vector.load %arg2[%c0_2, %c0_3] : memref<7x32xf32, #tpu.memory_space<vmem>>, vector<7x32xf32>
    %cst = arith.constant dense<0.000000e+00> : vector<16x32xf32>
    %3 = tpu.matmul %1, %2, %cst {dimension_numbers = #tpu.dot_dimension_numbers<[1], [0], [0], [1], [0, 0, 1, 1], [], []>} : vector<16x7xf32>, vector<7x32xf32>, vector<16x32xf32> -> vector<16x32xf32>
    %c0_4 = arith.constant 0 : index
    %c0_5 = arith.constant 0 : index
    %4 = vector.load %arg3[%c0_4, %c0_5] : memref<1x32xf32, #tpu.memory_space<vmem>>, vector<1x32xf32>
    %5 = vector.broadcast %4 : vector<1x32xf32> to vector<16x32xf32>
    %6 = arith.mulf %3, %5 : vector<16x32xf32>
    %c0_6 = arith.constant 0 : index
    %c0_7 = arith.constant 0 : index
    %7 = vector.load %arg4[%c0_6, %c0_7] : memref<1x32xf32, #tpu.memory_space<vmem>>, vector<1x32xf32>
    %8 = vector.broadcast %7 : vector<1x32xf32> to vector<16x32xf32>
    %9 = arith.addf %6, %8 : vector<16x32xf32>
    %cst_8 = arith.constant 0.000000e+00 : f32
    %10 = vector.broadcast %cst_8 : f32 to vector<16x32xf32>
    %11 = arith.maximumf %9, %10 : vector<16x32xf32>
    %cst_9 = arith.constant 0.000000e+00 : f32
    %12 = vector.broadcast %cst_9 : f32 to vector<2x32xf32>
    %c0_10 = arith.constant 0 : index
    %c0_11 = arith.constant 0 : index
    %13 = vector.load %arg27[%c0_10, %c0_11] : memref<20x32xf32, #tpu.memory_space<vmem>>, vector<2x32xf32>
    tpu.vector_store %arg27[%c0_10, %c0_11], %12 {strides = array<i32>} : memref<20x32xf32, #tpu.memory_space<vmem>>, vector<2x32xf32>,
    %cst_12 = arith.constant 0.000000e+00 : f32
    %14 = vector.broadcast %cst_12 : f32 to vector<2x32xf32>
    %c18 = arith.constant 18 : index
    %c0_13 = arith.constant 0 : index
    %15 = vector.load %arg27[%c18, %c0_13] : memref<20x32xf32, #tpu.memory_space<vmem>>, vector<2x32xf32>
    tpu.vector_store %arg27[%c18, %c0_13], %14 {strides = array<i32>} : memref<20x32xf32, #tpu.memory_space<vmem>>, vector<2x32xf32>,
    %c2 = arith.constant 2 : index
    %c0_14 = arith.constant 0 : index
    %16 = vector.load %arg27[%c2, %c0_14] : memref<20x32xf32, #tpu.memory_space<vmem>>, vector<16x32xf32>
    tpu.vector_store %arg27[%c2, %c0_14], %11 {strides = array<i32>} : memref<20x32xf32, #tpu.memory_space<vmem>>, vector<16x32xf32>,
    %c0_15 = arith.constant 0 : index
    %c0_16 = arith.constant 0 : index
    %17 = vector.load %arg27[%c0_15, %c0_16] : memref<20x32xf32, #tpu.memory_space<vmem>>, vector<16x32xf32>
    %c1 = arith.constant 1 : index
    %c0_17 = arith.constant 0 : index
    %18 = vector.load %arg27[%c1, %c0_17] : memref<20x32xf32, #tpu.memory_space<vmem>>, vector<16x32xf32>
    %c2_18 = arith.constant 2 : index
    %c0_19 = arith.constant 0 : index
    %19 = vector.load %arg27[%c2_18, %c0_19] : memref<20x32xf32, #tpu.memory_space<vmem>>, vector<16x32xf32>
    %c3 = arith.constant 3 : index
    %c0_20 = arith.constant 0 : index
    %20 = vector.load %arg27[%c3, %c0_20] : memref<20x32xf32, #tpu.memory_space<vmem>>, vector<16x32xf32>
    %c4 = arith.constant 4 : index
    %c0_21 = arith.constant 0 : index
    %21 = vector.load %arg27[%c4, %c0_21] : memref<20x32xf32, #tpu.memory_space<vmem>>, vector<16x32xf32>
    %22 = tpu.concatenate %17, %18, %19, %20, %21 in 1 : vector<16x32xf32>, vector<16x32xf32>, vector<16x32xf32>, vector<16x32xf32>, vector<16x32xf32> -> vector<16x160xf32>
    %23 = arith.truncf %22 : vector<16x160xf32> to vector<16x160xbf16>
    %c0_22 = arith.constant 0 : index
    %c0_23 = arith.constant 0 : index
    %24 = vector.load %arg5[%c0_22, %c0_23] : memref<160x32xbf16, #tpu.memory_space<vmem>>, vector<160x32xbf16>
    %cst_24 = arith.constant dense<0.000000e+00> : vector<16x32xf32>
    %25 = tpu.matmul %23, %24, %cst_24 {dimension_numbers = #tpu.dot_dimension_numbers<[1], [0], [0], [1], [0, 0, 1, 1], [], []>} : vector<16x160xbf16>, vector<160x32xbf16>, vector<16x32xf32> -> vector<16x32xf32>
    %c0_25 = arith.constant 0 : index
    %c0_26 = arith.constant 0 : index
    %26 = vector.load %arg6[%c0_25, %c0_26] : memref<1x32xf32, #tpu.memory_space<vmem>>, vector<1x32xf32>
    %27 = vector.broadcast %26 : vector<1x32xf32> to vector<16x32xf32>
    %28 = arith.mulf %25, %27 : vector<16x32xf32>
    %c0_27 = arith.constant 0 : index
    %c0_28 = arith.constant 0 : index
    %29 = vector.load %arg7[%c0_27, %c0_28] : memref<1x32xf32, #tpu.memory_space<vmem>>, vector<1x32xf32>
    %30 = vector.broadcast %29 : vector<1x32xf32> to vector<16x32xf32>
    %31 = arith.addf %28, %30 : vector<16x32xf32>
    %cst_29 = arith.constant 0.000000e+00 : f32
    %32 = vector.broadcast %cst_29 : f32 to vector<16x32xf32>
    %33 = arith.maximumf %31, %32 : vector<16x32xf32>
    %c2_30 = arith.constant 2 : index
    %c0_31 = arith.constant 0 : index
    %34 = vector.load %arg27[%c2_30, %c0_31] : memref<20x32xf32, #tpu.memory_space<vmem>>, vector<16x32xf32>
    tpu.vector_store %arg27[%c2_30, %c0_31], %33 {strides = array<i32>} : memref<20x32xf32, #tpu.memory_space<vmem>>, vector<16x32xf32>,
    %c1_32 = arith.constant 1 : index
    %c0_33 = arith.constant 0 : index
    %35 = vector.load %arg27[%c1_32, %c0_33] : memref<20x32xf32, #tpu.memory_space<vmem>>, vector<16x32xf32>
    %c2_34 = arith.constant 2 : index
    %c0_35 = arith.constant 0 : index
    %36 = vector.load %arg27[%c2_34, %c0_35] : memref<20x32xf32, #tpu.memory_space<vmem>>, vector<16x32xf32>
    %c3_36 = arith.constant 3 : index
    %c0_37 = arith.constant 0 : index
    %37 = vector.load %arg27[%c3_36, %c0_37] : memref<20x32xf32, #tpu.memory_space<vmem>>, vector<16x32xf32>
    %38 = tpu.concatenate %35, %36, %37 in 1 : vector<16x32xf32>, vector<16x32xf32>, vector<16x32xf32> -> vector<16x96xf32>
    %39 = arith.truncf %38 : vector<16x96xf32> to vector<16x96xbf16>
    %c0_38 = arith.constant 0 : index
    %c0_39 = arith.constant 0 : index
    %40 = vector.load %arg8[%c0_38, %c0_39] : memref<96x32xbf16, #tpu.memory_space<vmem>>, vector<96x32xbf16>
    %cst_40 = arith.constant dense<0.000000e+00> : vector<16x32xf32>
    %41 = tpu.matmul %39, %40, %cst_40 {dimension_numbers = #tpu.dot_dimension_numbers<[1], [0], [0], [1], [0, 0, 1, 1], [], []>} : vector<16x96xbf16>, vector<96x32xbf16>, vector<16x32xf32> -> vector<16x32xf32>
    %c0_41 = arith.constant 0 : index
    %c0_42 = arith.constant 0 : index
    %42 = vector.load %arg9[%c0_41, %c0_42] : memref<1x32xf32, #tpu.memory_space<vmem>>, vector<1x32xf32>
    %43 = vector.broadcast %42 : vector<1x32xf32> to vector<16x32xf32>
    %44 = arith.mulf %41, %43 : vector<16x32xf32>
    %c0_43 = arith.constant 0 : index
    %c0_44 = arith.constant 0 : index
    %45 = vector.load %arg10[%c0_43, %c0_44] : memref<1x32xf32, #tpu.memory_space<vmem>>, vector<1x32xf32>
    %46 = vector.broadcast %45 : vector<1x32xf32> to vector<16x32xf32>
    %47 = arith.addf %44, %46 : vector<16x32xf32>
    %cst_45 = arith.constant 0.000000e+00 : f32
    %48 = vector.broadcast %cst_45 : f32 to vector<16x32xf32>
    %49 = arith.maximumf %47, %48 : vector<16x32xf32>
    %50 = arith.truncf %49 : vector<16x32xf32> to vector<16x32xbf16>
    %c0_46 = arith.constant 0 : index
    %c0_47 = arith.constant 0 : index
    %51 = vector.load %arg11[%c0_46, %c0_47] : memref<32x32xbf16, #tpu.memory_space<vmem>>, vector<32x32xbf16>
    %cst_48 = arith.constant dense<0.000000e+00> : vector<16x32xf32>
    %52 = tpu.matmul %50, %51, %cst_48 {dimension_numbers = #tpu.dot_dimension_numbers<[1], [0], [0], [1], [0, 0, 1, 1], [], []>} : vector<16x32xbf16>, vector<32x32xbf16>, vector<16x32xf32> -> vector<16x32xf32>
    %c0_49 = arith.constant 0 : index
    %c0_50 = arith.constant 0 : index
    %53 = vector.load %arg12[%c0_49, %c0_50] : memref<1x32xf32, #tpu.memory_space<vmem>>, vector<1x32xf32>
    %54 = vector.broadcast %53 : vector<1x32xf32> to vector<16x32xf32>
    %55 = arith.addf %52, %54 : vector<16x32xf32>
    %c0_51 = arith.constant 0 : index
    %c0_52 = arith.constant 0 : index
    %c0_53 = arith.constant 0 : index
    %56 = vector.load %arg13[%c0_51, %c0_52, %c0_53] : memref<2x1x32xf32, #tpu.memory_space<vmem>>, vector<1x1x32xf32>
    %57 = vector.shape_cast %56 : vector<1x1x32xf32> to vector<1x32xf32>
    %c0_54 = arith.constant 0 : index
    %c0_55 = arith.constant 0 : index
    %c0_56 = arith.constant 0 : index
    %58 = vector.load %arg14[%c0_54, %c0_55, %c0_56] : memref<2x1x32xf32, #tpu.memory_space<vmem>>, vector<1x1x32xf32>
    %59 = vector.shape_cast %58 : vector<1x1x32xf32> to vector<1x32xf32>
    %cst_57 = arith.constant dense<0.000000e+00> : vector<16xf32>
    %60 = vector.multi_reduction <add>, %55, %cst_57 [1] : vector<16x32xf32> to vector<16xf32>
    %61 = vector.shape_cast %60 : vector<16xf32> to vector<16x1xf32>
    %cst_58 = arith.constant 3.200000e+01 : f32
    %62 = vector.broadcast %cst_58 : f32 to vector<16x1xf32>
    %63 = arith.divf %61, %62 : vector<16x1xf32>
    %64 = vector.broadcast %63 : vector<16x1xf32> to vector<16x32xf32>
    %65 = arith.subf %55, %64 : vector<16x32xf32>
    %66 = arith.mulf %65, %65 : vector<16x32xf32>
    %cst_59 = arith.constant dense<0.000000e+00> : vector<16xf32>
    %67 = vector.multi_reduction <add>, %66, %cst_59 [1] : vector<16x32xf32> to vector<16xf32>
    %68 = vector.shape_cast %67 : vector<16xf32> to vector<16x1xf32>
    %cst_60 = arith.constant 3.200000e+01 : f32
    %69 = vector.broadcast %cst_60 : f32 to vector<16x1xf32>
    %70 = arith.divf %68, %69 : vector<16x1xf32>
    %71 = vector.broadcast %63 : vector<16x1xf32> to vector<16x32xf32>
    %72 = arith.subf %55, %71 : vector<16x32xf32>
    %cst_61 = arith.constant 9.99999974E-6 : f32
    %73 = vector.broadcast %cst_61 : f32 to vector<16x1xf32>
    %74 = arith.addf %70, %73 : vector<16x1xf32>
    %75 = math.rsqrt %74 : vector<16x1xf32>
    %76 = vector.broadcast %75 : vector<16x1xf32> to vector<16x32xf32>
    %77 = arith.mulf %72, %76 : vector<16x32xf32>
    %78 = vector.broadcast %57 : vector<1x32xf32> to vector<16x32xf32>
    %79 = arith.mulf %77, %78 : vector<16x32xf32>
    %80 = vector.broadcast %59 : vector<1x32xf32> to vector<16x32xf32>
    %81 = arith.addf %79, %80 : vector<16x32xf32>
    %82 = arith.truncf %81 : vector<16x32xf32> to vector<16x32xbf16>
    %c0_62 = arith.constant 0 : index
    %c0_63 = arith.constant 0 : index
    %c0_64 = arith.constant 0 : index
    %83 = vector.load %arg15[%c0_62, %c0_63, %c0_64] : memref<2x32x64xbf16, #tpu.memory_space<vmem>>, vector<1x32x64xbf16>
    %84 = vector.shape_cast %83 : vector<1x32x64xbf16> to vector<32x64xbf16>
    %cst_65 = arith.constant dense<0.000000e+00> : vector<16x64xf32>
    %85 = tpu.matmul %82, %84, %cst_65 {dimension_numbers = #tpu.dot_dimension_numbers<[1], [0], [0], [1], [0, 0, 1, 1], [], []>} : vector<16x32xbf16>, vector<32x64xbf16>, vector<16x64xf32> -> vector<16x64xf32>
    %86 = vector.extract_strided_slice %85 {offsets = [0, 0], sizes = [16, 32], strides = [1, 1]} : vector<16x64xf32> to vector<16x32xf32>
    %87 = vector.extract_strided_slice %85 {offsets = [0, 32], sizes = [16, 32], strides = [1, 1]} : vector<16x64xf32> to vector<16x32xf32>
    %c0_66 = arith.constant 0 : index
    %c0_67 = arith.constant 0 : index
    %c0_68 = arith.constant 0 : index
    %88 = vector.load %arg16[%c0_66, %c0_67, %c0_68] : memref<2x1x32xf32, #tpu.memory_space<vmem>>, vector<1x1x32xf32>
    %89 = vector.shape_cast %88 : vector<1x1x32xf32> to vector<1x32xf32>
    %c0_69 = arith.constant 0 : index
    %c0_70 = arith.constant 0 : index
    %c0_71 = arith.constant 0 : index
    %90 = vector.load %arg17[%c0_69, %c0_70, %c0_71] : memref<2x1x32xf32, #tpu.memory_space<vmem>>, vector<1x1x32xf32>
    %91 = vector.shape_cast %90 : vector<1x1x32xf32> to vector<1x32xf32>
    %cst_72 = arith.constant 0.000000e+00 : f32
    %92 = vector.broadcast %cst_72 : f32 to vector<1x32xf32>
    %cst_73 = arith.constant 0.000000e+00 : f32
    %93 = vector.broadcast %cst_73 : f32 to vector<1x32xf32>
    %94 = arith.mulf %89, %92 : vector<1x32xf32>
    %95 = arith.mulf %91, %93 : vector<1x32xf32>
    %96 = arith.subf %94, %95 : vector<1x32xf32>
    %97 = vector.extract_strided_slice %86 {offsets = [0, 0], sizes = [1, 32], strides = [1, 1]} : vector<16x32xf32> to vector<1x32xf32>
    %98 = arith.addf %96, %97 : vector<1x32xf32>
    %99 = arith.mulf %89, %93 : vector<1x32xf32>
    %100 = arith.mulf %91, %92 : vector<1x32xf32>
    %101 = arith.addf %99, %100 : vector<1x32xf32>
    %102 = vector.extract_strided_slice %87 {offsets = [0, 0], sizes = [1, 32], strides = [1, 1]} : vector<16x32xf32> to vector<1x32xf32>
    %103 = arith.addf %101, %102 : vector<1x32xf32>
    %104 = arith.mulf %89, %98 : vector<1x32xf32>
    %105 = arith.mulf %91, %103 : vector<1x32xf32>
    %106 = arith.subf %104, %105 : vector<1x32xf32>
    %107 = vector.extract_strided_slice %86 {offsets = [1, 0], sizes = [1, 32], strides = [1, 1]} : vector<16x32xf32> to vector<1x32xf32>
    %108 = arith.addf %106, %107 : vector<1x32xf32>
    %109 = arith.mulf %89, %103 : vector<1x32xf32>
    %110 = arith.mulf %91, %98 : vector<1x32xf32>
    %111 = arith.addf %109, %110 : vector<1x32xf32>
    %112 = vector.extract_strided_slice %87 {offsets = [1, 0], sizes = [1, 32], strides = [1, 1]} : vector<16x32xf32> to vector<1x32xf32>
    %113 = arith.addf %111, %112 : vector<1x32xf32>
    %114 = arith.mulf %89, %108 : vector<1x32xf32>
    %115 = arith.mulf %91, %113 : vector<1x32xf32>
    %116 = arith.subf %114, %115 : vector<1x32xf32>
    %117 = vector.extract_strided_slice %86 {offsets = [2, 0], sizes = [1, 32], strides = [1, 1]} : vector<16x32xf32> to vector<1x32xf32>
    %118 = arith.addf %116, %117 : vector<1x32xf32>
    %119 = arith.mulf %89, %113 : vector<1x32xf32>
    %120 = arith.mulf %91, %108 : vector<1x32xf32>
    %121 = arith.addf %119, %120 : vector<1x32xf32>
    %122 = vector.extract_strided_slice %87 {offsets = [2, 0], sizes = [1, 32], strides = [1, 1]} : vector<16x32xf32> to vector<1x32xf32>
    %123 = arith.addf %121, %122 : vector<1x32xf32>
    %124 = arith.mulf %89, %118 : vector<1x32xf32>
    %125 = arith.mulf %91, %123 : vector<1x32xf32>
    %126 = arith.subf %124, %125 : vector<1x32xf32>
    %127 = vector.extract_strided_slice %86 {offsets = [3, 0], sizes = [1, 32], strides = [1, 1]} : vector<16x32xf32> to vector<1x32xf32>
    %128 = arith.addf %126, %127 : vector<1x32xf32>
    %129 = arith.mulf %89, %123 : vector<1x32xf32>
    %130 = arith.mulf %91, %118 : vector<1x32xf32>
    %131 = arith.addf %129, %130 : vector<1x32xf32>
    %132 = vector.extract_strided_slice %87 {offsets = [3, 0], sizes = [1, 32], strides = [1, 1]} : vector<16x32xf32> to vector<1x32xf32>
    %133 = arith.addf %131, %132 : vector<1x32xf32>
    %134 = arith.mulf %89, %128 : vector<1x32xf32>
    %135 = arith.mulf %91, %133 : vector<1x32xf32>
    %136 = arith.subf %134, %135 : vector<1x32xf32>
    %137 = vector.extract_strided_slice %86 {offsets = [4, 0], sizes = [1, 32], strides = [1, 1]} : vector<16x32xf32> to vector<1x32xf32>
    %138 = arith.addf %136, %137 : vector<1x32xf32>
    %139 = arith.mulf %89, %133 : vector<1x32xf32>
    %140 = arith.mulf %91, %128 : vector<1x32xf32>
    %141 = arith.addf %139, %140 : vector<1x32xf32>
    %142 = vector.extract_strided_slice %87 {offsets = [4, 0], sizes = [1, 32], strides = [1, 1]} : vector<16x32xf32> to vector<1x32xf32>
    %143 = arith.addf %141, %142 : vector<1x32xf32>
    %144 = arith.mulf %89, %138 : vector<1x32xf32>
    %145 = arith.mulf %91, %143 : vector<1x32xf32>
    %146 = arith.subf %144, %145 : vector<1x32xf32>
    %147 = vector.extract_strided_slice %86 {offsets = [5, 0], sizes = [1, 32], strides = [1, 1]} : vector<16x32xf32> to vector<1x32xf32>
    %148 = arith.addf %146, %147 : vector<1x32xf32>
    %149 = arith.mulf %89, %143 : vector<1x32xf32>
    %150 = arith.mulf %91, %138 : vector<1x32xf32>
    %151 = arith.addf %149, %150 : vector<1x32xf32>
    %152 = vector.extract_strided_slice %87 {offsets = [5, 0], sizes = [1, 32], strides = [1, 1]} : vector<16x32xf32> to vector<1x32xf32>
    %153 = arith.addf %151, %152 : vector<1x32xf32>
    %154 = arith.mulf %89, %148 : vector<1x32xf32>
    %155 = arith.mulf %91, %153 : vector<1x32xf32>
    %156 = arith.subf %154, %155 : vector<1x32xf32>
    %157 = vector.extract_strided_slice %86 {offsets = [6, 0], sizes = [1, 32], strides = [1, 1]} : vector<16x32xf32> to vector<1x32xf32>
    %158 = arith.addf %156, %157 : vector<1x32xf32>
    %159 = arith.mulf %89, %153 : vector<1x32xf32>
    %160 = arith.mulf %91, %148 : vector<1x32xf32>
    %161 = arith.addf %159, %160 : vector<1x32xf32>
    %162 = vector.extract_strided_slice %87 {offsets = [6, 0], sizes = [1, 32], strides = [1, 1]} : vector<16x32xf32> to vector<1x32xf32>
    %163 = arith.addf %161, %162 : vector<1x32xf32>
    %164 = arith.mulf %89, %158 : vector<1x32xf32>
    %165 = arith.mulf %91, %163 : vector<1x32xf32>
    %166 = arith.subf %164, %165 : vector<1x32xf32>
    %167 = vector.extract_strided_slice %86 {offsets = [7, 0], sizes = [1, 32], strides = [1, 1]} : vector<16x32xf32> to vector<1x32xf32>
    %168 = arith.addf %166, %167 : vector<1x32xf32>
    %169 = arith.mulf %89, %163 : vector<1x32xf32>
    %170 = arith.mulf %91, %158 : vector<1x32xf32>
    %171 = arith.addf %169, %170 : vector<1x32xf32>
    %172 = vector.extract_strided_slice %87 {offsets = [7, 0], sizes = [1, 32], strides = [1, 1]} : vector<16x32xf32> to vector<1x32xf32>
    %173 = arith.addf %171, %172 : vector<1x32xf32>
    %174 = tpu.concatenate %98, %108, %118, %128, %138, %148, %158, %168 in 0 : vector<1x32xf32>, vector<1x32xf32>, vector<1x32xf32>, vector<1x32xf32>, vector<1x32xf32>, vector<1x32xf32>, vector<1x32xf32>, vector<1x32xf32> -> vector<8x32xf32>
    %175 = tpu.concatenate %103, %113, %123, %133, %143, %153, %163, %173 in 0 : vector<1x32xf32>, vector<1x32xf32>, vector<1x32xf32>, vector<1x32xf32>, vector<1x32xf32>, vector<1x32xf32>, vector<1x32xf32>, vector<1x32xf32> -> vector<8x32xf32>
    %176 = tpu.concatenate %174, %175 in 1 : vector<8x32xf32>, vector<8x32xf32> -> vector<8x64xf32>
    %c0_74 = arith.constant 0 : index
    %c0_75 = arith.constant 0 : index
    %177 = vector.load %arg28[%c0_74, %c0_75] : memref<16x64xf32, #tpu.memory_space<vmem>>, vector<8x64xf32>
    tpu.vector_store %arg28[%c0_74, %c0_75], %176 {strides = array<i32>} : memref<16x64xf32, #tpu.memory_space<vmem>>, vector<8x64xf32>,
    %178 = arith.mulf %89, %168 : vector<1x32xf32>
    %179 = arith.mulf %91, %173 : vector<1x32xf32>
    %180 = arith.subf %178, %179 : vector<1x32xf32>
    %181 = vector.extract_strided_slice %86 {offsets = [8, 0], sizes = [1, 32], strides = [1, 1]} : vector<16x32xf32> to vector<1x32xf32>
    %182 = arith.addf %180, %181 : vector<1x32xf32>
    %183 = arith.mulf %89, %173 : vector<1x32xf32>
    %184 = arith.mulf %91, %168 : vector<1x32xf32>
    %185 = arith.addf %183, %184 : vector<1x32xf32>
    %186 = vector.extract_strided_slice %87 {offsets = [8, 0], sizes = [1, 32], strides = [1, 1]} : vector<16x32xf32> to vector<1x32xf32>
    %187 = arith.addf %185, %186 : vector<1x32xf32>
    %188 = arith.mulf %89, %182 : vector<1x32xf32>
    %189 = arith.mulf %91, %187 : vector<1x32xf32>
    %190 = arith.subf %188, %189 : vector<1x32xf32>
    %191 = vector.extract_strided_slice %86 {offsets = [9, 0], sizes = [1, 32], strides = [1, 1]} : vector<16x32xf32> to vector<1x32xf32>
    %192 = arith.addf %190, %191 : vector<1x32xf32>
    %193 = arith.mulf %89, %187 : vector<1x32xf32>
    %194 = arith.mulf %91, %182 : vector<1x32xf32>
    %195 = arith.addf %193, %194 : vector<1x32xf32>
    %196 = vector.extract_strided_slice %87 {offsets = [9, 0], sizes = [1, 32], strides = [1, 1]} : vector<16x32xf32> to vector<1x32xf32>
    %197 = arith.addf %195, %196 : vector<1x32xf32>
    %198 = arith.mulf %89, %192 : vector<1x32xf32>
    %199 = arith.mulf %91, %197 : vector<1x32xf32>
    %200 = arith.subf %198, %199 : vector<1x32xf32>
    %201 = vector.extract_strided_slice %86 {offsets = [10, 0], sizes = [1, 32], strides = [1, 1]} : vector<16x32xf32> to vector<1x32xf32>
    %202 = arith.addf %200, %201 : vector<1x32xf32>
    %203 = arith.mulf %89, %197 : vector<1x32xf32>
    %204 = arith.mulf %91, %192 : vector<1x32xf32>
    %205 = arith.addf %203, %204 : vector<1x32xf32>
    %206 = vector.extract_strided_slice %87 {offsets = [10, 0], sizes = [1, 32], strides = [1, 1]} : vector<16x32xf32> to vector<1x32xf32>
    %207 = arith.addf %205, %206 : vector<1x32xf32>
    %208 = arith.mulf %89, %202 : vector<1x32xf32>
    %209 = arith.mulf %91, %207 : vector<1x32xf32>
    %210 = arith.subf %208, %209 : vector<1x32xf32>
    %211 = vector.extract_strided_slice %86 {offsets = [11, 0], sizes = [1, 32], strides = [1, 1]} : vector<16x32xf32> to vector<1x32xf32>
    %212 = arith.addf %210, %211 : vector<1x32xf32>
    %213 = arith.mulf %89, %207 : vector<1x32xf32>
    %214 = arith.mulf %91, %202 : vector<1x32xf32>
    %215 = arith.addf %213, %214 : vector<1x32xf32>
    %216 = vector.extract_strided_slice %87 {offsets = [11, 0], sizes = [1, 32], strides = [1, 1]} : vector<16x32xf32> to vector<1x32xf32>
    %217 = arith.addf %215, %216 : vector<1x32xf32>
    %218 = arith.mulf %89, %212 : vector<1x32xf32>
    %219 = arith.mulf %91, %217 : vector<1x32xf32>
    %220 = arith.subf %218, %219 : vector<1x32xf32>
    %221 = vector.extract_strided_slice %86 {offsets = [12, 0], sizes = [1, 32], strides = [1, 1]} : vector<16x32xf32> to vector<1x32xf32>
    %222 = arith.addf %220, %221 : vector<1x32xf32>
    %223 = arith.mulf %89, %217 : vector<1x32xf32>
    %224 = arith.mulf %91, %212 : vector<1x32xf32>
    %225 = arith.addf %223, %224 : vector<1x32xf32>
    %226 = vector.extract_strided_slice %87 {offsets = [12, 0], sizes = [1, 32], strides = [1, 1]} : vector<16x32xf32> to vector<1x32xf32>
    %227 = arith.addf %225, %226 : vector<1x32xf32>
    %228 = arith.mulf %89, %222 : vector<1x32xf32>
    %229 = arith.mulf %91, %227 : vector<1x32xf32>
    %230 = arith.subf %228, %229 : vector<1x32xf32>
    %231 = vector.extract_strided_slice %86 {offsets = [13, 0], sizes = [1, 32], strides = [1, 1]} : vector<16x32xf32> to vector<1x32xf32>
    %232 = arith.addf %230, %231 : vector<1x32xf32>
    %233 = arith.mulf %89, %227 : vector<1x32xf32>
    %234 = arith.mulf %91, %222 : vector<1x32xf32>
    %235 = arith.addf %233, %234 : vector<1x32xf32>
    %236 = vector.extract_strided_slice %87 {offsets = [13, 0], sizes = [1, 32], strides = [1, 1]} : vector<16x32xf32> to vector<1x32xf32>
    %237 = arith.addf %235, %236 : vector<1x32xf32>
    %238 = arith.mulf %89, %232 : vector<1x32xf32>
    %239 = arith.mulf %91, %237 : vector<1x32xf32>
    %240 = arith.subf %238, %239 : vector<1x32xf32>
    %241 = vector.extract_strided_slice %86 {offsets = [14, 0], sizes = [1, 32], strides = [1, 1]} : vector<16x32xf32> to vector<1x32xf32>
    %242 = arith.addf %240, %241 : vector<1x32xf32>
    %243 = arith.mulf %89, %237 : vector<1x32xf32>
    %244 = arith.mulf %91, %232 : vector<1x32xf32>
    %245 = arith.addf %243, %244 : vector<1x32xf32>
    %246 = vector.extract_strided_slice %87 {offsets = [14, 0], sizes = [1, 32], strides = [1, 1]} : vector<16x32xf32> to vector<1x32xf32>
    %247 = arith.addf %245, %246 : vector<1x32xf32>
    %248 = arith.mulf %89, %242 : vector<1x32xf32>
    %249 = arith.mulf %91, %247 : vector<1x32xf32>
    %250 = arith.subf %248, %249 : vector<1x32xf32>
    %251 = vector.extract_strided_slice %86 {offsets = [15, 0], sizes = [1, 32], strides = [1, 1]} : vector<16x32xf32> to vector<1x32xf32>
    %252 = arith.addf %250, %251 : vector<1x32xf32>
    %253 = arith.mulf %89, %247 : vector<1x32xf32>
    %254 = arith.mulf %91, %242 : vector<1x32xf32>
    %255 = arith.addf %253, %254 : vector<1x32xf32>
    %256 = vector.extract_strided_slice %87 {offsets = [15, 0], sizes = [1, 32], strides = [1, 1]} : vector<16x32xf32> to vector<1x32xf32>
    %257 = arith.addf %255, %256 : vector<1x32xf32>
    %258 = tpu.concatenate %182, %192, %202, %212, %222, %232, %242, %252 in 0 : vector<1x32xf32>, vector<1x32xf32>, vector<1x32xf32>, vector<1x32xf32>, vector<1x32xf32>, vector<1x32xf32>, vector<1x32xf32>, vector<1x32xf32> -> vector<8x32xf32>
    %259 = tpu.concatenate %187, %197, %207, %217, %227, %237, %247, %257 in 0 : vector<1x32xf32>, vector<1x32xf32>, vector<1x32xf32>, vector<1x32xf32>, vector<1x32xf32>, vector<1x32xf32>, vector<1x32xf32>, vector<1x32xf32> -> vector<8x32xf32>
    %260 = tpu.concatenate %258, %259 in 1 : vector<8x32xf32>, vector<8x32xf32> -> vector<8x64xf32>
    %c8 = arith.constant 8 : index
    %c0_76 = arith.constant 0 : index
    %261 = vector.load %arg28[%c8, %c0_76] : memref<16x64xf32, #tpu.memory_space<vmem>>, vector<8x64xf32>
    tpu.vector_store %arg28[%c8, %c0_76], %260 {strides = array<i32>} : memref<16x64xf32, #tpu.memory_space<vmem>>, vector<8x64xf32>,
    %c0_77 = arith.constant 0 : index
    %c0_78 = arith.constant 0 : index
    %262 = vector.load %arg28[%c0_77, %c0_78] : memref<16x64xf32, #tpu.memory_space<vmem>>, vector<16x64xf32>
    %263 = arith.truncf %262 : vector<16x64xf32> to vector<16x64xbf16>
    %c0_79 = arith.constant 0 : index
    %c0_80 = arith.constant 0 : index
    %c0_81 = arith.constant 0 : index
    %264 = vector.load %arg18[%c0_79, %c0_80, %c0_81] : memref<2x64x32xbf16, #tpu.memory_space<vmem>>, vector<1x64x32xbf16>
    %265 = vector.shape_cast %264 : vector<1x64x32xbf16> to vector<64x32xbf16>
    %cst_82 = arith.constant dense<0.000000e+00> : vector<16x32xf32>
    %266 = tpu.matmul %263, %265, %cst_82 {dimension_numbers = #tpu.dot_dimension_numbers<[1], [0], [0], [1], [0, 0, 1, 1], [], []>} : vector<16x64xbf16>, vector<64x32xbf16>, vector<16x32xf32> -> vector<16x32xf32>
    %c0_83 = arith.constant 0 : index
    %c0_84 = arith.constant 0 : index
    %c0_85 = arith.constant 0 : index
    %267 = vector.load %arg19[%c0_83, %c0_84, %c0_85] : memref<2x1x32xf32, #tpu.memory_space<vmem>>, vector<1x1x32xf32>
    %268 = vector.shape_cast %267 : vector<1x1x32xf32> to vector<1x32xf32>
    %269 = vector.broadcast %268 : vector<1x32xf32> to vector<16x32xf32>
    %270 = arith.mulf %269, %81 : vector<16x32xf32>
    %271 = arith.addf %266, %270 : vector<16x32xf32>
    %cst_86 = arith.constant 5.000000e-01 : f32
    %272 = vector.broadcast %cst_86 : f32 to vector<16x32xf32>
    %273 = arith.mulf %272, %271 : vector<16x32xf32>
    %cst_87 = arith.constant 4.471500e-02 : f32
    %274 = vector.broadcast %cst_87 : f32 to vector<16x32xf32>
    %275 = arith.mulf %274, %271 : vector<16x32xf32>
    %276 = arith.mulf %275, %271 : vector<16x32xf32>
    %277 = arith.mulf %276, %271 : vector<16x32xf32>
    %278 = arith.addf %271, %277 : vector<16x32xf32>
    %cst_88 = arith.constant 0.797884583 : f32
    %279 = vector.broadcast %cst_88 : f32 to vector<16x32xf32>
    %280 = arith.mulf %279, %278 : vector<16x32xf32>
    %281 = math.tanh %280 : vector<16x32xf32>
    %cst_89 = arith.constant 1.000000e+00 : f32
    %282 = vector.broadcast %cst_89 : f32 to vector<16x32xf32>
    %283 = arith.addf %282, %281 : vector<16x32xf32>
    %284 = arith.mulf %273, %283 : vector<16x32xf32>
    %285 = arith.addf %284, %81 : vector<16x32xf32>
    %c0_90 = arith.constant 0 : index
    %c0_91 = arith.constant 0 : index
    %c0_92 = arith.constant 0 : index
    %286 = vector.load %arg20[%c0_90, %c0_91, %c0_92] : memref<2x1x32xf32, #tpu.memory_space<vmem>>, vector<1x1x32xf32>
    %287 = vector.shape_cast %286 : vector<1x1x32xf32> to vector<1x32xf32>
    %c0_93 = arith.constant 0 : index
    %c0_94 = arith.constant 0 : index
    %c0_95 = arith.constant 0 : index
    %288 = vector.load %arg21[%c0_93, %c0_94, %c0_95] : memref<2x1x32xf32, #tpu.memory_space<vmem>>, vector<1x1x32xf32>
    %289 = vector.shape_cast %288 : vector<1x1x32xf32> to vector<1x32xf32>
    %cst_96 = arith.constant dense<0.000000e+00> : vector<16xf32>
    %290 = vector.multi_reduction <add>, %285, %cst_96 [1] : vector<16x32xf32> to vector<16xf32>
    %291 = vector.shape_cast %290 : vector<16xf32> to vector<16x1xf32>
    %cst_97 = arith.constant 3.200000e+01 : f32
    %292 = vector.broadcast %cst_97 : f32 to vector<16x1xf32>
    %293 = arith.divf %291, %292 : vector<16x1xf32>
    %294 = vector.broadcast %293 : vector<16x1xf32> to vector<16x32xf32>
    %295 = arith.subf %285, %294 : vector<16x32xf32>
    %296 = arith.mulf %295, %295 : vector<16x32xf32>
    %cst_98 = arith.constant dense<0.000000e+00> : vector<16xf32>
    %297 = vector.multi_reduction <add>, %296, %cst_98 [1] : vector<16x32xf32> to vector<16xf32>
    %298 = vector.shape_cast %297 : vector<16xf32> to vector<16x1xf32>
    %cst_99 = arith.constant 3.200000e+01 : f32
    %299 = vector.broadcast %cst_99 : f32 to vector<16x1xf32>
    %300 = arith.divf %298, %299 : vector<16x1xf32>
    %301 = vector.broadcast %293 : vector<16x1xf32> to vector<16x32xf32>
    %302 = arith.subf %285, %301 : vector<16x32xf32>
    %cst_100 = arith.constant 9.99999974E-6 : f32
    %303 = vector.broadcast %cst_100 : f32 to vector<16x1xf32>
    %304 = arith.addf %300, %303 : vector<16x1xf32>
    %305 = math.rsqrt %304 : vector<16x1xf32>
    %306 = vector.broadcast %305 : vector<16x1xf32> to vector<16x32xf32>
    %307 = arith.mulf %302, %306 : vector<16x32xf32>
    %308 = vector.broadcast %287 : vector<1x32xf32> to vector<16x32xf32>
    %309 = arith.mulf %307, %308 : vector<16x32xf32>
    %310 = vector.broadcast %289 : vector<1x32xf32> to vector<16x32xf32>
    %311 = arith.addf %309, %310 : vector<16x32xf32>
    %312 = arith.truncf %311 : vector<16x32xf32> to vector<16x32xbf16>
    %c0_101 = arith.constant 0 : index
    %c0_102 = arith.constant 0 : index
    %c0_103 = arith.constant 0 : index
    %313 = vector.load %arg22[%c0_101, %c0_102, %c0_103] : memref<2x32x64xbf16, #tpu.memory_space<vmem>>, vector<1x32x64xbf16>
    %314 = vector.shape_cast %313 : vector<1x32x64xbf16> to vector<32x64xbf16>
    %cst_104 = arith.constant dense<0.000000e+00> : vector<16x64xf32>
    %315 = tpu.matmul %312, %314, %cst_104 {dimension_numbers = #tpu.dot_dimension_numbers<[1], [0], [0], [1], [0, 0, 1, 1], [], []>} : vector<16x32xbf16>, vector<32x64xbf16>, vector<16x64xf32> -> vector<16x64xf32>
    %316 = vector.extract_strided_slice %315 {offsets = [0, 0], sizes = [16, 32], strides = [1, 1]} : vector<16x64xf32> to vector<16x32xf32>
    %317 = vector.extract_strided_slice %315 {offsets = [0, 32], sizes = [16, 32], strides = [1, 1]} : vector<16x64xf32> to vector<16x32xf32>
    %cst_105 = arith.constant 5.000000e-01 : f32
    %318 = vector.broadcast %cst_105 : f32 to vector<16x32xf32>
    %319 = arith.mulf %318, %317 : vector<16x32xf32>
    %cst_106 = arith.constant 4.471500e-02 : f32
    %320 = vector.broadcast %cst_106 : f32 to vector<16x32xf32>
    %321 = arith.mulf %320, %317 : vector<16x32xf32>
    %322 = arith.mulf %321, %317 : vector<16x32xf32>
    %323 = arith.mulf %322, %317 : vector<16x32xf32>
    %324 = arith.addf %317, %323 : vector<16x32xf32>
    %cst_107 = arith.constant 0.797884583 : f32
    %325 = vector.broadcast %cst_107 : f32 to vector<16x32xf32>
    %326 = arith.mulf %325, %324 : vector<16x32xf32>
    %327 = math.tanh %326 : vector<16x32xf32>
    %cst_108 = arith.constant 1.000000e+00 : f32
    %328 = vector.broadcast %cst_108 : f32 to vector<16x32xf32>
    %329 = arith.addf %328, %327 : vector<16x32xf32>
    %330 = arith.mulf %319, %329 : vector<16x32xf32>
    %331 = arith.mulf %316, %330 : vector<16x32xf32>
    %332 = arith.truncf %331 : vector<16x32xf32> to vector<16x32xbf16>
    %c0_109 = arith.constant 0 : index
    %c0_110 = arith.constant 0 : index
    %c0_111 = arith.constant 0 : index
    %333 = vector.load %arg23[%c0_109, %c0_110, %c0_111] : memref<2x32x32xbf16, #tpu.memory_space<vmem>>, vector<1x32x32xbf16>
    %334 = vector.shape_cast %333 : vector<1x32x32xbf16> to vector<32x32xbf16>
    %cst_112 = arith.constant dense<0.000000e+00> : vector<16x32xf32>
    %335 = tpu.matmul %332, %334, %cst_112 {dimension_numbers = #tpu.dot_dimension_numbers<[1], [0], [0], [1], [0, 0, 1, 1], [], []>} : vector<16x32xbf16>, vector<32x32xbf16>, vector<16x32xf32> -> vector<16x32xf32>
    %336 = arith.addf %335, %311 : vector<16x32xf32>
    %c1_113 = arith.constant 1 : index
    %c0_114 = arith.constant 0 : index
    %c0_115 = arith.constant 0 : index
    %337 = vector.load %arg13[%c1_113, %c0_114, %c0_115] : memref<2x1x32xf32, #tpu.memory_space<vmem>>, vector<1x1x32xf32>
    %338 = vector.shape_cast %337 : vector<1x1x32xf32> to vector<1x32xf32>
    %c1_116 = arith.constant 1 : index
    %c0_117 = arith.constant 0 : index
    %c0_118 = arith.constant 0 : index
    %339 = vector.load %arg14[%c1_116, %c0_117, %c0_118] : memref<2x1x32xf32, #tpu.memory_space<vmem>>, vector<1x1x32xf32>
    %340 = vector.shape_cast %339 : vector<1x1x32xf32> to vector<1x32xf32>
    %cst_119 = arith.constant dense<0.000000e+00> : vector<16xf32>
    %341 = vector.multi_reduction <add>, %336, %cst_119 [1] : vector<16x32xf32> to vector<16xf32>
    %342 = vector.shape_cast %341 : vector<16xf32> to vector<16x1xf32>
    %cst_120 = arith.constant 3.200000e+01 : f32
    %343 = vector.broadcast %cst_120 : f32 to vector<16x1xf32>
    %344 = arith.divf %342, %343 : vector<16x1xf32>
    %345 = vector.broadcast %344 : vector<16x1xf32> to vector<16x32xf32>
    %346 = arith.subf %336, %345 : vector<16x32xf32>
    %347 = arith.mulf %346, %346 : vector<16x32xf32>
    %cst_121 = arith.constant dense<0.000000e+00> : vector<16xf32>
    %348 = vector.multi_reduction <add>, %347, %cst_121 [1] : vector<16x32xf32> to vector<16xf32>
    %349 = vector.shape_cast %348 : vector<16xf32> to vector<16x1xf32>
    %cst_122 = arith.constant 3.200000e+01 : f32
    %350 = vector.broadcast %cst_122 : f32 to vector<16x1xf32>
    %351 = arith.divf %349, %350 : vector<16x1xf32>
    %352 = vector.broadcast %344 : vector<16x1xf32> to vector<16x32xf32>
    %353 = arith.subf %336, %352 : vector<16x32xf32>
    %cst_123 = arith.constant 9.99999974E-6 : f32
    %354 = vector.broadcast %cst_123 : f32 to vector<16x1xf32>
    %355 = arith.addf %351, %354 : vector<16x1xf32>
    %356 = math.rsqrt %355 : vector<16x1xf32>
    %357 = vector.broadcast %356 : vector<16x1xf32> to vector<16x32xf32>
    %358 = arith.mulf %353, %357 : vector<16x32xf32>
    %359 = vector.broadcast %338 : vector<1x32xf32> to vector<16x32xf32>
    %360 = arith.mulf %358, %359 : vector<16x32xf32>
    %361 = vector.broadcast %340 : vector<1x32xf32> to vector<16x32xf32>
    %362 = arith.addf %360, %361 : vector<16x32xf32>
    %363 = arith.truncf %362 : vector<16x32xf32> to vector<16x32xbf16>
    %c1_124 = arith.constant 1 : index
    %c0_125 = arith.constant 0 : index
    %c0_126 = arith.constant 0 : index
    %364 = vector.load %arg15[%c1_124, %c0_125, %c0_126] : memref<2x32x64xbf16, #tpu.memory_space<vmem>>, vector<1x32x64xbf16>
    %365 = vector.shape_cast %364 : vector<1x32x64xbf16> to vector<32x64xbf16>
    %cst_127 = arith.constant dense<0.000000e+00> : vector<16x64xf32>
    %366 = tpu.matmul %363, %365, %cst_127 {dimension_numbers = #tpu.dot_dimension_numbers<[1], [0], [0], [1], [0, 0, 1, 1], [], []>} : vector<16x32xbf16>, vector<32x64xbf16>, vector<16x64xf32> -> vector<16x64xf32>
    %367 = vector.extract_strided_slice %366 {offsets = [0, 0], sizes = [16, 32], strides = [1, 1]} : vector<16x64xf32> to vector<16x32xf32>
    %368 = vector.extract_strided_slice %366 {offsets = [0, 32], sizes = [16, 32], strides = [1, 1]} : vector<16x64xf32> to vector<16x32xf32>
    %c1_128 = arith.constant 1 : index
    %c0_129 = arith.constant 0 : index
    %c0_130 = arith.constant 0 : index
    %369 = vector.load %arg16[%c1_128, %c0_129, %c0_130] : memref<2x1x32xf32, #tpu.memory_space<vmem>>, vector<1x1x32xf32>
    %370 = vector.shape_cast %369 : vector<1x1x32xf32> to vector<1x32xf32>
    %c1_131 = arith.constant 1 : index
    %c0_132 = arith.constant 0 : index
    %c0_133 = arith.constant 0 : index
    %371 = vector.load %arg17[%c1_131, %c0_132, %c0_133] : memref<2x1x32xf32, #tpu.memory_space<vmem>>, vector<1x1x32xf32>
    %372 = vector.shape_cast %371 : vector<1x1x32xf32> to vector<1x32xf32>
    %cst_134 = arith.constant 0.000000e+00 : f32
    %373 = vector.broadcast %cst_134 : f32 to vector<1x32xf32>
    %cst_135 = arith.constant 0.000000e+00 : f32
    %374 = vector.broadcast %cst_135 : f32 to vector<1x32xf32>
    %375 = arith.mulf %370, %373 : vector<1x32xf32>
    %376 = arith.mulf %372, %374 : vector<1x32xf32>
    %377 = arith.subf %375, %376 : vector<1x32xf32>
    %378 = vector.extract_strided_slice %367 {offsets = [0, 0], sizes = [1, 32], strides = [1, 1]} : vector<16x32xf32> to vector<1x32xf32>
    %379 = arith.addf %377, %378 : vector<1x32xf32>
    %380 = arith.mulf %370, %374 : vector<1x32xf32>
    %381 = arith.mulf %372, %373 : vector<1x32xf32>
    %382 = arith.addf %380, %381 : vector<1x32xf32>
    %383 = vector.extract_strided_slice %368 {offsets = [0, 0], sizes = [1, 32], strides = [1, 1]} : vector<16x32xf32> to vector<1x32xf32>
    %384 = arith.addf %382, %383 : vector<1x32xf32>
    %385 = arith.mulf %370, %379 : vector<1x32xf32>
    %386 = arith.mulf %372, %384 : vector<1x32xf32>
    %387 = arith.subf %385, %386 : vector<1x32xf32>
    %388 = vector.extract_strided_slice %367 {offsets = [1, 0], sizes = [1, 32], strides = [1, 1]} : vector<16x32xf32> to vector<1x32xf32>
    %389 = arith.addf %387, %388 : vector<1x32xf32>
    %390 = arith.mulf %370, %384 : vector<1x32xf32>
    %391 = arith.mulf %372, %379 : vector<1x32xf32>
    %392 = arith.addf %390, %391 : vector<1x32xf32>
    %393 = vector.extract_strided_slice %368 {offsets = [1, 0], sizes = [1, 32], strides = [1, 1]} : vector<16x32xf32> to vector<1x32xf32>
    %394 = arith.addf %392, %393 : vector<1x32xf32>
    %395 = arith.mulf %370, %389 : vector<1x32xf32>
    %396 = arith.mulf %372, %394 : vector<1x32xf32>
    %397 = arith.subf %395, %396 : vector<1x32xf32>
    %398 = vector.extract_strided_slice %367 {offsets = [2, 0], sizes = [1, 32], strides = [1, 1]} : vector<16x32xf32> to vector<1x32xf32>
    %399 = arith.addf %397, %398 : vector<1x32xf32>
    %400 = arith.mulf %370, %394 : vector<1x32xf32>
    %401 = arith.mulf %372, %389 : vector<1x32xf32>
    %402 = arith.addf %400, %401 : vector<1x32xf32>
    %403 = vector.extract_strided_slice %368 {offsets = [2, 0], sizes = [1, 32], strides = [1, 1]} : vector<16x32xf32> to vector<1x32xf32>
    %404 = arith.addf %402, %403 : vector<1x32xf32>
    %405 = arith.mulf %370, %399 : vector<1x32xf32>
    %406 = arith.mulf %372, %404 : vector<1x32xf32>
    %407 = arith.subf %405, %406 : vector<1x32xf32>
    %408 = vector.extract_strided_slice %367 {offsets = [3, 0], sizes = [1, 32], strides = [1, 1]} : vector<16x32xf32> to vector<1x32xf32>
    %409 = arith.addf %407, %408 : vector<1x32xf32>
    %410 = arith.mulf %370, %404 : vector<1x32xf32>
    %411 = arith.mulf %372, %399 : vector<1x32xf32>
    %412 = arith.addf %410, %411 : vector<1x32xf32>
    %413 = vector.extract_strided_slice %368 {offsets = [3, 0], sizes = [1, 32], strides = [1, 1]} : vector<16x32xf32> to vector<1x32xf32>
    %414 = arith.addf %412, %413 : vector<1x32xf32>
    %415 = arith.mulf %370, %409 : vector<1x32xf32>
    %416 = arith.mulf %372, %414 : vector<1x32xf32>
    %417 = arith.subf %415, %416 : vector<1x32xf32>
    %418 = vector.extract_strided_slice %367 {offsets = [4, 0], sizes = [1, 32], strides = [1, 1]} : vector<16x32xf32> to vector<1x32xf32>
    %419 = arith.addf %417, %418 : vector<1x32xf32>
    %420 = arith.mulf %370, %414 : vector<1x32xf32>
    %421 = arith.mulf %372, %409 : vector<1x32xf32>
    %422 = arith.addf %420, %421 : vector<1x32xf32>
    %423 = vector.extract_strided_slice %368 {offsets = [4, 0], sizes = [1, 32], strides = [1, 1]} : vector<16x32xf32> to vector<1x32xf32>
    %424 = arith.addf %422, %423 : vector<1x32xf32>
    %425 = arith.mulf %370, %419 : vector<1x32xf32>
    %426 = arith.mulf %372, %424 : vector<1x32xf32>
    %427 = arith.subf %425, %426 : vector<1x32xf32>
    %428 = vector.extract_strided_slice %367 {offsets = [5, 0], sizes = [1, 32], strides = [1, 1]} : vector<16x32xf32> to vector<1x32xf32>
    %429 = arith.addf %427, %428 : vector<1x32xf32>
    %430 = arith.mulf %370, %424 : vector<1x32xf32>
    %431 = arith.mulf %372, %419 : vector<1x32xf32>
    %432 = arith.addf %430, %431 : vector<1x32xf32>
    %433 = vector.extract_strided_slice %368 {offsets = [5, 0], sizes = [1, 32], strides = [1, 1]} : vector<16x32xf32> to vector<1x32xf32>
    %434 = arith.addf %432, %433 : vector<1x32xf32>
    %435 = arith.mulf %370, %429 : vector<1x32xf32>
    %436 = arith.mulf %372, %434 : vector<1x32xf32>
    %437 = arith.subf %435, %436 : vector<1x32xf32>
    %438 = vector.extract_strided_slice %367 {offsets = [6, 0], sizes = [1, 32], strides = [1, 1]} : vector<16x32xf32> to vector<1x32xf32>
    %439 = arith.addf %437, %438 : vector<1x32xf32>
    %440 = arith.mulf %370, %434 : vector<1x32xf32>
    %441 = arith.mulf %372, %429 : vector<1x32xf32>
    %442 = arith.addf %440, %441 : vector<1x32xf32>
    %443 = vector.extract_strided_slice %368 {offsets = [6, 0], sizes = [1, 32], strides = [1, 1]} : vector<16x32xf32> to vector<1x32xf32>
    %444 = arith.addf %442, %443 : vector<1x32xf32>
    %445 = arith.mulf %370, %439 : vector<1x32xf32>
    %446 = arith.mulf %372, %444 : vector<1x32xf32>
    %447 = arith.subf %445, %446 : vector<1x32xf32>
    %448 = vector.extract_strided_slice %367 {offsets = [7, 0], sizes = [1, 32], strides = [1, 1]} : vector<16x32xf32> to vector<1x32xf32>
    %449 = arith.addf %447, %448 : vector<1x32xf32>
    %450 = arith.mulf %370, %444 : vector<1x32xf32>
    %451 = arith.mulf %372, %439 : vector<1x32xf32>
    %452 = arith.addf %450, %451 : vector<1x32xf32>
    %453 = vector.extract_strided_slice %368 {offsets = [7, 0], sizes = [1, 32], strides = [1, 1]} : vector<16x32xf32> to vector<1x32xf32>
    %454 = arith.addf %452, %453 : vector<1x32xf32>
    %455 = tpu.concatenate %379, %389, %399, %409, %419, %429, %439, %449 in 0 : vector<1x32xf32>, vector<1x32xf32>, vector<1x32xf32>, vector<1x32xf32>, vector<1x32xf32>, vector<1x32xf32>, vector<1x32xf32>, vector<1x32xf32> -> vector<8x32xf32>
    %456 = tpu.concatenate %384, %394, %404, %414, %424, %434, %444, %454 in 0 : vector<1x32xf32>, vector<1x32xf32>, vector<1x32xf32>, vector<1x32xf32>, vector<1x32xf32>, vector<1x32xf32>, vector<1x32xf32>, vector<1x32xf32> -> vector<8x32xf32>
    %457 = tpu.concatenate %455, %456 in 1 : vector<8x32xf32>, vector<8x32xf32> -> vector<8x64xf32>
    %c0_136 = arith.constant 0 : index
    %c0_137 = arith.constant 0 : index
    %458 = vector.load %arg28[%c0_136, %c0_137] : memref<16x64xf32, #tpu.memory_space<vmem>>, vector<8x64xf32>
    tpu.vector_store %arg28[%c0_136, %c0_137], %457 {strides = array<i32>} : memref<16x64xf32, #tpu.memory_space<vmem>>, vector<8x64xf32>,
    %459 = arith.mulf %370, %449 : vector<1x32xf32>
    %460 = arith.mulf %372, %454 : vector<1x32xf32>
    %461 = arith.subf %459, %460 : vector<1x32xf32>
    %462 = vector.extract_strided_slice %367 {offsets = [8, 0], sizes = [1, 32], strides = [1, 1]} : vector<16x32xf32> to vector<1x32xf32>
    %463 = arith.addf %461, %462 : vector<1x32xf32>
    %464 = arith.mulf %370, %454 : vector<1x32xf32>
    %465 = arith.mulf %372, %449 : vector<1x32xf32>
    %466 = arith.addf %464, %465 : vector<1x32xf32>
    %467 = vector.extract_strided_slice %368 {offsets = [8, 0], sizes = [1, 32], strides = [1, 1]} : vector<16x32xf32> to vector<1x32xf32>
    %468 = arith.addf %466, %467 : vector<1x32xf32>
    %469 = arith.mulf %370, %463 : vector<1x32xf32>
    %470 = arith.mulf %372, %468 : vector<1x32xf32>
    %471 = arith.subf %469, %470 : vector<1x32xf32>
    %472 = vector.extract_strided_slice %367 {offsets = [9, 0], sizes = [1, 32], strides = [1, 1]} : vector<16x32xf32> to vector<1x32xf32>
    %473 = arith.addf %471, %472 : vector<1x32xf32>
    %474 = arith.mulf %370, %468 : vector<1x32xf32>
    %475 = arith.mulf %372, %463 : vector<1x32xf32>
    %476 = arith.addf %474, %475 : vector<1x32xf32>
    %477 = vector.extract_strided_slice %368 {offsets = [9, 0], sizes = [1, 32], strides = [1, 1]} : vector<16x32xf32> to vector<1x32xf32>
    %478 = arith.addf %476, %477 : vector<1x32xf32>
    %479 = arith.mulf %370, %473 : vector<1x32xf32>
    %480 = arith.mulf %372, %478 : vector<1x32xf32>
    %481 = arith.subf %479, %480 : vector<1x32xf32>
    %482 = vector.extract_strided_slice %367 {offsets = [10, 0], sizes = [1, 32], strides = [1, 1]} : vector<16x32xf32> to vector<1x32xf32>
    %483 = arith.addf %481, %482 : vector<1x32xf32>
    %484 = arith.mulf %370, %478 : vector<1x32xf32>
    %485 = arith.mulf %372, %473 : vector<1x32xf32>
    %486 = arith.addf %484, %485 : vector<1x32xf32>
    %487 = vector.extract_strided_slice %368 {offsets = [10, 0], sizes = [1, 32], strides = [1, 1]} : vector<16x32xf32> to vector<1x32xf32>
    %488 = arith.addf %486, %487 : vector<1x32xf32>
    %489 = arith.mulf %370, %483 : vector<1x32xf32>
    %490 = arith.mulf %372, %488 : vector<1x32xf32>
    %491 = arith.subf %489, %490 : vector<1x32xf32>
    %492 = vector.extract_strided_slice %367 {offsets = [11, 0], sizes = [1, 32], strides = [1, 1]} : vector<16x32xf32> to vector<1x32xf32>
    %493 = arith.addf %491, %492 : vector<1x32xf32>
    %494 = arith.mulf %370, %488 : vector<1x32xf32>
    %495 = arith.mulf %372, %483 : vector<1x32xf32>
    %496 = arith.addf %494, %495 : vector<1x32xf32>
    %497 = vector.extract_strided_slice %368 {offsets = [11, 0], sizes = [1, 32], strides = [1, 1]} : vector<16x32xf32> to vector<1x32xf32>
    %498 = arith.addf %496, %497 : vector<1x32xf32>
    %499 = arith.mulf %370, %493 : vector<1x32xf32>
    %500 = arith.mulf %372, %498 : vector<1x32xf32>
    %501 = arith.subf %499, %500 : vector<1x32xf32>
    %502 = vector.extract_strided_slice %367 {offsets = [12, 0], sizes = [1, 32], strides = [1, 1]} : vector<16x32xf32> to vector<1x32xf32>
    %503 = arith.addf %501, %502 : vector<1x32xf32>
    %504 = arith.mulf %370, %498 : vector<1x32xf32>
    %505 = arith.mulf %372, %493 : vector<1x32xf32>
    %506 = arith.addf %504, %505 : vector<1x32xf32>
    %507 = vector.extract_strided_slice %368 {offsets = [12, 0], sizes = [1, 32], strides = [1, 1]} : vector<16x32xf32> to vector<1x32xf32>
    %508 = arith.addf %506, %507 : vector<1x32xf32>
    %509 = arith.mulf %370, %503 : vector<1x32xf32>
    %510 = arith.mulf %372, %508 : vector<1x32xf32>
    %511 = arith.subf %509, %510 : vector<1x32xf32>
    %512 = vector.extract_strided_slice %367 {offsets = [13, 0], sizes = [1, 32], strides = [1, 1]} : vector<16x32xf32> to vector<1x32xf32>
    %513 = arith.addf %511, %512 : vector<1x32xf32>
    %514 = arith.mulf %370, %508 : vector<1x32xf32>
    %515 = arith.mulf %372, %503 : vector<1x32xf32>
    %516 = arith.addf %514, %515 : vector<1x32xf32>
    %517 = vector.extract_strided_slice %368 {offsets = [13, 0], sizes = [1, 32], strides = [1, 1]} : vector<16x32xf32> to vector<1x32xf32>
    %518 = arith.addf %516, %517 : vector<1x32xf32>
    %519 = arith.mulf %370, %513 : vector<1x32xf32>
    %520 = arith.mulf %372, %518 : vector<1x32xf32>
    %521 = arith.subf %519, %520 : vector<1x32xf32>
    %522 = vector.extract_strided_slice %367 {offsets = [14, 0], sizes = [1, 32], strides = [1, 1]} : vector<16x32xf32> to vector<1x32xf32>
    %523 = arith.addf %521, %522 : vector<1x32xf32>
    %524 = arith.mulf %370, %518 : vector<1x32xf32>
    %525 = arith.mulf %372, %513 : vector<1x32xf32>
    %526 = arith.addf %524, %525 : vector<1x32xf32>
    %527 = vector.extract_strided_slice %368 {offsets = [14, 0], sizes = [1, 32], strides = [1, 1]} : vector<16x32xf32> to vector<1x32xf32>
    %528 = arith.addf %526, %527 : vector<1x32xf32>
    %529 = arith.mulf %370, %523 : vector<1x32xf32>
    %530 = arith.mulf %372, %528 : vector<1x32xf32>
    %531 = arith.subf %529, %530 : vector<1x32xf32>
    %532 = vector.extract_strided_slice %367 {offsets = [15, 0], sizes = [1, 32], strides = [1, 1]} : vector<16x32xf32> to vector<1x32xf32>
    %533 = arith.addf %531, %532 : vector<1x32xf32>
    %534 = arith.mulf %370, %528 : vector<1x32xf32>
    %535 = arith.mulf %372, %523 : vector<1x32xf32>
    %536 = arith.addf %534, %535 : vector<1x32xf32>
    %537 = vector.extract_strided_slice %368 {offsets = [15, 0], sizes = [1, 32], strides = [1, 1]} : vector<16x32xf32> to vector<1x32xf32>
    %538 = arith.addf %536, %537 : vector<1x32xf32>
    %539 = tpu.concatenate %463, %473, %483, %493, %503, %513, %523, %533 in 0 : vector<1x32xf32>, vector<1x32xf32>, vector<1x32xf32>, vector<1x32xf32>, vector<1x32xf32>, vector<1x32xf32>, vector<1x32xf32>, vector<1x32xf32> -> vector<8x32xf32>
    %540 = tpu.concatenate %468, %478, %488, %498, %508, %518, %528, %538 in 0 : vector<1x32xf32>, vector<1x32xf32>, vector<1x32xf32>, vector<1x32xf32>, vector<1x32xf32>, vector<1x32xf32>, vector<1x32xf32>, vector<1x32xf32> -> vector<8x32xf32>
    %541 = tpu.concatenate %539, %540 in 1 : vector<8x32xf32>, vector<8x32xf32> -> vector<8x64xf32>
    %c8_138 = arith.constant 8 : index
    %c0_139 = arith.constant 0 : index
    %542 = vector.load %arg28[%c8_138, %c0_139] : memref<16x64xf32, #tpu.memory_space<vmem>>, vector<8x64xf32>
    tpu.vector_store %arg28[%c8_138, %c0_139], %541 {strides = array<i32>} : memref<16x64xf32, #tpu.memory_space<vmem>>, vector<8x64xf32>,
    %c0_140 = arith.constant 0 : index
    %c0_141 = arith.constant 0 : index
    %543 = vector.load %arg28[%c0_140, %c0_141] : memref<16x64xf32, #tpu.memory_space<vmem>>, vector<16x64xf32>
    %544 = arith.truncf %543 : vector<16x64xf32> to vector<16x64xbf16>
    %c1_142 = arith.constant 1 : index
    %c0_143 = arith.constant 0 : index
    %c0_144 = arith.constant 0 : index
    %545 = vector.load %arg18[%c1_142, %c0_143, %c0_144] : memref<2x64x32xbf16, #tpu.memory_space<vmem>>, vector<1x64x32xbf16>
    %546 = vector.shape_cast %545 : vector<1x64x32xbf16> to vector<64x32xbf16>
    %cst_145 = arith.constant dense<0.000000e+00> : vector<16x32xf32>
    %547 = tpu.matmul %544, %546, %cst_145 {dimension_numbers = #tpu.dot_dimension_numbers<[1], [0], [0], [1], [0, 0, 1, 1], [], []>} : vector<16x64xbf16>, vector<64x32xbf16>, vector<16x32xf32> -> vector<16x32xf32>
    %c1_146 = arith.constant 1 : index
    %c0_147 = arith.constant 0 : index
    %c0_148 = arith.constant 0 : index
    %548 = vector.load %arg19[%c1_146, %c0_147, %c0_148] : memref<2x1x32xf32, #tpu.memory_space<vmem>>, vector<1x1x32xf32>
    %549 = vector.shape_cast %548 : vector<1x1x32xf32> to vector<1x32xf32>
    %550 = vector.broadcast %549 : vector<1x32xf32> to vector<16x32xf32>
    %551 = arith.mulf %550, %362 : vector<16x32xf32>
    %552 = arith.addf %547, %551 : vector<16x32xf32>
    %cst_149 = arith.constant 5.000000e-01 : f32
    %553 = vector.broadcast %cst_149 : f32 to vector<16x32xf32>
    %554 = arith.mulf %553, %552 : vector<16x32xf32>
    %cst_150 = arith.constant 4.471500e-02 : f32
    %555 = vector.broadcast %cst_150 : f32 to vector<16x32xf32>
    %556 = arith.mulf %555, %552 : vector<16x32xf32>
    %557 = arith.mulf %556, %552 : vector<16x32xf32>
    %558 = arith.mulf %557, %552 : vector<16x32xf32>
    %559 = arith.addf %552, %558 : vector<16x32xf32>
    %cst_151 = arith.constant 0.797884583 : f32
    %560 = vector.broadcast %cst_151 : f32 to vector<16x32xf32>
    %561 = arith.mulf %560, %559 : vector<16x32xf32>
    %562 = math.tanh %561 : vector<16x32xf32>
    %cst_152 = arith.constant 1.000000e+00 : f32
    %563 = vector.broadcast %cst_152 : f32 to vector<16x32xf32>
    %564 = arith.addf %563, %562 : vector<16x32xf32>
    %565 = arith.mulf %554, %564 : vector<16x32xf32>
    %566 = arith.addf %565, %362 : vector<16x32xf32>
    %c1_153 = arith.constant 1 : index
    %c0_154 = arith.constant 0 : index
    %c0_155 = arith.constant 0 : index
    %567 = vector.load %arg20[%c1_153, %c0_154, %c0_155] : memref<2x1x32xf32, #tpu.memory_space<vmem>>, vector<1x1x32xf32>
    %568 = vector.shape_cast %567 : vector<1x1x32xf32> to vector<1x32xf32>
    %c1_156 = arith.constant 1 : index
    %c0_157 = arith.constant 0 : index
    %c0_158 = arith.constant 0 : index
    %569 = vector.load %arg21[%c1_156, %c0_157, %c0_158] : memref<2x1x32xf32, #tpu.memory_space<vmem>>, vector<1x1x32xf32>
    %570 = vector.shape_cast %569 : vector<1x1x32xf32> to vector<1x32xf32>
    %cst_159 = arith.constant dense<0.000000e+00> : vector<16xf32>
    %571 = vector.multi_reduction <add>, %566, %cst_159 [1] : vector<16x32xf32> to vector<16xf32>
    %572 = vector.shape_cast %571 : vector<16xf32> to vector<16x1xf32>
    %cst_160 = arith.constant 3.200000e+01 : f32
    %573 = vector.broadcast %cst_160 : f32 to vector<16x1xf32>
    %574 = arith.divf %572, %573 : vector<16x1xf32>
    %575 = vector.broadcast %574 : vector<16x1xf32> to vector<16x32xf32>
    %576 = arith.subf %566, %575 : vector<16x32xf32>
    %577 = arith.mulf %576, %576 : vector<16x32xf32>
    %cst_161 = arith.constant dense<0.000000e+00> : vector<16xf32>
    %578 = vector.multi_reduction <add>, %577, %cst_161 [1] : vector<16x32xf32> to vector<16xf32>
    %579 = vector.shape_cast %578 : vector<16xf32> to vector<16x1xf32>
    %cst_162 = arith.constant 3.200000e+01 : f32
    %580 = vector.broadcast %cst_162 : f32 to vector<16x1xf32>
    %581 = arith.divf %579, %580 : vector<16x1xf32>
    %582 = vector.broadcast %574 : vector<16x1xf32> to vector<16x32xf32>
    %583 = arith.subf %566, %582 : vector<16x32xf32>
    %cst_163 = arith.constant 9.99999974E-6 : f32
    %584 = vector.broadcast %cst_163 : f32 to vector<16x1xf32>
    %585 = arith.addf %581, %584 : vector<16x1xf32>
    %586 = math.rsqrt %585 : vector<16x1xf32>
    %587 = vector.broadcast %586 : vector<16x1xf32> to vector<16x32xf32>
    %588 = arith.mulf %583, %587 : vector<16x32xf32>
    %589 = vector.broadcast %568 : vector<1x32xf32> to vector<16x32xf32>
    %590 = arith.mulf %588, %589 : vector<16x32xf32>
    %591 = vector.broadcast %570 : vector<1x32xf32> to vector<16x32xf32>
    %592 = arith.addf %590, %591 : vector<16x32xf32>
    %593 = arith.truncf %592 : vector<16x32xf32> to vector<16x32xbf16>
    %c1_164 = arith.constant 1 : index
    %c0_165 = arith.constant 0 : index
    %c0_166 = arith.constant 0 : index
    %594 = vector.load %arg22[%c1_164, %c0_165, %c0_166] : memref<2x32x64xbf16, #tpu.memory_space<vmem>>, vector<1x32x64xbf16>
    %595 = vector.shape_cast %594 : vector<1x32x64xbf16> to vector<32x64xbf16>
    %cst_167 = arith.constant dense<0.000000e+00> : vector<16x64xf32>
    %596 = tpu.matmul %593, %595, %cst_167 {dimension_numbers = #tpu.dot_dimension_numbers<[1], [0], [0], [1], [0, 0, 1, 1], [], []>} : vector<16x32xbf16>, vector<32x64xbf16>, vector<16x64xf32> -> vector<16x64xf32>
    %597 = vector.extract_strided_slice %596 {offsets = [0, 0], sizes = [16, 32], strides = [1, 1]} : vector<16x64xf32> to vector<16x32xf32>
    %598 = vector.extract_strided_slice %596 {offsets = [0, 32], sizes = [16, 32], strides = [1, 1]} : vector<16x64xf32> to vector<16x32xf32>
    %cst_168 = arith.constant 5.000000e-01 : f32
    %599 = vector.broadcast %cst_168 : f32 to vector<16x32xf32>
    %600 = arith.mulf %599, %598 : vector<16x32xf32>
    %cst_169 = arith.constant 4.471500e-02 : f32
    %601 = vector.broadcast %cst_169 : f32 to vector<16x32xf32>
    %602 = arith.mulf %601, %598 : vector<16x32xf32>
    %603 = arith.mulf %602, %598 : vector<16x32xf32>
    %604 = arith.mulf %603, %598 : vector<16x32xf32>
    %605 = arith.addf %598, %604 : vector<16x32xf32>
    %cst_170 = arith.constant 0.797884583 : f32
    %606 = vector.broadcast %cst_170 : f32 to vector<16x32xf32>
    %607 = arith.mulf %606, %605 : vector<16x32xf32>
    %608 = math.tanh %607 : vector<16x32xf32>
    %cst_171 = arith.constant 1.000000e+00 : f32
    %609 = vector.broadcast %cst_171 : f32 to vector<16x32xf32>
    %610 = arith.addf %609, %608 : vector<16x32xf32>
    %611 = arith.mulf %600, %610 : vector<16x32xf32>
    %612 = arith.mulf %597, %611 : vector<16x32xf32>
    %613 = arith.truncf %612 : vector<16x32xf32> to vector<16x32xbf16>
    %c1_172 = arith.constant 1 : index
    %c0_173 = arith.constant 0 : index
    %c0_174 = arith.constant 0 : index
    %614 = vector.load %arg23[%c1_172, %c0_173, %c0_174] : memref<2x32x32xbf16, #tpu.memory_space<vmem>>, vector<1x32x32xbf16>
    %615 = vector.shape_cast %614 : vector<1x32x32xbf16> to vector<32x32xbf16>
    %cst_175 = arith.constant dense<0.000000e+00> : vector<16x32xf32>
    %616 = tpu.matmul %613, %615, %cst_175 {dimension_numbers = #tpu.dot_dimension_numbers<[1], [0], [0], [1], [0, 0, 1, 1], [], []>} : vector<16x32xbf16>, vector<32x32xbf16>, vector<16x32xf32> -> vector<16x32xf32>
    %617 = arith.addf %616, %592 : vector<16x32xf32>
    %618 = arith.truncf %617 : vector<16x32xf32> to vector<16x32xbf16>
    %c0_176 = arith.constant 0 : index
    %c0_177 = arith.constant 0 : index
    %619 = vector.load %arg24[%c0_176, %c0_177] : memref<32x128xbf16, #tpu.memory_space<vmem>>, vector<32x128xbf16>
    %cst_178 = arith.constant dense<0.000000e+00> : vector<16x128xf32>
    %620 = tpu.matmul %618, %619, %cst_178 {dimension_numbers = #tpu.dot_dimension_numbers<[1], [0], [0], [1], [0, 0, 1, 1], [], []>} : vector<16x32xbf16>, vector<32x128xbf16>, vector<16x128xf32> -> vector<16x128xf32>
    %c0_179 = arith.constant 0 : index
    %c0_180 = arith.constant 0 : index
    %621 = vector.load %arg25[%c0_179, %c0_180] : memref<1x128xf32, #tpu.memory_space<vmem>>, vector<1x128xf32>
    %622 = vector.broadcast %621 : vector<1x128xf32> to vector<16x128xf32>
    %623 = arith.addf %620, %622 : vector<16x128xf32>
    %624 = arith.truncf %623 : vector<16x128xf32> to vector<16x128xbf16>
    %c0_181 = arith.constant 0 : index
    %c0_182 = arith.constant 0 : index
    %c0_183 = arith.constant 0 : index
    %625 = vector.load %arg26[%c0_181, %c0_182, %c0_183] : memref<1x16x128xbf16, #tpu.memory_space<vmem>>, vector<1x16x128xbf16>
    %626 = vector.shape_cast %625 : vector<1x16x128xbf16> to vector<16x128xbf16>
    %627 = vector.shape_cast %624 : vector<16x128xbf16> to vector<1x16x128xbf16>
    tpu.vector_store %arg26[%c0_181, %c0_182, %c0_183], %627 {strides = array<i32>} : memref<1x16x128xbf16, #tpu.memory_space<vmem>>, vector<1x16x128xbf16>,
    return
  }
  func.func @transform_0(%arg0: i32) -> (i32, i32, i32) {
    %c0_i32 = arith.constant 0 : i32
    %c0_i32_0 = arith.constant 0 : i32
    %c0_i32_1 = arith.constant 0 : i32
    return %arg0, %c0_i32, %c0_i32_0 : i32, i32, i32
  }
  func.func @transform_1(%arg0: i32) -> (i32, i32) {
    %c0_i32 = arith.constant 0 : i32
    %c0_i32_0 = arith.constant 0 : i32
    %c0_i32_1 = arith.constant 0 : i32
    return %c0_i32, %c0_i32_0 : i32, i32
  }
  func.func @transform_2(%arg0: i32) -> (i32, i32) {
    %c0_i32 = arith.constant 0 : i32
    %c0_i32_0 = arith.constant 0 : i32
    %c0_i32_1 = arith.constant 0 : i32
    return %c0_i32, %c0_i32_0 : i32, i32
  }
  func.func @transform_3(%arg0: i32) -> (i32, i32) {
    %c0_i32 = arith.constant 0 : i32
    %c0_i32_0 = arith.constant 0 : i32
    %c0_i32_1 = arith.constant 0 : i32
    return %c0_i32, %c0_i32_0 : i32, i32
  }
  func.func @transform_4(%arg0: i32) -> (i32, i32) {
    %c0_i32 = arith.constant 0 : i32
    %c0_i32_0 = arith.constant 0 : i32
    %c0_i32_1 = arith.constant 0 : i32
    return %c0_i32, %c0_i32_0 : i32, i32
  }
  func.func @transform_5(%arg0: i32) -> (i32, i32) {
    %c0_i32 = arith.constant 0 : i32
    %c0_i32_0 = arith.constant 0 : i32
    %c0_i32_1 = arith.constant 0 : i32
    return %c0_i32, %c0_i32_0 : i32, i32
  }
  func.func @transform_6(%arg0: i32) -> (i32, i32) {
    %c0_i32 = arith.constant 0 : i32
    %c0_i32_0 = arith.constant 0 : i32
    %c0_i32_1 = arith.constant 0 : i32
    return %c0_i32, %c0_i32_0 : i32, i32
  }
  func.func @transform_7(%arg0: i32) -> (i32, i32) {
    %c0_i32 = arith.constant 0 : i32
    %c0_i32_0 = arith.constant 0 : i32
    %c0_i32_1 = arith.constant 0 : i32
    return %c0_i32, %c0_i32_0 : i32, i32
  }
  func.func @transform_8(%arg0: i32) -> (i32, i32) {
    %c0_i32 = arith.constant 0 : i32
    %c0_i32_0 = arith.constant 0 : i32
    %c0_i32_1 = arith.constant 0 : i32
    return %c0_i32, %c0_i32_0 : i32, i32
  }
  func.func @transform_9(%arg0: i32) -> (i32, i32) {
    %c0_i32 = arith.constant 0 : i32
    %c0_i32_0 = arith.constant 0 : i32
    %c0_i32_1 = arith.constant 0 : i32
    return %c0_i32, %c0_i32_0 : i32, i32
  }
  func.func @transform_10(%arg0: i32) -> (i32, i32) {
    %c0_i32 = arith.constant 0 : i32
    %c0_i32_0 = arith.constant 0 : i32
    %c0_i32_1 = arith.constant 0 : i32
    return %c0_i32, %c0_i32_0 : i32, i32
  }
  func.func @transform_11(%arg0: i32) -> (i32, i32) {
    %c0_i32 = arith.constant 0 : i32
    %c0_i32_0 = arith.constant 0 : i32
    %c0_i32_1 = arith.constant 0 : i32
    return %c0_i32, %c0_i32_0 : i32, i32
  }
  func.func @transform_12(%arg0: i32) -> (i32, i32, i32) {
    %c0_i32 = arith.constant 0 : i32
    %c0_i32_0 = arith.constant 0 : i32
    %c0_i32_1 = arith.constant 0 : i32
    %c0_i32_2 = arith.constant 0 : i32
    return %c0_i32, %c0_i32_0, %c0_i32_1 : i32, i32, i32
  }
  func.func @transform_13(%arg0: i32) -> (i32, i32, i32) {
    %c0_i32 = arith.constant 0 : i32
    %c0_i32_0 = arith.constant 0 : i32
    %c0_i32_1 = arith.constant 0 : i32
    %c0_i32_2 = arith.constant 0 : i32
    return %c0_i32, %c0_i32_0, %c0_i32_1 : i32, i32, i32
  }
  func.func @transform_14(%arg0: i32) -> (i32, i32, i32) {
    %c0_i32 = arith.constant 0 : i32
    %c0_i32_0 = arith.constant 0 : i32
    %c0_i32_1 = arith.constant 0 : i32
    %c0_i32_2 = arith.constant 0 : i32
    return %c0_i32, %c0_i32_0, %c0_i32_1 : i32, i32, i32
  }
  func.func @transform_15(%arg0: i32) -> (i32, i32, i32) {
    %c0_i32 = arith.constant 0 : i32
    %c0_i32_0 = arith.constant 0 : i32
    %c0_i32_1 = arith.constant 0 : i32
    %c0_i32_2 = arith.constant 0 : i32
    return %c0_i32, %c0_i32_0, %c0_i32_1 : i32, i32, i32
  }
  func.func @transform_16(%arg0: i32) -> (i32, i32, i32) {
    %c0_i32 = arith.constant 0 : i32
    %c0_i32_0 = arith.constant 0 : i32
    %c0_i32_1 = arith.constant 0 : i32
    %c0_i32_2 = arith.constant 0 : i32
    return %c0_i32, %c0_i32_0, %c0_i32_1 : i32, i32, i32
  }
  func.func @transform_17(%arg0: i32) -> (i32, i32, i32) {
    %c0_i32 = arith.constant 0 : i32
    %c0_i32_0 = arith.constant 0 : i32
    %c0_i32_1 = arith.constant 0 : i32
    %c0_i32_2 = arith.constant 0 : i32
    return %c0_i32, %c0_i32_0, %c0_i32_1 : i32, i32, i32
  }
  func.func @transform_18(%arg0: i32) -> (i32, i32, i32) {
    %c0_i32 = arith.constant 0 : i32
    %c0_i32_0 = arith.constant 0 : i32
    %c0_i32_1 = arith.constant 0 : i32
    %c0_i32_2 = arith.constant 0 : i32
    return %c0_i32, %c0_i32_0, %c0_i32_1 : i32, i32, i32
  }
  func.func @transform_19(%arg0: i32) -> (i32, i32, i32) {
    %c0_i32 = arith.constant 0 : i32
    %c0_i32_0 = arith.constant 0 : i32
    %c0_i32_1 = arith.constant 0 : i32
    %c0_i32_2 = arith.constant 0 : i32
    return %c0_i32, %c0_i32_0, %c0_i32_1 : i32, i32, i32
  }
  func.func @transform_20(%arg0: i32) -> (i32, i32, i32) {
    %c0_i32 = arith.constant 0 : i32
    %c0_i32_0 = arith.constant 0 : i32
    %c0_i32_1 = arith.constant 0 : i32
    %c0_i32_2 = arith.constant 0 : i32
    return %c0_i32, %c0_i32_0, %c0_i32_1 : i32, i32, i32
  }
  func.func @transform_21(%arg0: i32) -> (i32, i32, i32) {
    %c0_i32 = arith.constant 0 : i32
    %c0_i32_0 = arith.constant 0 : i32
    %c0_i32_1 = arith.constant 0 : i32
    %c0_i32_2 = arith.constant 0 : i32
    return %c0_i32, %c0_i32_0, %c0_i32_1 : i32, i32, i32
  }
  func.func @transform_22(%arg0: i32) -> (i32, i32, i32) {
    %c0_i32 = arith.constant 0 : i32
    %c0_i32_0 = arith.constant 0 : i32
    %c0_i32_1 = arith.constant 0 : i32
    %c0_i32_2 = arith.constant 0 : i32
    return %c0_i32, %c0_i32_0, %c0_i32_1 : i32, i32, i32
  }
  func.func @transform_23(%arg0: i32) -> (i32, i32) {
    %c0_i32 = arith.constant 0 : i32
    %c0_i32_0 = arith.constant 0 : i32
    %c0_i32_1 = arith.constant 0 : i32
    return %c0_i32, %c0_i32_0 : i32, i32
  }
  func.func @transform_24(%arg0: i32) -> (i32, i32) {
    %c0_i32 = arith.constant 0 : i32
    %c0_i32_0 = arith.constant 0 : i32
    %c0_i32_1 = arith.constant 0 : i32
    return %c0_i32, %c0_i32_0 : i32, i32
  }
  func.func @transform_25(%arg0: i32) -> (i32, i32, i32) {
    %c0_i32 = arith.constant 0 : i32
    %c0_i32_0 = arith.constant 0 : i32
    %c0_i32_1 = arith.constant 0 : i32
    return %arg0, %c0_i32, %c0_i32_0 : i32, i32, i32
  }
}

</mosaic_0001>

<bundles_post_ra>
// kernel: cnn_s5_forward.1
= control target key start
LH: loop header
LB: loop body
LE: loop exit
PB: predicated region body
PF: predicated region fallthrough
CT: control target
= control target key end

     0   :  { %s3771_s29 = smov 0   ;;  %s4622_s0 = inlined_call_operand.vmem [shape: f32[2,16,7], index: 0, kind: input, shape index: {}]   ;;  %s4623_s1 = inlined_call_operand.vmem [shape: f32[7,32], index: 1, kind: input, shape index: {}]   ;;  %s4624_s2 = inlined_call_operand.vmem [shape: f32[1,32], index: 2, kind: input, shape index: {}]   ;;  %s4625_s3 = inlined_call_operand.vmem [shape: f32[1,32], index: 3, kind: input, shape index: {}]   ;;  %s4626_s4 = inlined_call_operand.vmem [shape: bf16[160,32], index: 4, kind: input, shape index: {}]   ;;  %s4627_s5 = inlined_call_operand.vmem [shape: f32[1,32], index: 5, kind: input, shape index: {}]   ;;  %s4628_s6 = inlined_call_operand.vmem [shape: f32[1,32], index: 6, kind: input, shape index: {}]   ;;  %s4629_s7 = inlined_call_operand.vmem [shape: bf16[96,32], index: 7, kind: input, shape index: {}]   ;;  %s4630_s8 = inlined_call_operand.vmem [shape: f32[1,32], index: 8, kind: input, shape index: {}]   ;;  %s4631_s9 = inlined_call_operand.vmem [shape: f32[1,32], index: 9, kind: input, shape index: {}]   ;;  %s4632_s10 = inlined_call_operand.vmem [shape: bf16[32,32], index: 10, kind: input, shape index: {}]   ;;  %s4633_s11 = inlined_call_operand.vmem [shape: f32[1,32], index: 11, kind: input, shape index: {}]   ;;  %s4634_s12 = inlined_call_operand.vmem [shape: f32[2,1,32], index: 12, kind: input, shape index: {}]   ;;  %s4635_s13 = inlined_call_operand.vmem [shape: f32[2,1,32], index: 13, kind: input, shape index: {}]   ;;  %s4636_s14 = inlined_call_operand.vmem [shape: bf16[2,32,64], index: 14, kind: input, shape index: {}]   ;;  %s4637_s15 = inlined_call_operand.vmem [shape: f32[2,1,32], index: 15, kind: input, shape index: {}]   ;;  %s4638_s16 = inlined_call_operand.vmem [shape: f32[2,1,32], index: 16, kind: input, shape index: {}]   ;;  %s4639_s17 = inlined_call_operand.vmem [shape: bf16[2,64,32], index: 17, kind: input, shape index: {}]   ;;  %s4640_s18 = inlined_call_operand.vmem [shape: f32[2,1,32], index: 18, kind: input, shape index: {}]   ;;  %s4641_s19 = inlined_call_operand.vmem [shape: f32[2,1,32], index: 19, kind: input, shape index: {}]   ;;  %s4642_s20 = inlined_call_operand.vmem [shape: f32[2,1,32], index: 20, kind: input, shape index: {}]   ;;  %s4643_s21 = inlined_call_operand.vmem [shape: bf16[2,32,64], index: 21, kind: input, shape index: {}]   ;;  %s4644_s22 = inlined_call_operand.vmem [shape: bf16[2,32,32], index: 22, kind: input, shape index: {}]   ;;  %s4645_s23 = inlined_call_operand.vmem [shape: bf16[32,128], index: 23, kind: input, shape index: {}]   ;;  %s4646_s24 = inlined_call_operand.vmem [shape: f32[1,128], index: 24, kind: input, shape index: {}]   ;;  %s4647_s25 = inlined_call_operand.vmem [shape: bf16[2,16,128], index: 25, kind: output, shape index: {}]  }
   0x1   :  { %4650 = sst [smem:[#allocation4_spill]] %s4622_s0 }
   0x2   :  { %4651 = sst [smem:[#allocation5_spill]] %s4623_s1 }
   0x3   :  { %4652 = sst [smem:[#allocation6_spill]] %s4624_s2 }
   0x4   :  { %4653 = sst [smem:[#allocation7_spill]] %s4625_s3 }
   0x5   :  { %4654 = sst [smem:[#allocation8_spill]] %s4626_s4 }
   0x6   :  { %4655 = sst [smem:[#allocation9_spill]] %s4627_s5 }
   0x7   :  { %4656 = sst [smem:[#allocation10_spill]] %s4628_s6 }
   0x8   :  { %4657 = sst [smem:[#allocation11_spill]] %s4629_s7 }
   0x9   :  { %4658 = sst [smem:[#allocation12_spill]] %s4630_s8 }
   0xa   :  { %4659 = sst [smem:[#allocation13_spill]] %s4631_s9 }
   0xb LB: > { %s3239_s2 = sadd.s32 4294967295, %s3632_s29   ;;  %p3243_p0 = scmp.ge.s32.totalorder %s3632_s29, 1  ;;  %s3632_s29 = sphi %s3771_s29, %s35_s29  }
   0xc   : > { %p687_p1 = scmp.lt.s32.totalorder %s3632_s29, 3 }
   0xe   : > { %p688_p2 = pnand %p3243_p0, %p687_p1 }
   0xf   : > { %s4660_s7 = sld [smem:[#allocation5_spill]] (!%p688_p2)  ;;  %p755_p3 = scmp.lt.s32.totalorder (!%p688_p2), %s3239_s2, 1 }
  0x10   : > { %691 = sbr.rel (%p688_p2) target bundleno = 5161 (0x1429), region = 120  ;;  %s4661_s8 = sld [smem:[#allocation4_spill]] (!%p688_p2) }
  0x11   : > { %s4662_s9 = sld [smem:[#allocation8_spill]] (!%p688_p2)  ;;  %s3636_s5 = smov (!%p688_p2), 96  }
  0x12   : > { %s4664_s1 = sld [smem:[#allocation7_spill]] (!%p688_p2)  ;;  %s3637_s0 = smov (!%p688_p2), 32  }
  0x13   : > { %s3638_s6 = smov (!%p688_p2), 64   ;;  %s4667_s28 = sld [smem:[#allocation10_spill]] (!%p688_p2) }
  0x15   : > { %v768_v0 = vld [vmem:[%s4660_s7] sm:$0x7f]  ;;  %vm776_vm0 = vcmask 1046528   ;;  %s4671_s2 = smov (!%p755_p3, %s3239_s2), 1  ;;  %vm769_vm1 = vcmask 56320   ;;  %vm875_vm2 = vcmask 254976  }
  0x16   : > { %3405 = vmatprep.subr.msk.mxu0 %vm776_vm0, %v768_v0  ;;  %s3352_s3 = sshll.u32 %s4671_s2, 4  ;;  %v3634_v3 = vmov 0.0   ;;  %v3635_v5 = vmov 0   ;;  %s4663_s7 = sld [smem:[#allocation6_spill]]  ;;  %vm878_vm3 = vcmask 261120   ;;  %vm917_vm4 = vcmask 523264  }
  0x17   : > { %3406 = vmatpush3.msk.msra.mxu0 %vm776_vm0, %v768_v0  ;;  %s759_s27 = scalar_lea.vmem %s4661_s8, %s3352_s3  ;;  %877 = vst.msk [vmem:[#allocation2 + $0x12] sm:$0x3] %vm875_vm2, %v3634_v3  ;;  %876 = vst.msk [vmem:[#allocation2] sm:$0x3] %vm875_vm2, %v3634_v3  ;;  %v3554_v4 = vld [vmem:[%s4662_s9 + $0x38] sm:$0xff]   ;;  %1008 = vmatprep.subr.bf16.mxu1 %v3635_v5  ;;  %v3555_v6 = vld [vmem:[%s4662_s9 + $0x30] sm:$0xff]  }
  0x18   : > { %v766_v1 = vld [vmem:[%s759_s27] sm:$0xff]  ;;  %v767_v2 = vld [vmem:[%s759_s27 + $0x8] sm:$0xff]  ;;  %3410 = vmatprep.subr.bf16.mxu0 %v3634_v3  ;;  %1009 = vmatpush1.bf16.msra.mxu1 %v3554_v4  ;;  %v3558_v9 = vld [vmem:[%s4662_s9 + $0x18] sm:$0xff]   ;;  %vm920_vm5 = vcmask 785408   ;;  %s4665_s3 = sld [smem:[#allocation11_spill]]  ;;  %vm3639_vm6 = vmmov 0  }
  0x19   : > { %3407 = vmatprep.mubr.msk.f32.mxu0 %vm769_vm1, %v766_v1  ;;  %1010 = vmatprep.subr.bf16.mxu1 %v3635_v5  ;;  %v3556_v7 = vld [vmem:[%s4662_s9 + $0x28] sm:$0xff]   ;;  %v3557_v8 = vld [vmem:[%s4662_s9 + $0x20] sm:$0xff]   ;;  %v3559_v10 = vld [vmem:[%s4662_s9 + $0x10] sm:$0xff]   ;;  %s4666_s8 = sld [smem:[#allocation9_spill]]  ;;  %vm1571_vm7 = vcmask 1040384   ;;  %vm1573_vm8 = vcmask 1041408  }
  0x1a   : > { %3408 = vmatmul.mubr.msk.f32.vlgmr.msra.gmra.mxu0 %vm769_vm1, %v767_v2  ;;  %v3560_v11 = vld [vmem:[%s4662_s9 + $0x8] sm:$0xff]   ;;  %v3561_v12 = vld [vmem:[%s4662_s9] sm:$0xff]   ;;  %vm1575_vm9 = vcmask 1042432   ;;  %vm1577_vm10 = vcmask 1043456   ;;  %vm1579_vm11 = vcmask 1044480   ;;  %vm1581_vm12 = vcmask 1045504  }
  0x1b   : > { %v3252_v15 = vld [vmem:[%s4664_s1] ss:$0 sm:$0xff]  ;;  %v3562_v23 = vld [vmem:[%s4662_s9 + $0x48] sm:$0xff]   ;;  %3422 = vmatprep.mubr.msk.bf16.mxu0 %vm3639_vm6, %v3634_v3  ;;  %s3353_s1 = sshll.u32 %s4671_s2, 3 }
  0x1c   : > { %1011 = vmatpush1.bf16.msra.mxu1 %v3555_v6  ;;  %v3251_v13 = vld [vmem:[%s4663_s7] ss:$0 sm:$0xff]  ;;  %s764_s27 = scalar_lea.vmem %s4647_s25, %s3353_s1 }
  0x1d   : > { %1012 = vmatprep.subr.bf16.mxu1 %v3635_v5  ;;  %v3563_v24 = vld [vmem:[%s4662_s9 + $0x40] sm:$0xff]  }
  0x1e   : > { %v3564_v55 = vld [vmem:[%s4665_s3 + $0x28] sm:$0xff]   ;;  %v3565_v56 = vld [vmem:[%s4665_s3 + $0x20] sm:$0xff]   ;;  %v3566_v57 = vld [vmem:[%s4665_s3 + $0x18] sm:$0xff]  }
  0x1f   : > { %3411 = vmatpush3.bf16.msra.mxu0 %v3564_v55  ;;  %v3567_v58 = vld [vmem:[%s4665_s3 + $0x10] sm:$0xff]   ;;  %v3568_v59 = vld [vmem:[%s4665_s3 + $0x8] sm:$0xff]   ;;  %v3264_v60 = vld [vmem:[%s4666_s8] ss:$0 sm:$0xff] }
  0x20   : > { %1013 = vmatpush1.bf16.msra.mxu1 %v3556_v7  ;;  %3412 = vmatprep.subr.bf16.mxu0 %v3634_v3  ;;  %v3265_v62 = vld [vmem:[%s4667_s28] ss:$0 sm:$0xff]  ;;  %s4668_s28 = sld [smem:[#allocation12_spill]] }
  0x21   : > { %1014 = vmatprep.subr.bf16.mxu1 %v3635_v5 }
  0x23   : > { %3413 = vmatpush3.bf16.msra.mxu0 %v3565_v56 }
  0x24   : > { %1015 = vmatpush1.bf16.msra.mxu1 %v3557_v8  ;;  %3414 = vmatprep.subr.bf16.mxu0 %v3634_v3 }
  0x25   : > { %1016 = vmatprep.subr.bf16.mxu1 %v3635_v5 }
  0x27   : > { %3415 = vmatpush3.bf16.msra.mxu0 %v3566_v57 }
  0x28   : > { %1017 = vmatpush1.bf16.msra.mxu1 %v3558_v9  ;;  %3416 = vmatprep.subr.bf16.mxu0 %v3634_v3  ;;  %v3569_v9 = vld [vmem:[%s4665_s3] sm:$0xff]  }
  0x29   : > { %1018 = vmatprep.subr.bf16.mxu1 %v3635_v5 }
  0x2b   : > { %3417 = vmatpush3.bf16.msra.mxu0 %v3567_v58 }
  0x2c   : > { %1019 = vmatpush1.bf16.msra.mxu1 %v3559_v10  ;;  %3418 = vmatprep.subr.bf16.mxu0 %v3634_v3 }
  0x2d   : > { %1020 = vmatprep.subr.bf16.mxu1 %v3635_v5 }
  0x2f   : > { %3419 = vmatpush3.bf16.msra.mxu0 %v3568_v59 }
  0x30   : > { %1021 = vmatpush1.bf16.msra.mxu1 %v3560_v11  ;;  %3420 = vmatprep.subr.bf16.mxu0 %v3634_v3 }
  0x31   : > { %1022 = vmatprep.subr.bf16.mxu1 %v3635_v5 }
  0x33   : > { %3421 = vmatpush3.bf16.msra.mxu0 %v3569_v9 }
  0x34   : > { %1023 = vmatpush1.bf16.msra.mxu1 %v3561_v12  ;;  %3426 = vmatprep.subr.bf16.mxu0 %v3634_v3 }
  0x35   : > { %1036 = vmatprep.subr.bf16.mxu1 %v3635_v5 }
  0x38   : > { %1037 = vmatpush2.bf16.msra.mxu1 %v3562_v23 }
  0x39   : > { %1038 = vmatprep.subr.bf16.mxu1 %v3635_v5 }
  0x3c   : > { %1039 = vmatpush2.bf16.msra.mxu1 %v3563_v24 }
  0x3d   : > { %3442 = vmatprep.subr.bf16.mxu1 %v3634_v3 }
  0xda   : > { %v3409_v14 = vpop.f32.mrf.mxu0 }
  0xdb   : > { %v863_v16 = vmul.f32 %v3409_v14, %v3251_v13 }
  0xdc   : > { %v846_v17 = vpop.f32.mrf.mxu0 }
  0xdd   : > { %v872_v18 = vadd.f32 %v3252_v15, %v863_v16  ;;  %v862_v19 = vmul.f32 %v3251_v13, %v846_v17 }
  0xdf   : > { %v874_v20 = vmax.f32 %v872_v18, 0.0  ;;  %v871_v21 = vadd.f32 %v3252_v15, %v862_v19 }
  0xe1   : > { %880 = vst.msk [vmem:[#allocation2 + $0xa] sm:$0xff] %vm878_vm3, %v874_v20  ;;  %v873_v22 = vmax.f32 %v871_v21, 0.0 }
  0xe3   : > { %879 = vst.msk [vmem:[#allocation2 + $0x2] sm:$0xff] %vm878_vm3, %v873_v22 }
  0xe8   : > { %v890_v25 = vld [vmem:[#allocation2 + $0xc] sm:$0xff] }
  0xe9   : > { %v888_v26 = vld [vmem:[#allocation2 + $0xb] sm:$0xff] }
  0xea   : > { %v889_v27 = vld [vmem:[#allocation2 + $0x4] sm:$0xff] }
  0xeb   : > { %v887_v28 = vld [vmem:[#allocation2 + $0x3] sm:$0xff]  ;;  %v924_v30 = vpack.c.bf16 %v890_v25, %v889_v27 }
  0xec   : > { %v883_v29 = vld [vmem:[#allocation2 + $0x1] sm:$0xff]  ;;  %v3539_v31 = vpack.i.bf16 %v888_v26, %v887_v28  ;;  %v884_v32 = vld [vmem:[#allocation2 + $0x9] sm:$0xff] }
  0xed   : > { %v3529_v33 = vpack.i.bf16 %v884_v32, %v883_v29  ;;  %3263 = vmatprep.mubr.msk.bf16.mxu1 %vm878_vm3, %v924_v30  ;;  %v885_v34 = vld [vmem:[#allocation2 + $0x2] sm:$0xff]  ;;  %v886_v35 = vld [vmem:[#allocation2 + $0xa] sm:$0xff] }
  0xee   : > { %3540 = vrot.lane.b32.xlu1 %v3539_v31, %s3636_s5  ;;  %v3534_v36 = vpack.i.bf16 %v886_v35, %v885_v34  ;;  %v881_v42 = vld [vmem:[#allocation2] sm:$0xff]  ;;  %v882_v43 = vld [vmem:[#allocation2 + $0x8] sm:$0xff] }
  0xef   : > { %3530 = vrot.lane.b32.xlu0 %v3529_v33, %s3637_s0  ;;  %v3570_v29 = vld [vmem:[%s4632_s10 + $0x8] sm:$0xff]   ;;  %v3571_v30 = vld [vmem:[%s4632_s10] sm:$0xff]  }
  0xf0   : > { %v3273_v31 = vld [vmem:[%s4668_s28] ss:$0 sm:$0xff] }
  0xf3   : > { %3535 = vrot.lane.b32.xlu0 %v3534_v36, %s3638_s6 }
 0x160   : > { %v3541_v40 = vpop.permute.xlu1 %3540 }
 0x161   : > { %v3531_v37 = vpop.permute.xlu0 %3530  ;;  %v3543_v46 = vunpack.i.h.bf16 %v3541_v40  ;;  %v3542_v47 = vunpack.i.l.bf16 %v3541_v40 }
 0x162   : > { %v3533_v38 = vunpack.i.h.bf16 %v3531_v37  ;;  %v3532_v39 = vunpack.i.l.bf16 %v3531_v37 }
 0x164   : > { %v915_v48 = vsel %vm878_vm3, %v881_v42, %v3532_v39  ;;  %v916_v49 = vsel %vm878_vm3, %v882_v43, %v3533_v38 }
 0x165   : > { %v3536_v41 = vpop.permute.xlu0 %3535 }
 0x166   : > { %v3538_v44 = vunpack.i.h.bf16 %v3536_v41  ;;  %v3537_v45 = vunpack.i.l.bf16 %v3536_v41 }
 0x168   : > { %v918_v50 = vsel %vm917_vm4, %v915_v48, %v3537_v45  ;;  %v919_v51 = vsel %vm917_vm4, %v916_v49, %v3538_v44  ;;  %v3275_v44 = vld [vmem:[%s4633_s11] ss:$0 sm:$0xff] }
 0x169   : > { %v921_v52 = vsel %vm920_vm5, %v918_v50, %v3542_v47  ;;  %v922_v53 = vsel %vm920_vm5, %v919_v51, %v3543_v46 }
 0x16a   : > { %v923_v54 = vpack.c.bf16 %v922_v53, %v921_v52 }
 0x16c   : > { %1041 = vmatmul.mubr.bf16.vlgmr.msra.gmra.mxu1 %v923_v54 }
 0x16d   : > { %3450 = vmatprep.mubr.msk.bf16.mxu1 %vm3639_vm6, %v3634_v3 }
 0x22c   : > { %v1042_v61 = vpop.f32.mrf.mxu1 }
 0x22d   : > { %v1056_v63 = vmul.f32 %v3264_v60, %v1042_v61 }
 0x22e   : > { %v1044_v0 = vpop.f32.mrf.mxu1 }
 0x22f   : > { %v1065_v1 = vadd.f32 %v3265_v62, %v1056_v63  ;;  %v3572_v63 = vld [vmem:[%s4636_s14 + $0x8] sm:$0xff]   ;;  %v3573_v0 = vld [vmem:[%s4636_s14] sm:$0xff]  }
 0x230   : > { %v1045_v2 = vpop.f32.mrf.mxu1 }
 0x231   : > { %v1067_v4 = vmax.f32 %v1065_v1, 0.0  ;;  %v1057_v5 = vmul.f32 %v3264_v60, %v1045_v2 }
 0x232   : > { %v1047_v6 = vpop.f32.mrf.mxu1 }
 0x233   : > { %1069 = vst.msk [vmem:[#allocation2 + $0x2] sm:$0xff] %vm878_vm3, %v1067_v4  ;;  %v1066_v7 = vadd.f32 %v3265_v62, %v1057_v5 }
 0x235   : > { %v1068_v8 = vmax.f32 %v1066_v7, 0.0 }
 0x237   : > { %1070 = vst.msk [vmem:[#allocation2 + $0xa] sm:$0xff] %vm878_vm3, %v1068_v8 }
 0x23a   : > { %v1073_v10 = vld [vmem:[#allocation2 + $0x2] sm:$0xff] }
 0x23b   : > { %v1071_v22 = vld [vmem:[#allocation2 + $0x1] sm:$0xff] }
 0x23e   : > { %v1075_v11 = vld [vmem:[#allocation2 + $0x3] sm:$0xff]  ;;  %v1076_v12 = vld [vmem:[#allocation2 + $0xb] sm:$0xff] }
 0x23f   : > { %v1074_v13 = vld [vmem:[#allocation2 + $0xa] sm:$0xff]  ;;  %v3549_v14 = vpack.i.bf16 %v1076_v12, %v1075_v11 }
 0x240   : > { %v3544_v15 = vpack.i.bf16 %v1074_v13, %v1073_v10  ;;  %v1072_v23 = vld [vmem:[#allocation2 + $0x9] sm:$0xff]  ;;  %v3279_v10 = vld [vmem:[%s4634_s12] ss:$0 sm:$0xff] }
 0x241   : > { %3550 = vrot.lane.b32.xlu0 %v3549_v14, %s3638_s6  ;;  %s4669_s6 = sld [smem:[#allocation13_spill]]  ;;  %v3280_v14 = vld [vmem:[%s4635_s13] ss:$0 sm:$0xff] }
 0x242   : > { %3545 = vrot.lane.b32.xlu1 %v3544_v15, %s3637_s0 }
 0x247   : > { %v3274_v34 = vld [vmem:[%s4669_s6] ss:$0 sm:$0xff] }
 0x2b3   : > { %v3551_v16 = vpop.permute.xlu0 %3550 }
 0x2b4   : > { %v3546_v17 = vpop.permute.xlu1 %3545  ;;  %v3553_v18 = vunpack.i.h.bf16 %v3551_v16  ;;  %v3552_v19 = vunpack.i.l.bf16 %v3551_v16 }
 0x2b5   : > { %v3548_v20 = vunpack.i.h.bf16 %v3546_v17  ;;  %v3547_v21 = vunpack.i.l.bf16 %v3546_v17 }
 0x2b7   : > { %v1093_v24 = vsel %vm878_vm3, %v1071_v22, %v3547_v21  ;;  %v1094_v25 = vsel %vm878_vm3, %v1072_v23, %v3548_v20  ;;  %v1395_v21 = vlaneseq }
 0x2b8   : > { %v1095_v26 = vsel %vm917_vm4, %v1093_v24, %v3552_v19  ;;  %v1096_v27 = vsel %vm917_vm4, %v1094_v25, %v3553_v18  ;;  %v3640_v19 = vmov 1966171168  }
 0x2b9   : > { %v1097_v28 = vpack.c.bf16 %v1096_v27, %v1095_v26  ;;  %v1393_v20 = vunpack.c.l.s4 %v3640_v19  ;;  %v3934_v23 = vshrl.u32 %v1395_v21, 7 }
 0x2bb   : > { %3423 = vmatmul.mubr.msk.bf16.vlgmr.msra.gmra.mxu0 %vm920_vm5, %v1097_v28  ;;  %v1394_v22 = vunpack.c.0.s8 %v1393_v20 }
 0x2bc   : > { %3430 = vmatprep.mubr.msk.bf16.mxu0 %vm3639_vm6, %v3634_v3  ;;  %3427 = vmatpush3.bf16.msra.mxu0 %v3570_v29 }
 0x2bd   : > { %3428 = vmatprep.subr.bf16.mxu0 %v3634_v3  ;;  %v3937_v24 = vsub.s32 %v1394_v22, %v3934_v23 }
 0x2c0   : > { %3429 = vmatpush3.bf16.msra.mxu0 %v3571_v30 }
 0x2c1   : > { %3434 = vmatprep.subr.bf16.mxu0 %v3634_v3 }
 0x37b   : > { %v1183_v32 = vpop.f32.mrf.mxu0 }
 0x37c   : > { %v1197_v33 = vmul.f32 %v3273_v31, %v1183_v32 }
 0x37d   : > { %v3424_v35 = vpop.f32.mrf.mxu0 }
 0x37e   : > { %v1206_v37 = vadd.f32 %v3274_v34, %v1197_v33 }
 0x37f   : > { %v1186_v36 = vpop.f32.mrf.mxu0 }
 0x380   : > { %v1198_v38 = vmul.f32 %v3273_v31, %v1186_v36  ;;  %v1208_v41 = vmax.f32 %v1206_v37, 0.0 }
 0x381   : > { %v3425_v39 = vpop.f32.mrf.mxu0 }
 0x382   : > { %v1207_v40 = vadd.f32 %v3274_v34, %v1198_v38 }
 0x384   : > { %v1209_v42 = vmax.f32 %v1207_v40, 0.0 }
 0x386   : > { %v1210_v43 = vpack.c.bf16 %v1209_v42, %v1208_v41 }
 0x388   : > { %3431 = vmatmul.mubr.msk.bf16.vlgmr.msra.gmra.mxu0 %vm878_vm3, %v1210_v43 }
 0x389   : > { %3438 = vmatprep.mubr.msk.bf16.mxu0 %vm3639_vm6, %v3634_v3  ;;  %3435 = vmatpush3.bf16.msra.mxu0 %v3572_v63 }
 0x38a   : > { %3436 = vmatprep.subr.bf16.mxu0 %v3634_v3 }
 0x38d   : > { %3437 = vmatpush3.bf16.msra.mxu0 %v3573_v0 }
 0x38e   : > { %3454 = vmatprep.subr.bf16.mxu0 %v3634_v3 }
 0x448   : > { %v1271_v45 = vpop.f32.mrf.mxu0 }
 0x449   : > { %v1272_v46 = vadd.f32 %v3275_v44, %v1271_v45 }
 0x44a   : > { %v3432_v47 = vpop.f32.mrf.mxu0 }
 0x44b   : > { %v1280_v48 = vsel %vm878_vm3, %v1272_v46, 0.0 }
 0x44c   : > { %1281 = vadd.xlane.f32.xlu1 %v1280_v48  ;;  %v1274_v49 = vpop.f32.mrf.mxu0 }
 0x44d   : > { %v1275_v50 = vadd.f32 %v3275_v44, %v1274_v49 }
 0x44e   : > { %v3433_v51 = vpop.f32.mrf.mxu0 }
 0x44f   : > { %v1283_v52 = vsel %vm878_vm3, %v1275_v50, 0.0 }
 0x450   : > { %1284 = vadd.xlane.f32.xlu0 %v1283_v52 }
 0x4d5   : > { %v1282_v53 = vpop.xlane.xlu1 %1281 }
 0x4d6   : > { %v1287_v54 = vmul.f32 0.03125, %v1282_v53 }
 0x4d8   : > { %v1289_v55 = vsub.f32 %v1272_v46, %v1287_v54 }
 0x4d9   : > { %v1285_v56 = vpop.xlane.xlu0 %1284 }
 0x4da   : > { %v1288_v57 = vmul.f32 0.03125, %v1285_v56  ;;  %v1291_v58 = vmul.f32 %v1289_v55, %v1289_v55  ;;  %v4026_v56 = vld [vmem:[%s4638_s16] sm:$0x1] }
 0x4dc   : > { %v1290_v59 = vsub.f32 %v1275_v50, %v1288_v57  ;;  %v1293_v60 = vsel %vm878_vm3, %v1291_v58, 0.0  ;;  %v1387_v58 = vmul.f32 0.0, %v4026_v56 }
 0x4dd   : > { %1294 = vadd.xlane.f32.xlu0 %v1293_v60 }
 0x4de   : > { %v1292_v61 = vmul.f32 %v1290_v59, %v1290_v59 }
 0x4e0   : > { %v1296_v62 = vsel %vm878_vm3, %v1292_v61, 0.0 }
 0x4e1   : > { %1297 = vadd.xlane.f32.xlu1 %v1296_v62 }
 0x566   : > { %v1295_v1 = vpop.xlane.xlu0 %1294 }
 0x567   : > { %v1299_v2 = vmul.f32 0.03125, %v1295_v1 }
 0x569   : > { %v1301_v4 = vadd.f32 1e-05, %v1299_v2 }
 0x56a   : > { %v1298_v5 = vpop.xlane.xlu1 %1297 }
 0x56b   : > { %3594 = vrsqrt.f32 %v1301_v4  ;;  %v1300_v6 = vmul.f32 0.03125, %v1298_v5 }
 0x56d   : > { %v1302_v7 = vadd.f32 1e-05, %v1300_v6 }
 0x56f   : > { %3596 = vrsqrt.f32 %v1302_v7 }
 0x578   : > { %v3595_v8 = vpop.eup %3594 }
 0x579   : > { %v1305_v9 = vmul.f32 %v3595_v8, %v1289_v55  ;;  %v4021_v55 = vld [vmem:[%s4637_s15] sm:$0x1] }
 0x57a   : > { %v1386_v57 = vmul.f32 0.0, %v4021_v55 }
 0x57b   : > { %v1313_v12 = vmul.f32 %v3279_v10, %v1305_v9 }
 0x57c   : > { %v3597_v11 = vpop.eup %3596  ;;  %v1390_v60 = vadd.f32 %v1387_v58, %v1386_v57 }
 0x57d   : > { %v1306_v13 = vmul.f32 %v3597_v11, %v1290_v59  ;;  %v3925_v16 = vadd.f32 %v3280_v14, %v1313_v12  ;;  %v1388_v59 = vsub.f32 %v1386_v57, %v1387_v58 }
 0x57f   : > { %v1314_v15 = vmul.f32 %v3279_v10, %v1306_v13  ;;  %v4041_v10 = vsub.s32 0, %v3934_v23 }
 0x581   : > { %v3927_v17 = vadd.f32 %v3280_v14, %v1314_v15 }
 0x583   : > { %v1323_v18 = vpack.c.bf16 %v3927_v17, %v3925_v16 }
 0x585   : > { %3439 = vmatmul.mubr.msk.bf16.vlgmr.msra.gmra.mxu0 %vm878_vm3, %v1323_v18 }
 0x586   : > { %3458 = vmatprep.mubr.msk.bf16.mxu0 %vm3639_vm6, %v3634_v3 }
 0x645   : > { %v1377_v25 = vpop.f32.mrf.mxu0 }
 0x646   : > { %v1398_v26 = vrot.slane %v1377_v25, %v3937_v24  ;;  %v1459_v27 = vcombine.high %v1377_v25, %v1377_v25  ;;  %v1389_v61 = vadd.f32 %v1388_v59, %v1377_v25 }
 0x647   : > { %v3440_v28 = vpop.f32.mrf.mxu0 }
 0x648   : > { %v1413_v29 = vcombine.high %v1398_v26, %v1398_v26  ;;  %v1466_v30 = vrot.slane %v1459_v27, %v3937_v24  ;;  %v1405_v31 = vrot.slane %v1398_v26, %v3937_v24  ;;  %v1410_v0 = vmul.f32 %v1389_v61, %v4021_v55 }
 0x649   : > { %v3942_v32 = vpop.f32.mrf.mxu0  ;;  %v1424_v4 = vmul.f32 %v1389_v61, %v4026_v56 }
 0x64a   : > { %1406 = vrot.lane.b32.xlu0 %v1405_v31, %s3636_s5  ;;  %v1420_v33 = vrot.slane %v1413_v29, %v3937_v24  ;;  %v1486_v36 = vcombine.high %v1466_v30, %v1466_v30  ;;  %v1433_v37 = vcombine.high %v1405_v31, %v1405_v31  ;;  %v1653_v38 = vrot.slane %v3942_v32, %v3937_v24 }
 0x64b   : > { %v3441_v34 = vpop.f32.mrf.mxu0  ;;  %v3960_v40 = vrot.slane %v1466_v30, %v3937_v24  ;;  %v1714_v42 = vcombine.high %v3942_v32, %v3942_v32 }
 0x64c   : > { %1426 = vrot.lane.b32.xlu1 %v1420_v33, %s3636_s5  ;;  %v3947_v35 = vcombine.high %v1420_v33, %v1420_v33  ;;  %v3955_v39 = vrot.slane %v1486_v36, %v3937_v24  ;;  %v1668_v41 = vcombine.high %v1653_v38, %v1653_v38  ;;  %v1660_v47 = vrot.slane %v1653_v38, %v3937_v24 }
 0x64d   : > { %v3974_v44 = vcombine.high %v3960_v40, %v3960_v40  ;;  %v1721_v45 = vrot.slane %v1714_v42, %v3937_v24 }
 0x64e   : > { %1452 = vrot.lane.b32.xlu0 %v3947_v35, %s3636_s5  ;;  %v3968_v43 = vcombine.high %v3955_v39, %v3955_v39  ;;  %v3980_v46 = vrot.slane %v1668_v41, %v3937_v24  ;;  %v3992_v50 = vcombine.high %v1660_v47, %v1660_v47 }
 0x64f   : > { %v1741_v49 = vcombine.high %v1721_v45, %v1721_v45  ;;  %v4002_v52 = vrot.slane %v1721_v45, %v3937_v24 }
 0x650   : > { %1439 = vrot.lane.b32.xlu1 %v1433_v37, %s3636_s5  ;;  %v3988_v48 = vcombine.high %v3980_v46, %v3980_v46 }
 0x651   : > { %v3997_v51 = vrot.slane %v1741_v49, %v3937_v24  ;;  %v4014_v54 = vcombine.high %v4002_v52, %v4002_v52 }
 0x652   : > { %1499 = vrot.lane.b32.xlu0 %v3955_v39, %s3636_s5 }
 0x653   : > { %v4008_v53 = vcombine.high %v3997_v51, %v3997_v51 }
 0x654   : > { %1479 = vrot.lane.b32.xlu1 %v3960_v40, %s3636_s5 }
 0x656   : > { %1525 = vrot.lane.b32.xlu0 %v3968_v43, %s3636_s5 }
 0x658   : > { %1512 = vrot.lane.b32.xlu1 %v3974_v44, %s3636_s5 }
 0x65a   : > { %1681 = vrot.lane.b32.xlu0 %v3980_v46, %s3636_s5 }
 0x65c   : > { %1661 = vrot.lane.b32.xlu1 %v1660_v47, %s3636_s5 }
 0x65e   : > { %1707 = vrot.lane.b32.xlu0 %v3988_v48, %s3636_s5 }
 0x660   : > { %1694 = vrot.lane.b32.xlu1 %v3992_v50, %s3636_s5 }
 0x662   : > { %1754 = vrot.lane.b32.xlu0 %v3997_v51, %s3636_s5 }
 0x664   : > { %1734 = vrot.lane.b32.xlu1 %v4002_v52, %s3636_s5 }
 0x666   : > { %1780 = vrot.lane.b32.xlu0 %v4008_v53, %s3636_s5 }
 0x668   : > { %1767 = vrot.lane.b32.xlu1 %v4014_v54, %s3636_s5 }
 0x6bc   : > { %v1407_v62 = vpop.permute.xlu0 %1406 }
 0x6bd   : > { %v4030_v63 = vadd.f32 %v1407_v62, %v1390_v60 }
 0x6be   : > { %v1427_v7 = vpop.permute.xlu1 %1426 }
 0x6bf   : > { %v1411_v1 = vmul.f32 %v4030_v63, %v4026_v56  ;;  %v1423_v2 = vmul.f32 %v4030_v63, %v4021_v55 }
 0x6c0   : > { %v1453_v34 = vpop.permute.xlu0 %1452 }
 0x6c1   : > { %v1412_v5 = vsub.f32 %v1410_v0, %v1411_v1  ;;  %v1425_v6 = vadd.f32 %v1424_v4, %v1423_v2 }
 0x6c2   : > { %v1440_v21 = vpop.permute.xlu1 %1439 }
 0x6c3   : > { %v1422_v8 = vadd.f32 %v1420_v33, %v1412_v5  ;;  %v4038_v9 = vadd.f32 %v1427_v7, %v1425_v6 }
 0x6c4   : > { %v1500_v6 = vpop.permute.xlu0 %1499 }
 0x6c5   : > { %v1430_v11 = vmul.f32 %v1422_v8, %v4021_v55  ;;  %v1431_v12 = vmul.f32 %v4038_v9, %v4026_v56  ;;  %v1436_v13 = vmul.f32 %v4038_v9, %v4021_v55  ;;  %v1437_v14 = vmul.f32 %v1422_v8, %v4026_v56 }
 0x6c6   : > { %v1533_v18 = vrot.slane %v1422_v8, %v4041_v10  ;;  %v1480_v58 = vpop.permute.xlu1 %1479 }
 0x6c7   : > { %v1432_v15 = vsub.f32 %v1430_v11, %v1431_v12  ;;  %v1438_v19 = vadd.f32 %v1437_v14, %v1436_v13 }
 0x6c8   : > { %v1572_v29 = vsel %vm1571_vm7, %v1389_v61, %v1533_v18 }
 0x6c9   : > { %v1435_v20 = vadd.f32 %v1433_v37, %v1432_v15  ;;  %v4050_v22 = vadd.f32 %v1440_v21, %v1438_v19 }
 0x6cb   : > { %v1539_v23 = vrot.slane %v1435_v20, %v4041_v10  ;;  %v1443_v25 = vmul.f32 %v1435_v20, %v4021_v55  ;;  %v1450_v26 = vmul.f32 %v1435_v20, %v4026_v56  ;;  %v1444_v27 = vmul.f32 %v4050_v22, %v4026_v56  ;;  %v1513_v20 = vpop.permute.xlu1 %1512 }
 0x6cc   : > { %v1449_v28 = vmul.f32 %v4050_v22, %v4021_v55 }
 0x6cd   : > { %v1574_v30 = vsel %vm1573_vm8, %v1572_v29, %v1539_v23  ;;  %v1445_v31 = vsub.f32 %v1443_v25, %v1444_v27  ;;  %v1594_v27 = vrot.slane %v4050_v22, %v4041_v10 }
 0x6ce   : > { %v1451_v33 = vadd.f32 %v1450_v26, %v1449_v28  ;;  %v3574_v26 = vld [vmem:[%s4639_s17 + $0x18] sm:$0xff]  }
 0x6cf   : > { %v1448_v36 = vadd.f32 %v3947_v35, %v1445_v31  ;;  %3443 = vmatpush3.bf16.msra.mxu1 %v3574_v26 }
 0x6d0   : > { %v1455_v37 = vadd.f32 %v1453_v34, %v1451_v33  ;;  %3444 = vmatprep.subr.bf16.mxu1 %v3634_v3 }
 0x6d1   : > { %v1456_v38 = vmul.f32 %v1448_v36, %v4021_v55  ;;  %v1477_v45 = vmul.f32 %v1448_v36, %v4026_v56  ;;  %v1545_v47 = vrot.slane %v1448_v36, %v4041_v10 }
 0x6d2   : > { %v1457_v41 = vmul.f32 %v1455_v37, %v4026_v56  ;;  %v1476_v42 = vmul.f32 %v1455_v37, %v4021_v55  ;;  %v1600_v28 = vrot.slane %v1455_v37, %v4041_v10 }
 0x6d3   : > { %v1576_v59 = vsel %vm1575_vm9, %v1574_v30, %v1545_v47 }
 0x6d4   : > { %v1458_v49 = vsub.f32 %v1456_v38, %v1457_v41  ;;  %v1478_v57 = vadd.f32 %v1477_v45, %v1476_v42  ;;  %v1526_v38 = vpop.permute.xlu0 %1525 }
 0x6d6   : > { %v1475_v60 = vadd.f32 %v3960_v40, %v1458_v49  ;;  %v1482_v35 = vadd.f32 %v1480_v58, %v1478_v57 }
 0x6d8   : > { %v1483_v61 = vmul.f32 %v1475_v60, %v4021_v55  ;;  %v1484_v62 = vmul.f32 %v1482_v35, %v4026_v56  ;;  %v1496_v0 = vmul.f32 %v1482_v35, %v4021_v55  ;;  %v1497_v1 = vmul.f32 %v1475_v60, %v4026_v56 }
 0x6d9   : > { %v1551_v2 = vrot.slane %v1475_v60, %v4041_v10 }
 0x6da   : > { %v1485_v4 = vsub.f32 %v1483_v61, %v1484_v62  ;;  %v1498_v5 = vadd.f32 %v1497_v1, %v1496_v0 }
 0x6db   : > { %v1578_v7 = vsel %vm1577_vm10, %v1576_v59, %v1551_v2 }
 0x6dc   : > { %v1495_v8 = vadd.f32 %v3955_v39, %v1485_v4  ;;  %v1502_v40 = vadd.f32 %v1500_v6, %v1498_v5  ;;  %v1588_v39 = vrot.slane %v4038_v9, %v4041_v10  ;;  %v1662_v4 = vpop.permute.xlu1 %1661 }
 0x6de   : > { %v1503_v11 = vmul.f32 %v1495_v8, %v4021_v55  ;;  %v1504_v12 = vmul.f32 %v1502_v40, %v4026_v56  ;;  %v1509_v13 = vmul.f32 %v1502_v40, %v4021_v55  ;;  %v1510_v14 = vmul.f32 %v1495_v8, %v4026_v56 }
 0x6df   : > { %v1557_v15 = vrot.slane %v1495_v8, %v4041_v10  ;;  %v1626_v22 = vsel %vm1571_vm7, %v4030_v63, %v1588_v39  ;;  %v1612_v41 = vrot.slane %v1502_v40, %v4041_v10 }
 0x6e0   : > { %v1505_v18 = vsub.f32 %v1503_v11, %v1504_v12  ;;  %v1511_v19 = vadd.f32 %v1510_v14, %v1509_v13  ;;  %v1627_v37 = vsel %vm1573_vm8, %v1626_v22, %v1594_v27 }
 0x6e1   : > { %v1580_v21 = vsel %vm1579_vm11, %v1578_v7, %v1557_v15  ;;  %v1628_v57 = vsel %vm1575_vm9, %v1627_v37, %v1600_v28 }
 0x6e2   : > { %v1508_v23 = vadd.f32 %v3974_v44, %v1505_v18  ;;  %v1515_v25 = vadd.f32 %v1513_v20, %v1511_v19  ;;  %v1606_v44 = vrot.slane %v1482_v35, %v4041_v10  ;;  %v1682_v18 = vpop.permute.xlu0 %1681 }
 0x6e4   : > { %v1516_v29 = vmul.f32 %v1508_v23, %v4021_v55  ;;  %v1517_v30 = vmul.f32 %v1515_v25, %v4026_v56  ;;  %v1522_v31 = vmul.f32 %v1515_v25, %v4021_v55  ;;  %v1523_v9 = vmul.f32 %v1508_v23, %v4026_v56 }
 0x6e5   : > { %v1563_v33 = vrot.slane %v1508_v23, %v4041_v10  ;;  %v1618_v45 = vrot.slane %v1515_v25, %v4041_v10  ;;  %v1629_v58 = vsel %vm1577_vm10, %v1628_v57, %v1606_v44 }
 0x6e6   : > { %v1518_v34 = vsub.f32 %v1516_v29, %v1517_v30  ;;  %v1524_v36 = vadd.f32 %v1523_v9, %v1522_v31  ;;  %v1630_v62 = vsel %vm1579_vm11, %v1629_v58, %v1612_v41  ;;  %v1695_v29 = vpop.permute.xlu1 %1694 }
 0x6e7   : > { %v1582_v42 = vsel %vm1581_vm12, %v1580_v21, %v1563_v33  ;;  %v1631_v2 = vsel %vm1581_vm12, %v1630_v62, %v1618_v45 }
 0x6e8   : > { %v1521_v47 = vadd.f32 %v3968_v43, %v1518_v34  ;;  %v1528_v49 = vadd.f32 %v1526_v38, %v1524_v36  ;;  %v1708_v38 = vpop.permute.xlu0 %1707 }
 0x6ea   : > { %v1639_v63 = vmul.f32 %v1521_v47, %v4021_v55  ;;  %v1640_v59 = vmul.f32 %v1528_v49, %v4026_v56  ;;  %v1643_v60 = vmul.f32 %v1528_v49, %v4021_v55  ;;  %v1644_v35 = vmul.f32 %v1521_v47, %v4026_v56 }
 0x6eb   : > { %v1624_v61 = vrot.slane %v1528_v49, %v4041_v10  ;;  %v1569_v0 = vrot.slane %v1521_v47, %v4041_v10 }
 0x6ec   : > { %v1641_v43 = vsub.f32 %v1639_v63, %v1640_v59  ;;  %v1645_v1 = vadd.f32 %v1644_v35, %v1643_v60  ;;  %v1735_v59 = vpop.permute.xlu1 %1734 }
 0x6ed   : > { %v1632_v5 = vsel %vm776_vm0, %v1631_v2, %v1624_v61  ;;  %v4117_v6 = vsel %vm776_vm0, %v1582_v42, %v1569_v0 }
 0x6ee   : > { %v1642_v7 = vadd.f32 %v1641_v43, %v3942_v32  ;;  %v4120_v8 = vadd.f32 %v1662_v4, %v1645_v1  ;;  %1634 = vrot.lane.b32.xlu1 %v1632_v5, %s3637_s0  ;;  %v1755_v5 = vpop.permute.xlu0 %1754 }
 0x6f0   : > { %v1665_v40 = vmul.f32 %v1642_v7, %v4021_v55  ;;  %v1666_v11 = vmul.f32 %v4120_v8, %v4026_v56  ;;  %v1678_v12 = vmul.f32 %v4120_v8, %v4021_v55  ;;  %v1679_v13 = vmul.f32 %v1642_v7, %v4026_v56 }
 0x6f2   : > { %v1667_v14 = vsub.f32 %v1665_v40, %v1666_v11  ;;  %v1680_v15 = vadd.f32 %v1679_v13, %v1678_v12 }
 0x6f4   : > { %v4129_v19 = vadd.f32 %v1682_v18, %v1680_v15  ;;  %v1677_v32 = vadd.f32 %v3980_v46, %v1667_v14  ;;  %v3575_v18 = vld [vmem:[%s4639_s17 + $0x10] sm:$0xff]  }
 0x6f5   : > { %3445 = vmatpush3.bf16.msra.mxu1 %v3575_v18 }
 0x6f6   : > { %v1686_v20 = vmul.f32 %v4129_v19, %v4026_v56  ;;  %v1685_v21 = vmul.f32 %v1677_v32, %v4021_v55  ;;  %v1691_v39 = vmul.f32 %v4129_v19, %v4021_v55  ;;  %v1692_v23 = vmul.f32 %v1677_v32, %v4026_v56  ;;  %3446 = vmatprep.subr.bf16.mxu1 %v3634_v3 }
 0x6f7   : > { %v1788_v25 = vrot.slane %v1677_v32, %v4041_v10 }
 0x6f8   : > { %v1687_v26 = vsub.f32 %v1685_v21, %v1686_v20  ;;  %v1693_v27 = vadd.f32 %v1692_v23, %v1691_v39  ;;  %v1768_v21 = vpop.permute.xlu1 %1767  ;;  %v3576_v39 = vld [vmem:[%s4639_s17 + $0x8] sm:$0xff]   ;;  %v1837_v23 = vrot.slane %v4129_v19, %v4041_v10 }
 0x6f9   : > { %v1826_v28 = vsel %vm1571_vm7, %v1642_v7, %v1788_v25  ;;  %3447 = vmatpush3.bf16.msra.mxu1 %v3576_v39 }
 0x6fa   : > { %v1690_v30 = vadd.f32 %v3992_v50, %v1687_v26  ;;  %v4141_v46 = vadd.f32 %v1695_v29, %v1693_v27  ;;  %3448 = vmatprep.subr.bf16.mxu1 %v3634_v3 }
 0x6fc   : > { %v1698_v31 = vmul.f32 %v1690_v30, %v4021_v55  ;;  %v1705_v9 = vmul.f32 %v1690_v30, %v4026_v56  ;;  %v1794_v44 = vrot.slane %v1690_v30, %v4041_v10  ;;  %v1699_v33 = vmul.f32 %v4141_v46, %v4026_v56 }
 0x6fd   : > { %v1704_v22 = vmul.f32 %v4141_v46, %v4021_v55  ;;  %v1843_v27 = vrot.slane %v4141_v46, %v4041_v10  ;;  %v1875_v46 = vsel %vm1571_vm7, %v4120_v8, %v1837_v23 }
 0x6fe   : > { %v1827_v34 = vsel %vm1573_vm8, %v1826_v28, %v1794_v44  ;;  %v1700_v36 = vsub.f32 %v1698_v31, %v1699_v33  ;;  %v3577_v44 = vld [vmem:[%s4639_s17] sm:$0xff]  }
 0x6ff   : > { %v1706_v37 = vadd.f32 %v1705_v9, %v1704_v22  ;;  %3449 = vmatpush3.bf16.msra.mxu1 %v3577_v44 }
 0x700   : > { %v1703_v50 = vadd.f32 %v3988_v48, %v1700_v36  ;;  %3470 = vmatprep.subr.bf16.mxu1 %v3634_v3 }
 0x701   : > { %v1710_v41 = vadd.f32 %v1708_v38, %v1706_v37 }
 0x702   : > { %v1711_v42 = vmul.f32 %v1703_v50, %v4021_v55  ;;  %v1732_v49 = vmul.f32 %v1703_v50, %v4026_v56  ;;  %v1800_v57 = vrot.slane %v1703_v50, %v4041_v10 }
 0x703   : > { %v1712_v45 = vmul.f32 %v1710_v41, %v4026_v56  ;;  %v1731_v47 = vmul.f32 %v1710_v41, %v4021_v55  ;;  %v1849_v28 = vrot.slane %v1710_v41, %v4041_v10 }
 0x704   : > { %v1828_v60 = vsel %vm1575_vm9, %v1827_v34, %v1800_v57 }
 0x705   : > { %v1713_v58 = vsub.f32 %v1711_v42, %v1712_v45  ;;  %v1733_v63 = vadd.f32 %v1732_v49, %v1731_v47 }
 0x707   : > { %v1730_v35 = vadd.f32 %v4002_v52, %v1713_v58  ;;  %v1737_v61 = vadd.f32 %v1735_v59, %v1733_v63 }
 0x709   : > { %v1738_v48 = vmul.f32 %v1730_v35, %v4021_v55  ;;  %v1739_v62 = vmul.f32 %v1737_v61, %v4026_v56  ;;  %v1751_v0 = vmul.f32 %v1737_v61, %v4021_v55  ;;  %v1752_v43 = vmul.f32 %v1730_v35, %v4026_v56 }
 0x70a   : > { %v1806_v1 = vrot.slane %v1730_v35, %v4041_v10  ;;  %v1855_v19 = vrot.slane %v1737_v61, %v4041_v10 }
 0x70b   : > { %v1740_v2 = vsub.f32 %v1738_v48, %v1739_v62  ;;  %v1753_v4 = vadd.f32 %v1752_v43, %v1751_v0  ;;  %v3284_v62 = vld [vmem:[%s4640_s18] ss:$0 sm:$0xff] }
 0x70c   : > { %v1829_v7 = vsel %vm1577_vm10, %v1828_v60, %v1806_v1 }
 0x70d   : > { %v1750_v40 = vadd.f32 %v3997_v51, %v1740_v2  ;;  %v1757_v11 = vadd.f32 %v1755_v5, %v1753_v4  ;;  %v1907_v4 = vmul.f32 %v3284_v62, %v3927_v17 }
 0x70f   : > { %v1758_v52 = vmul.f32 %v1750_v40, %v4021_v55  ;;  %v1759_v12 = vmul.f32 %v1757_v11, %v4026_v56  ;;  %v1764_v13 = vmul.f32 %v1757_v11, %v4021_v55  ;;  %v1765_v14 = vmul.f32 %v1750_v40, %v4026_v56 }
 0x710   : > { %v1812_v15 = vrot.slane %v1750_v40, %v4041_v10  ;;  %v1861_v34 = vrot.slane %v1757_v11, %v4041_v10 }
 0x711   : > { %v1760_v32 = vsub.f32 %v1758_v52, %v1759_v12  ;;  %v1766_v20 = vadd.f32 %v1765_v14, %v1764_v13 }
 0x712   : > { %v1830_v51 = vsel %vm1579_vm11, %v1829_v7, %v1812_v15 }
 0x713   : > { %v1763_v25 = vadd.f32 %v4014_v54, %v1760_v32  ;;  %v1770_v26 = vadd.f32 %v1768_v21, %v1766_v20 }
 0x715   : > { %v1771_v29 = vmul.f32 %v1763_v25, %v4021_v55  ;;  %v1772_v30 = vmul.f32 %v1770_v26, %v4026_v56  ;;  %v1777_v31 = vmul.f32 %v1770_v26, %v4021_v55  ;;  %v1778_v9 = vmul.f32 %v1763_v25, %v4026_v56  ;;  %v1781_v56 = vpop.permute.xlu0 %1780 }
 0x716   : > { %v1818_v54 = vrot.slane %v1763_v25, %v4041_v10  ;;  %v1876_v55 = vsel %vm1573_vm8, %v1875_v46, %v1843_v27  ;;  %v1867_v36 = vrot.slane %v1770_v26, %v4041_v10 }
 0x717   : > { %v1773_v33 = vsub.f32 %v1771_v29, %v1772_v30  ;;  %v1779_v22 = vadd.f32 %v1778_v9, %v1777_v31  ;;  %v1877_v41 = vsel %vm1575_vm9, %v1876_v55, %v1849_v28 }
 0x718   : > { %v1831_v37 = vsel %vm1581_vm12, %v1830_v51, %v1818_v54  ;;  %v1878_v8 = vsel %vm1577_vm10, %v1877_v41, %v1855_v19 }
 0x719   : > { %v1776_v38 = vadd.f32 %v4008_v53, %v1773_v33  ;;  %v1783_v50 = vadd.f32 %v1781_v56, %v1779_v22  ;;  %v1879_v45 = vsel %vm1579_vm11, %v1878_v8, %v1861_v34 }
 0x71a   : > { %v1880_v49 = vsel %vm1581_vm12, %v1879_v45, %v1867_v36  ;;  %v3579_v36 = vld [vmem:[%s4643_s21] sm:$0xff]  }
 0x71b   : > { %v1873_v42 = vrot.slane %v1783_v50, %v4041_v10  ;;  %v1824_v47 = vrot.slane %v1776_v38, %v4041_v10 }
 0x71d   : > { %v1881_v57 = vsel %vm776_vm0, %v1880_v49, %v1873_v42  ;;  %v1832_v53 = vsel %vm776_vm0, %v1831_v37, %v1824_v47  ;;  %v3290_v49 = vld [vmem:[%s4641_s19] ss:$0 sm:$0xff] }
 0x71e   : > { %1883 = vrot.lane.b32.xlu0 %v1881_v57, %s3637_s0 }
 0x760   : > { %v1635_v58 = vpop.permute.xlu1 %1634 }
 0x761   : > { %v1637_v63 = vsel %vm878_vm3, %v4117_v6, %v1635_v58  ;;  %v1906_v6 = vmul.f32 %v3284_v62, %v3925_v16 }
 0x762   : > { %1638 = vst.msk [vmem:[#allocation3] sm:$0xff] %vm917_vm4, %v1637_v63  ;;  %v3291_v63 = vld [vmem:[%s4642_s20] ss:$0 sm:$0xff] }
 0x769   : > { %v1888_v35 = vld [vmem:[#allocation3] sm:$0xff] }
 0x790   : > { %v1884_v59 = vpop.permute.xlu0 %1883 }
 0x791   : > { %v1886_v60 = vsel %vm878_vm3, %v1832_v53, %v1884_v59 }
 0x792   : > { %1887 = vst.msk [vmem:[#allocation3 + $0x8] sm:$0xff] %vm917_vm4, %v1886_v60 }
 0x799   : > { %v1889_v61 = vld [vmem:[#allocation3 + $0x8] sm:$0xff] }
 0x79a   : > { %v1890_v48 = vpack.c.bf16 %v1889_v61, %v1888_v35 }
 0x79c   : > { %3451 = vmatmul.mubr.msk.bf16.vlgmr.msra.gmra.mxu1 %vm917_vm4, %v1890_v48 }
 0x79d   : > { %3474 = vmatprep.mubr.msk.bf16.mxu1 %vm3639_vm6, %v3634_v3 }
 0x85c   : > { %v1969_v0 = vpop.f32.mrf.mxu1 }
 0x85d   : > { %v1970_v43 = vadd.f32 %v1969_v0, %v1906_v6 }
 0x85e   : > { %v3452_v1 = vpop.f32.mrf.mxu1 }
 0x85f   : > { %v1978_v2 = vmul.f32 0.044715, %v1970_v43  ;;  %v1976_v51 = vmul.f32 0.5, %v1970_v43 }
 0x860   : > { %v1972_v5 = vpop.f32.mrf.mxu1 }
 0x861   : > { %v1980_v7 = vmul.f32 %v1978_v2, %v1970_v43  ;;  %v1973_v40 = vadd.f32 %v1972_v5, %v1907_v4 }
 0x862   : > { %v3453_v11 = vpop.f32.mrf.mxu1 }
 0x863   : > { %v1979_v52 = vmul.f32 0.044715, %v1973_v40  ;;  %v1982_v12 = vmul.f32 %v1980_v7, %v1970_v43  ;;  %v1977_v27 = vmul.f32 0.5, %v1973_v40 }
 0x865   : > { %v1981_v13 = vmul.f32 %v1979_v52, %v1973_v40  ;;  %v1984_v14 = vadd.f32 %v1982_v12, %v1970_v43 }
 0x867   : > { %v1986_v15 = vmul.f32 0.7978846, %v1984_v14  ;;  %v1983_v18 = vmul.f32 %v1981_v13, %v1973_v40  ;;  %v3580_v13 = vld [vmem:[%s4644_s22 + $0x8] sm:$0xff]   ;;  %v3581_v14 = vld [vmem:[%s4644_s22] sm:$0xff]  }
 0x869   : > { %3598 = vtanh.f32 %v1986_v15  ;;  %v1985_v32 = vadd.f32 %v1983_v18, %v1973_v40 }
 0x86b   : > { %v1987_v20 = vmul.f32 0.7978846, %v1985_v32 }
 0x86d   : > { %3600 = vtanh.f32 %v1987_v20 }
 0x876   : > { %v3599_v21 = vpop.eup %3598 }
 0x877   : > { %v1990_v39 = vadd.f32 1.0, %v3599_v21 }
 0x879   : > { %v1992_v23 = vmul.f32 %v1990_v39, %v1976_v51 }
 0x87a   : > { %v3601_v25 = vpop.eup %3600 }
 0x87b   : > { %v1994_v26 = vadd.f32 %v1992_v23, %v3925_v16  ;;  %v1991_v28 = vadd.f32 1.0, %v3601_v25 }
 0x87d   : > { %v1998_v29 = vsel %vm878_vm3, %v1994_v26, 0.0  ;;  %v1993_v30 = vmul.f32 %v1991_v28, %v1977_v27 }
 0x87e   : > { %1999 = vadd.xlane.f32.xlu1 %v1998_v29 }
 0x87f   : > { %v1995_v31 = vadd.f32 %v1993_v30, %v3927_v17  ;;  %v3578_v17 = vld [vmem:[%s4643_s21 + $0x8] sm:$0xff]  }
 0x880   : > { %3455 = vmatpush3.bf16.msra.mxu0 %v3578_v17 }
 0x881   : > { %v2001_v9 = vsel %vm878_vm3, %v1995_v31, 0.0  ;;  %3456 = vmatprep.subr.bf16.mxu0 %v3634_v3 }
 0x882   : > { %2002 = vadd.xlane.f32.xlu0 %v2001_v9 }
 0x884   : > { %3457 = vmatpush3.bf16.msra.mxu0 %v3579_v36 }
 0x885   : > { %3462 = vmatprep.subr.bf16.mxu0 %v3634_v3 }
 0x907   : > { %v2000_v19 = vpop.xlane.xlu1 %1999 }
 0x908   : > { %v2004_v54 = vmul.f32 0.03125, %v2000_v19 }
 0x90a   : > { %v2006_v44 = vsub.f32 %v1994_v26, %v2004_v54 }
 0x90b   : > { %v2003_v46 = vpop.xlane.xlu0 %2002 }
 0x90c   : > { %v2005_v33 = vmul.f32 0.03125, %v2003_v46  ;;  %v2008_v22 = vmul.f32 %v2006_v44, %v2006_v44 }
 0x90e   : > { %v2007_v34 = vsub.f32 %v1995_v31, %v2005_v33  ;;  %v2010_v16 = vsel %vm878_vm3, %v2008_v22, 0.0 }
 0x90f   : > { %2011 = vadd.xlane.f32.xlu0 %v2010_v16 }
 0x910   : > { %v2009_v55 = vmul.f32 %v2007_v34, %v2007_v34 }
 0x912   : > { %v2013_v56 = vsel %vm878_vm3, %v2009_v55, 0.0 }
 0x913   : > { %2014 = vadd.xlane.f32.xlu1 %v2013_v56 }
 0x998   : > { %v2012_v37 = vpop.xlane.xlu0 %2011 }
 0x999   : > { %v2016_v38 = vmul.f32 0.03125, %v2012_v37 }
 0x99b   : > { %v2018_v50 = vadd.f32 1e-05, %v2016_v38 }
 0x99c   : > { %v2015_v41 = vpop.xlane.xlu1 %2014 }
 0x99d   : > { %3602 = vrsqrt.f32 %v2018_v50  ;;  %v2017_v8 = vmul.f32 0.03125, %v2015_v41  ;;  %v3582_v41 = vld [vmem:[%s4636_s14 + $0x18] sm:$0xff]  }
 0x99e   : > { %3471 = vmatpush3.bf16.msra.mxu1 %v3582_v41 }
 0x99f   : > { %v2019_v42 = vadd.f32 1e-05, %v2017_v8  ;;  %v3583_v8 = vld [vmem:[%s4636_s14 + $0x10] sm:$0xff]   ;;  %3472 = vmatprep.subr.bf16.mxu1 %v3634_v3 }
 0x9a1   : > { %3604 = vrsqrt.f32 %v2019_v42 }
 0x9a2   : > { %3473 = vmatpush3.bf16.msra.mxu1 %v3583_v8 }
 0x9a3   : > { %3490 = vmatprep.subr.bf16.mxu1 %v3634_v3 }
 0x9aa   : > { %v3603_v45 = vpop.eup %3602 }
 0x9ab   : > { %v2022_v47 = vmul.f32 %v3603_v45, %v2006_v44 }
 0x9ad   : > { %v2030_v58 = vmul.f32 %v3290_v49, %v2022_v47 }
 0x9ae   : > { %v3605_v57 = vpop.eup %3604 }
 0x9af   : > { %v2023_v53 = vmul.f32 %v3605_v57, %v2007_v34  ;;  %v2038_v60 = vadd.f32 %v3291_v63, %v2030_v58 }
 0x9b1   : > { %v2031_v59 = vmul.f32 %v3290_v49, %v2023_v53 }
 0x9b3   : > { %v2039_v35 = vadd.f32 %v3291_v63, %v2031_v59  ;;  %v3300_v59 = vld [vmem:[%s4634_s12 + $0x1] ss:$0 sm:$0xff] }
 0x9b5   : > { %v2040_v61 = vpack.c.bf16 %v2039_v35, %v2038_v60 }
 0x9b7   : > { %3459 = vmatmul.mubr.msk.bf16.vlgmr.msra.gmra.mxu0 %vm878_vm3, %v2040_v61 }
 0x9b8   : > { %3466 = vmatprep.mubr.msk.bf16.mxu0 %vm3639_vm6, %v3634_v3  ;;  %3463 = vmatpush3.bf16.msra.mxu0 %v3580_v13 }
 0x9b9   : > { %3464 = vmatprep.subr.bf16.mxu0 %v3634_v3 }
 0x9bc   : > { %3465 = vmatpush3.bf16.msra.mxu0 %v3581_v14 }
 0x9bd   : > { %3478 = vmatprep.subr.bf16.mxu0 %v3634_v3 }
 0xa77   : > { %v2094_v48 = vpop.f32.mrf.mxu0 }
 0xa78   : > { %v2103_v62 = vmul.f32 0.044715, %v2094_v48  ;;  %v2101_v18 = vmul.f32 0.5, %v2094_v48 }
 0xa79   : > { %v3460_v6 = vpop.f32.mrf.mxu0 }
 0xa7a   : > { %v2105_v0 = vmul.f32 %v2103_v62, %v2094_v48 }
 0xa7b   : > { %v2097_v43 = vpop.f32.mrf.mxu0 }
 0xa7c   : > { %v2107_v1 = vmul.f32 %v2105_v0, %v2094_v48  ;;  %v2104_v2 = vmul.f32 0.044715, %v2097_v43  ;;  %v2102_v51 = vmul.f32 0.5, %v2097_v43 }
 0xa7d   : > { %v3461_v4 = vpop.f32.mrf.mxu0 }
 0xa7e   : > { %v2106_v5 = vmul.f32 %v2104_v2, %v2097_v43  ;;  %v2109_v7 = vadd.f32 %v2107_v1, %v2094_v48 }
 0xa80   : > { %v2108_v40 = vmul.f32 %v2106_v5, %v2097_v43  ;;  %v2111_v11 = vmul.f32 0.7978846, %v2109_v7 }
 0xa82   : > { %3606 = vtanh.f32 %v2111_v11  ;;  %v2110_v52 = vadd.f32 %v2108_v40, %v2097_v43 }
 0xa84   : > { %v2112_v12 = vmul.f32 0.7978846, %v2110_v52 }
 0xa86   : > { %3608 = vtanh.f32 %v2112_v12 }
 0xa8f   : > { %v3607_v15 = vpop.eup %3606 }
 0xa90   : > { %v2115_v32 = vadd.f32 1.0, %v3607_v15 }
 0xa92   : > { %v2117_v20 = vmul.f32 %v2115_v32, %v2101_v18 }
 0xa93   : > { %v3609_v21 = vpop.eup %3608 }
 0xa94   : > { %2121 = vrot.lane.b32.xlu0 %v2117_v20, %s3636_s5  ;;  %v2116_v39 = vadd.f32 1.0, %v3609_v21 }
 0xa96   : > { %v2118_v23 = vmul.f32 %v2116_v39, %v2102_v51 }
 0xa98   : > { %2123 = vrot.lane.b32.xlu1 %v2118_v23, %s3636_s5 }
 0xb06   : > { %v2122_v25 = vpop.permute.xlu0 %2121 }
 0xb07   : > { %v2127_v27 = vmul.f32 %v2122_v25, %v2094_v48  ;;  %v3301_v48 = vld [vmem:[%s4635_s13 + $0x1] ss:$0 sm:$0xff] }
 0xb0a   : > { %v2124_v26 = vpop.permute.xlu1 %2123 }
 0xb0b   : > { %v2128_v28 = vmul.f32 %v2124_v26, %v2097_v43 }
 0xb0d   : > { %v2129_v29 = vpack.c.bf16 %v2128_v28, %v2127_v27 }
 0xb0f   : > { %3467 = vmatmul.mubr.msk.bf16.vlgmr.msra.gmra.mxu0 %vm878_vm3, %v2129_v29 }
 0xb10   : > { %3486 = vmatprep.mubr.msk.bf16.mxu0 %vm3639_vm6, %v3634_v3 }
 0xbcf   : > { %v2183_v30 = vpop.f32.mrf.mxu0 }
 0xbd0   : > { %v2184_v31 = vadd.f32 %v2183_v30, %v2038_v60 }
 0xbd1   : > { %v3468_v9 = vpop.f32.mrf.mxu0 }
 0xbd2   : > { %v2194_v19 = vsel %vm878_vm3, %v2184_v31, 0.0 }
 0xbd3   : > { %2195 = vadd.xlane.f32.xlu1 %v2194_v19  ;;  %v2186_v54 = vpop.f32.mrf.mxu0 }
 0xbd4   : > { %v2187_v44 = vadd.f32 %v2186_v54, %v2039_v35 }
 0xbd5   : > { %v3469_v46 = vpop.f32.mrf.mxu0 }
 0xbd6   : > { %v2197_v33 = vsel %vm878_vm3, %v2187_v44, 0.0  ;;  %v4375_v46 = vld [vmem:[%s4638_s16 + $0x1] sm:$0x1] }
 0xbd7   : > { %2198 = vadd.xlane.f32.xlu0 %v2197_v33 }
 0xc5c   : > { %v2196_v22 = vpop.xlane.xlu1 %2195 }
 0xc5d   : > { %v2200_v34 = vmul.f32 0.03125, %v2196_v22  ;;  %v2303_v22 = vmul.f32 0.0, %v4375_v46 }
 0xc5f   : > { %v2202_v16 = vsub.f32 %v2184_v31, %v2200_v34 }
 0xc60   : > { %v2199_v55 = vpop.xlane.xlu0 %2198 }
 0xc61   : > { %v2201_v56 = vmul.f32 0.03125, %v2199_v55  ;;  %v2204_v17 = vmul.f32 %v2202_v16, %v2202_v16 }
 0xc63   : > { %v2203_v36 = vsub.f32 %v2187_v44, %v2201_v56  ;;  %v2206_v37 = vsel %vm878_vm3, %v2204_v17, 0.0 }
 0xc64   : > { %2207 = vadd.xlane.f32.xlu0 %v2206_v37 }
 0xc65   : > { %v2205_v38 = vmul.f32 %v2203_v36, %v2203_v36 }
 0xc67   : > { %v2209_v50 = vsel %vm878_vm3, %v2205_v38, 0.0 }
 0xc68   : > { %2210 = vadd.xlane.f32.xlu1 %v2209_v50 }
 0xced   : > { %v2208_v42 = vpop.xlane.xlu0 %2207 }
 0xcee   : > { %v2212_v45 = vmul.f32 0.03125, %v2208_v42 }
 0xcf0   : > { %v2214_v47 = vadd.f32 1e-05, %v2212_v45 }
 0xcf1   : > { %v2211_v49 = vpop.xlane.xlu1 %2210 }
 0xcf2   : > { %3610 = vrsqrt.f32 %v2214_v47  ;;  %v2213_v57 = vmul.f32 0.03125, %v2211_v49 }
 0xcf4   : > { %v2215_v53 = vadd.f32 1e-05, %v2213_v57 }
 0xcf6   : > { %3612 = vrsqrt.f32 %v2215_v53 }
 0xcff   : > { %v3611_v58 = vpop.eup %3610 }
 0xd00   : > { %v2218_v63 = vmul.f32 %v3611_v58, %v2202_v16 }
 0xd02   : > { %v2226_v35 = vmul.f32 %v3300_v59, %v2218_v63 }
 0xd03   : > { %v3613_v60 = vpop.eup %3612 }
 0xd04   : > { %v2219_v61 = vmul.f32 %v3613_v60, %v2203_v36  ;;  %v4279_v6 = vadd.f32 %v3301_v48, %v2226_v35 }
 0xd06   : > { %v2227_v62 = vmul.f32 %v3300_v59, %v2219_v61 }
 0xd08   : > { %v4281_v0 = vadd.f32 %v3301_v48, %v2227_v62 }
 0xd0a   : > { %v2236_v43 = vpack.c.bf16 %v4281_v0, %v4279_v6 }
 0xd0c   : > { %3475 = vmatmul.mubr.msk.bf16.vlgmr.msra.gmra.mxu1 %vm878_vm3, %v2236_v43 }
 0xd0d   : > { %3494 = vmatprep.mubr.msk.bf16.mxu1 %vm3639_vm6, %v3634_v3 }
 0xdcc   : > { %v2291_v1 = vpop.f32.mrf.mxu1 }
 0xdcd   : > { %v2314_v2 = vrot.slane %v2291_v1, %v3937_v24  ;;  %v2375_v4 = vcombine.high %v2291_v1, %v2291_v1 }
 0xdce   : > { %v3476_v5 = vpop.f32.mrf.mxu1 }
 0xdcf   : > { %v2329_v7 = vcombine.high %v2314_v2, %v2314_v2  ;;  %v2382_v40 = vrot.slane %v2375_v4, %v3937_v24  ;;  %v2321_v11 = vrot.slane %v2314_v2, %v3937_v24 }
 0xdd0   : > { %v4291_v52 = vpop.f32.mrf.mxu1 }
 0xdd1   : > { %2322 = vrot.lane.b32.xlu0 %v2321_v11, %s3636_s5  ;;  %v2336_v12 = vrot.slane %v2329_v7, %v3937_v24  ;;  %v2402_v15 = vcombine.high %v2382_v40, %v2382_v40  ;;  %v2349_v18 = vcombine.high %v2321_v11, %v2321_v11  ;;  %v2563_v32 = vrot.slane %v4291_v52, %v3937_v24 }
 0xdd2   : > { %v3477_v13 = vpop.f32.mrf.mxu1  ;;  %v4309_v21 = vrot.slane %v2382_v40, %v3937_v24  ;;  %v2624_v39 = vcombine.high %v4291_v52, %v4291_v52 }
 0xdd3   : > { %2342 = vrot.lane.b32.xlu1 %v2336_v12, %s3636_s5  ;;  %v4296_v14 = vcombine.high %v2336_v12, %v2336_v12  ;;  %v4304_v20 = vrot.slane %v2402_v15, %v3937_v24  ;;  %v2578_v51 = vcombine.high %v2563_v32, %v2563_v32  ;;  %v2570_v28 = vrot.slane %v2563_v32, %v3937_v24 }
 0xdd4   : > { %v4323_v25 = vcombine.high %v4309_v21, %v4309_v21  ;;  %v2631_v26 = vrot.slane %v2624_v39, %v3937_v24 }
 0xdd5   : > { %2368 = vrot.lane.b32.xlu0 %v4296_v14, %s3636_s5  ;;  %v4317_v23 = vcombine.high %v4304_v20, %v4304_v20  ;;  %v4329_v27 = vrot.slane %v2578_v51, %v3937_v24  ;;  %v4341_v31 = vcombine.high %v2570_v28, %v2570_v28 }
 0xdd6   : > { %v2651_v30 = vcombine.high %v2631_v26, %v2631_v26  ;;  %v4351_v19 = vrot.slane %v2631_v26, %v3937_v24 }
 0xdd7   : > { %2355 = vrot.lane.b32.xlu1 %v2349_v18, %s3636_s5  ;;  %v4337_v29 = vcombine.high %v4329_v27, %v4329_v27 }
 0xdd8   : > { %v4346_v9 = vrot.slane %v2651_v30, %v3937_v24  ;;  %v4363_v44 = vcombine.high %v4351_v19, %v4351_v19  ;;  %v4370_v24 = vld [vmem:[%s4637_s15 + $0x1] sm:$0x1] }
 0xdd9   : > { %2415 = vrot.lane.b32.xlu0 %v4304_v20, %s3636_s5  ;;  %v2302_v33 = vmul.f32 0.0, %v4370_v24 }
 0xdda   : > { %v4357_v54 = vcombine.high %v4346_v9, %v4346_v9 }
 0xddb   : > { %2395 = vrot.lane.b32.xlu1 %v4309_v21, %s3636_s5  ;;  %v2304_v34 = vsub.f32 %v2302_v33, %v2303_v22  ;;  %v2306_v16 = vadd.f32 %v2303_v22, %v2302_v33 }
 0xddd   : > { %2441 = vrot.lane.b32.xlu0 %v4317_v23, %s3636_s5  ;;  %v2305_v55 = vadd.f32 %v2304_v34, %v2291_v1 }
 0xddf   : > { %2428 = vrot.lane.b32.xlu1 %v4323_v25, %s3636_s5  ;;  %v2326_v36 = vmul.f32 %v4370_v24, %v2305_v55  ;;  %v2340_v50 = vmul.f32 %v4375_v46, %v2305_v55 }
 0xde1   : > { %2591 = vrot.lane.b32.xlu0 %v4329_v27, %s3636_s5 }
 0xde3   : > { %2571 = vrot.lane.b32.xlu1 %v2570_v28, %s3636_s5 }
 0xde5   : > { %2617 = vrot.lane.b32.xlu0 %v4337_v29, %s3636_s5 }
 0xde7   : > { %2604 = vrot.lane.b32.xlu1 %v4341_v31, %s3636_s5 }
 0xde9   : > { %2664 = vrot.lane.b32.xlu0 %v4346_v9, %s3636_s5 }
 0xdeb   : > { %2644 = vrot.lane.b32.xlu1 %v4351_v19, %s3636_s5 }
 0xded   : > { %2690 = vrot.lane.b32.xlu0 %v4357_v54, %s3636_s5 }
 0xdef   : > { %2677 = vrot.lane.b32.xlu1 %v4363_v44, %s3636_s5 }
 0xe43   : > { %v2323_v56 = vpop.permute.xlu0 %2322 }
 0xe44   : > { %v4379_v17 = vadd.f32 %v2323_v56, %v2306_v16 }
 0xe45   : > { %v2343_v42 = vpop.permute.xlu1 %2342 }
 0xe46   : > { %v2327_v37 = vmul.f32 %v4375_v46, %v4379_v17  ;;  %v2339_v38 = vmul.f32 %v4370_v24, %v4379_v17 }
 0xe48   : > { %v2328_v41 = vsub.f32 %v2326_v36, %v2327_v37  ;;  %v2341_v8 = vadd.f32 %v2340_v50, %v2339_v38 }
 0xe49   : > { %v2356_v61 = vpop.permute.xlu1 %2355 }
 0xe4a   : > { %v2338_v45 = vadd.f32 %v2336_v12, %v2328_v41  ;;  %v4387_v47 = vadd.f32 %v2343_v42, %v2341_v8  ;;  %v2369_v12 = vpop.permute.xlu0 %2368 }
 0xe4c   : > { %v2346_v49 = vmul.f32 %v4370_v24, %v2338_v45  ;;  %v2347_v57 = vmul.f32 %v4375_v46, %v4387_v47  ;;  %v2352_v53 = vmul.f32 %v4370_v24, %v4387_v47  ;;  %v2353_v58 = vmul.f32 %v4375_v46, %v2338_v45 }
 0xe4d   : > { %v2449_v59 = vrot.slane %v2338_v45, %v4041_v10  ;;  %v2396_v33 = vpop.permute.xlu1 %2395 }
 0xe4e   : > { %v2348_v63 = vsub.f32 %v2346_v49, %v2347_v57  ;;  %v2354_v60 = vadd.f32 %v2353_v58, %v2352_v53  ;;  %v2416_v41 = vpop.permute.xlu0 %2415 }
 0xe4f   : > { %v2487_v5 = vsel %vm1571_vm7, %v2305_v55, %v2449_v59 }
 0xe50   : > { %v2351_v35 = vadd.f32 %v2349_v18, %v2348_v63  ;;  %v4396_v48 = vadd.f32 %v2356_v61, %v2354_v60  ;;  %v2498_v61 = vrot.slane %v4387_v47, %v4041_v10 }
 0xe51   : > { %v2429_v60 = vpop.permute.xlu1 %2428 }
 0xe52   : > { %v2455_v62 = vrot.slane %v2351_v35, %v4041_v10  ;;  %v2359_v43 = vmul.f32 %v4370_v24, %v2351_v35  ;;  %v2366_v1 = vmul.f32 %v4375_v46, %v2351_v35  ;;  %v2360_v2 = vmul.f32 %v4375_v46, %v4396_v48 }
 0xe53   : > { %v2365_v4 = vmul.f32 %v4370_v24, %v4396_v48 }
 0xe54   : > { %v2488_v7 = vsel %vm1573_vm8, %v2487_v5, %v2455_v62  ;;  %v2361_v40 = vsub.f32 %v2359_v43, %v2360_v2  ;;  %v3584_v43 = vld [vmem:[%s4639_s17 + $0x38] sm:$0xff]  }
 0xe55   : > { %v2367_v11 = vadd.f32 %v2366_v1, %v2365_v4  ;;  %v2504_v1 = vrot.slane %v4396_v48, %v4041_v10  ;;  %3479 = vmatpush3.bf16.msra.mxu0 %v3584_v43  ;;  %v2536_v48 = vsel %vm1571_vm7, %v4379_v17, %v2498_v61 }
 0xe56   : > { %v2364_v13 = vadd.f32 %v4296_v14, %v2361_v40  ;;  %3480 = vmatprep.subr.bf16.mxu0 %v3634_v3 }
 0xe57   : > { %v2371_v15 = vadd.f32 %v2369_v12, %v2367_v11 }
 0xe58   : > { %v2372_v18 = vmul.f32 %v4370_v24, %v2364_v13  ;;  %v2393_v39 = vmul.f32 %v4375_v46, %v2364_v13  ;;  %v2461_v26 = vrot.slane %v2364_v13, %v4041_v10  ;;  %v2537_v13 = vsel %vm1573_vm8, %v2536_v48, %v2504_v1 }
 0xe59   : > { %v2373_v32 = vmul.f32 %v4375_v46, %v2371_v15  ;;  %v2392_v51 = vmul.f32 %v4370_v24, %v2371_v15  ;;  %v2510_v2 = vrot.slane %v2371_v15, %v4041_v10  ;;  %v2442_v15 = vpop.permute.xlu0 %2441 }
 0xe5a   : > { %v2489_v22 = vsel %vm1575_vm9, %v2488_v7, %v2461_v26 }
 0xe5b   : > { %v2374_v28 = vsub.f32 %v2372_v18, %v2373_v32  ;;  %v2394_v30 = vadd.f32 %v2393_v39, %v2392_v51 }
 0xe5d   : > { %v2391_v34 = vadd.f32 %v4309_v21, %v2374_v28  ;;  %v2398_v16 = vadd.f32 %v2396_v33, %v2394_v30  ;;  %v2538_v28 = vsel %vm1575_vm9, %v2537_v13, %v2510_v2 }
 0xe5f   : > { %v2399_v14 = vmul.f32 %v4370_v24, %v2391_v34  ;;  %v2400_v55 = vmul.f32 %v4375_v46, %v2398_v16  ;;  %v2412_v56 = vmul.f32 %v4370_v24, %v2398_v16  ;;  %v2413_v36 = vmul.f32 %v4375_v46, %v2391_v34 }
 0xe60   : > { %v2467_v37 = vrot.slane %v2391_v34, %v4041_v10 }
 0xe61   : > { %v2401_v38 = vsub.f32 %v2399_v14, %v2400_v55  ;;  %v2414_v50 = vadd.f32 %v2413_v36, %v2412_v56 }
 0xe62   : > { %v2490_v8 = vsel %vm1577_vm10, %v2489_v22, %v2467_v37  ;;  %v2572_v37 = vpop.permute.xlu1 %2571 }
 0xe63   : > { %v2411_v42 = vadd.f32 %v4304_v20, %v2401_v38  ;;  %v2418_v45 = vadd.f32 %v2416_v41, %v2414_v50 }
 0xe65   : > { %v2419_v21 = vmul.f32 %v4370_v24, %v2411_v42  ;;  %v2420_v49 = vmul.f32 %v4375_v46, %v2418_v45  ;;  %v2425_v57 = vmul.f32 %v4370_v24, %v2418_v45  ;;  %v2426_v53 = vmul.f32 %v4375_v46, %v2411_v42 }
 0xe66   : > { %v2473_v58 = vrot.slane %v2411_v42, %v4041_v10  ;;  %v2522_v18 = vrot.slane %v2418_v45, %v4041_v10  ;;  %v2605_v2 = vpop.permute.xlu1 %2604 }
 0xe67   : > { %v2421_v63 = vsub.f32 %v2419_v21, %v2420_v49  ;;  %v2427_v59 = vadd.f32 %v2426_v53, %v2425_v57 }
 0xe68   : > { %v2491_v35 = vsel %vm1579_vm11, %v2490_v8, %v2473_v58  ;;  %v2592_v58 = vpop.permute.xlu0 %2591 }
 0xe69   : > { %v2424_v20 = vadd.f32 %v4323_v25, %v2421_v63  ;;  %v2431_v62 = vadd.f32 %v2429_v60, %v2427_v59  ;;  %v2516_v25 = vrot.slane %v2398_v16, %v4041_v10 }
 0xe6b   : > { %v2432_v4 = vmul.f32 %v4370_v24, %v2424_v20  ;;  %v2433_v5 = vmul.f32 %v4375_v46, %v2431_v62  ;;  %v2438_v7 = vmul.f32 %v4370_v24, %v2431_v62  ;;  %v2439_v47 = vmul.f32 %v4375_v46, %v2424_v20 }
 0xe6c   : > { %v2479_v40 = vrot.slane %v2424_v20, %v4041_v10  ;;  %v2528_v51 = vrot.slane %v2431_v62, %v4041_v10  ;;  %v2539_v30 = vsel %vm1577_vm10, %v2538_v28, %v2516_v25  ;;  %v2618_v13 = vpop.permute.xlu0 %2617 }
 0xe6d   : > { %v2434_v11 = vsub.f32 %v2432_v4, %v2433_v5  ;;  %v2440_v12 = vadd.f32 %v2439_v47, %v2438_v7  ;;  %v2540_v14 = vsel %vm1579_vm11, %v2539_v30, %v2522_v18 }
 0xe6e   : > { %v2492_v32 = vsel %vm1581_vm12, %v2491_v35, %v2479_v40  ;;  %v2541_v36 = vsel %vm1581_vm12, %v2540_v14, %v2528_v51 }
 0xe6f   : > { %v2437_v39 = vadd.f32 %v4317_v23, %v2434_v11  ;;  %v2444_v26 = vadd.f32 %v2442_v15, %v2440_v12 }
 0xe71   : > { %v2549_v17 = vmul.f32 %v4370_v24, %v2437_v39  ;;  %v2550_v33 = vmul.f32 %v4375_v46, %v2444_v26  ;;  %v2553_v22 = vmul.f32 %v4370_v24, %v2444_v26  ;;  %v2554_v34 = vmul.f32 %v4375_v46, %v2437_v39 }
 0xe72   : > { %v2534_v16 = vrot.slane %v2444_v26, %v4041_v10  ;;  %v2485_v55 = vrot.slane %v2437_v39, %v4041_v10 }
 0xe73   : > { %v2551_v23 = vsub.f32 %v2549_v17, %v2550_v33  ;;  %v2555_v56 = vadd.f32 %v2554_v34, %v2553_v22  ;;  %v2645_v17 = vpop.permute.xlu1 %2644 }
 0xe74   : > { %v2542_v38 = vsel %vm776_vm0, %v2541_v36, %v2534_v16  ;;  %v4463_v50 = vsel %vm776_vm0, %v2492_v32, %v2485_v55 }
 0xe75   : > { %v2552_v41 = vadd.f32 %v2551_v23, %v4291_v52  ;;  %v4466_v8 = vadd.f32 %v2572_v37, %v2555_v56  ;;  %2544 = vrot.lane.b32.xlu1 %v2542_v38, %s3637_s0  ;;  %v2665_v37 = vpop.permute.xlu0 %2664 }
 0xe77   : > { %v2575_v42 = vmul.f32 %v4370_v24, %v2552_v41  ;;  %v2576_v45 = vmul.f32 %v4375_v46, %v4466_v8  ;;  %v2588_v21 = vmul.f32 %v4370_v24, %v4466_v8  ;;  %v2589_v49 = vmul.f32 %v4375_v46, %v2552_v41 }
 0xe79   : > { %v2577_v57 = vsub.f32 %v2575_v42, %v2576_v45  ;;  %v2590_v53 = vadd.f32 %v2589_v49, %v2588_v21 }
 0xe7b   : > { %v4475_v63 = vadd.f32 %v2592_v58, %v2590_v53  ;;  %v2587_v52 = vadd.f32 %v4329_v27, %v2577_v57  ;;  %v3585_v53 = vld [vmem:[%s4639_s17 + $0x30] sm:$0xff]  }
 0xe7c   : > { %3481 = vmatpush3.bf16.msra.mxu0 %v3585_v53 }
 0xe7d   : > { %v2596_v59 = vmul.f32 %v4375_v46, %v4475_v63  ;;  %v2595_v60 = vmul.f32 %v4370_v24, %v2587_v52  ;;  %v2601_v35 = vmul.f32 %v4370_v24, %v4475_v63  ;;  %v2602_v61 = vmul.f32 %v4375_v46, %v2587_v52  ;;  %3482 = vmatprep.subr.bf16.mxu0 %v3634_v3 }
 0xe7e   : > { %v2698_v20 = vrot.slane %v2587_v52, %v4041_v10 }
 0xe7f   : > { %v2597_v62 = vsub.f32 %v2595_v60, %v2596_v59  ;;  %v2603_v43 = vadd.f32 %v2602_v61, %v2601_v35  ;;  %v2678_v59 = vpop.permute.xlu1 %2677  ;;  %v3586_v60 = vld [vmem:[%s4639_s17 + $0x28] sm:$0xff]   ;;  %v2747_v35 = vrot.slane %v4475_v63, %v4041_v10 }
 0xe80   : > { %v2736_v1 = vsel %vm1571_vm7, %v2552_v41, %v2698_v20  ;;  %3483 = vmatpush3.bf16.msra.mxu0 %v3586_v60 }
 0xe81   : > { %v2600_v4 = vadd.f32 %v4341_v31, %v2597_v62  ;;  %v4487_v27 = vadd.f32 %v2605_v2, %v2603_v43  ;;  %3484 = vmatprep.subr.bf16.mxu0 %v3634_v3 }
 0xe83   : > { %v2608_v5 = vmul.f32 %v4370_v24, %v2600_v4  ;;  %v2615_v7 = vmul.f32 %v4375_v46, %v2600_v4  ;;  %v2704_v47 = vrot.slane %v2600_v4, %v4041_v10  ;;  %v2609_v25 = vmul.f32 %v4375_v46, %v4487_v27 }
 0xe84   : > { %v2614_v40 = vmul.f32 %v4370_v24, %v4487_v27  ;;  %v2753_v62 = vrot.slane %v4487_v27, %v4041_v10  ;;  %v2785_v27 = vsel %vm1571_vm7, %v4466_v8, %v2747_v35 }
 0xe85   : > { %v2737_v48 = vsel %vm1573_vm8, %v2736_v1, %v2704_v47  ;;  %v2610_v11 = vsub.f32 %v2608_v5, %v2609_v25 }
 0xe86   : > { %v2616_v12 = vadd.f32 %v2615_v7, %v2614_v40  ;;  %v3587_v7 = vld [vmem:[%s4639_s17 + $0x20] sm:$0xff]  }
 0xe87   : > { %v2613_v31 = vadd.f32 %v4337_v29, %v2610_v11  ;;  %3485 = vmatpush3.bf16.msra.mxu0 %v3587_v7 }
 0xe88   : > { %v2620_v15 = vadd.f32 %v2618_v13, %v2616_v12  ;;  %3506 = vmatprep.subr.bf16.mxu0 %v3634_v3 }
 0xe89   : > { %v2621_v18 = vmul.f32 %v4370_v24, %v2613_v31  ;;  %v2642_v39 = vmul.f32 %v4375_v46, %v2613_v31  ;;  %v2710_v26 = vrot.slane %v2613_v31, %v4041_v10 }
 0xe8a   : > { %v2622_v32 = vmul.f32 %v4375_v46, %v2620_v15  ;;  %v2641_v51 = vmul.f32 %v4370_v24, %v2620_v15  ;;  %v2759_v43 = vrot.slane %v2620_v15, %v4041_v10 }
 0xe8b   : > { %v2738_v33 = vsel %vm1575_vm9, %v2737_v48, %v2710_v26 }
 0xe8c   : > { %v2623_v28 = vsub.f32 %v2621_v18, %v2622_v32  ;;  %v2643_v30 = vadd.f32 %v2642_v39, %v2641_v51 }
 0xe8e   : > { %v2640_v22 = vadd.f32 %v4351_v19, %v2623_v28  ;;  %v2647_v34 = vadd.f32 %v2645_v17, %v2643_v30 }
 0xe90   : > { %v2648_v29 = vmul.f32 %v4370_v24, %v2640_v22  ;;  %v2649_v16 = vmul.f32 %v4375_v46, %v2647_v34  ;;  %v2661_v14 = vmul.f32 %v4370_v24, %v2647_v34  ;;  %v2662_v55 = vmul.f32 %v4375_v46, %v2640_v22 }
 0xe91   : > { %v2716_v23 = vrot.slane %v2640_v22, %v4041_v10  ;;  %v2765_v63 = vrot.slane %v2647_v34, %v4041_v10  ;;  %v3320_v34 = vld [vmem:[%s4640_s18 + $0x1] ss:$0 sm:$0xff] }
 0xe92   : > { %v2650_v56 = vsub.f32 %v2648_v29, %v2649_v16  ;;  %v2663_v36 = vadd.f32 %v2662_v55, %v2661_v14 }
 0xe93   : > { %v2739_v38 = vsel %vm1577_vm10, %v2738_v33, %v2716_v23  ;;  %v2819_v23 = vmul.f32 %v3320_v34, %v4281_v0 }
 0xe94   : > { %v2660_v41 = vadd.f32 %v4346_v9, %v2650_v56  ;;  %v2667_v42 = vadd.f32 %v2665_v37, %v2663_v36 }
 0xe96   : > { %v2668_v19 = vmul.f32 %v4370_v24, %v2660_v41  ;;  %v2669_v45 = vmul.f32 %v4375_v46, %v2667_v42  ;;  %v2674_v21 = vmul.f32 %v4370_v24, %v2667_v42  ;;  %v2675_v49 = vmul.f32 %v4375_v46, %v2660_v41 }
 0xe97   : > { %v2722_v57 = vrot.slane %v2660_v41, %v4041_v10  ;;  %v2771_v40 = vrot.slane %v2667_v42, %v4041_v10 }
 0xe98   : > { %v2670_v58 = vsub.f32 %v2668_v19, %v2669_v45  ;;  %v2676_v52 = vadd.f32 %v2675_v49, %v2674_v21 }
 0xe99   : > { %v2740_v9 = vsel %vm1579_vm11, %v2739_v38, %v2722_v57 }
 0xe9a   : > { %v2673_v61 = vadd.f32 %v4363_v44, %v2670_v58  ;;  %v2680_v20 = vadd.f32 %v2678_v59, %v2676_v52 }
 0xe9c   : > { %v2681_v1 = vmul.f32 %v4370_v24, %v2673_v61  ;;  %v2682_v2 = vmul.f32 %v4375_v46, %v2680_v20  ;;  %v2687_v4 = vmul.f32 %v4370_v24, %v2680_v20  ;;  %v2688_v5 = vmul.f32 %v4375_v46, %v2673_v61  ;;  %v2691_v46 = vpop.permute.xlu0 %2690 }
 0xe9d   : > { %v2728_v44 = vrot.slane %v2673_v61, %v4041_v10  ;;  %v2786_v24 = vsel %vm1573_vm8, %v2785_v27, %v2753_v62  ;;  %v2777_v48 = vrot.slane %v2680_v20, %v4041_v10 }
 0xe9e   : > { %v2683_v47 = vsub.f32 %v2681_v1, %v2682_v2  ;;  %v2689_v25 = vadd.f32 %v2688_v5, %v2687_v4  ;;  %v2787_v31 = vsel %vm1575_vm9, %v2786_v24, %v2759_v43  ;;  %v3589_v24 = vld [vmem:[%s4643_s21 + $0x10] sm:$0xff]  }
 0xe9f   : > { %v2741_v11 = vsel %vm1581_vm12, %v2740_v9, %v2728_v44  ;;  %v2788_v8 = vsel %vm1577_vm10, %v2787_v31, %v2765_v63 }
 0xea0   : > { %v2686_v12 = vadd.f32 %v4357_v54, %v2683_v47  ;;  %v2693_v13 = vadd.f32 %v2691_v46, %v2689_v25  ;;  %v2789_v18 = vsel %vm1579_vm11, %v2788_v8, %v2771_v40 }
 0xea1   : > { %v2790_v51 = vsel %vm1581_vm12, %v2789_v18, %v2777_v48  ;;  %v3328_v18 = vld [vmem:[%s4641_s19 + $0x1] ss:$0 sm:$0xff] }
 0xea2   : > { %v2783_v15 = vrot.slane %v2693_v13, %v4041_v10  ;;  %v2734_v32 = vrot.slane %v2686_v12, %v4041_v10 }
 0xea4   : > { %v2791_v39 = vsel %vm776_vm0, %v2790_v51, %v2783_v15  ;;  %v2742_v54 = vsel %vm776_vm0, %v2741_v11, %v2734_v32 }
 0xea5   : > { %2793 = vrot.lane.b32.xlu0 %v2791_v39, %s3637_s0 }
 0xee7   : > { %v2545_v26 = vpop.permute.xlu1 %2544 }
 0xee8   : > { %v2547_v28 = vsel %vm878_vm3, %v4463_v50, %v2545_v26  ;;  %v2818_v50 = vmul.f32 %v3320_v34, %v4279_v6 }
 0xee9   : > { %2548 = vst.msk [vmem:[#allocation3] sm:$0xff] %vm917_vm4, %v2547_v28 }
 0xef0   : > { %v2798_v10 = vld [vmem:[#allocation3] sm:$0xff] }
 0xf17   : > { %v2794_v30 = vpop.permute.xlu0 %2793 }
 0xf18   : > { %v2796_v17 = vsel %vm878_vm3, %v2742_v54, %v2794_v30  ;;  %v3329_v54 = vld [vmem:[%s4642_s20 + $0x1] ss:$0 sm:$0xff] }
 0xf19   : > { %2797 = vst.msk [vmem:[#allocation3 + $0x8] sm:$0xff] %vm917_vm4, %v2796_v17 }
 0xf20   : > { %v2799_v33 = vld [vmem:[#allocation3 + $0x8] sm:$0xff] }
 0xf21   : > { %v2800_v22 = vpack.c.bf16 %v2799_v33, %v2798_v10 }
 0xf23   : > { %3487 = vmatmul.mubr.msk.bf16.vlgmr.msra.gmra.mxu0 %vm917_vm4, %v2800_v22 }
 0xf24   : > { %3510 = vmatprep.mubr.msk.bf16.mxu0 %vm3639_vm6, %v3634_v3 }
 0xfe3   : > { %v2881_v29 = vpop.f32.mrf.mxu0 }
 0xfe4   : > { %v2882_v16 = vadd.f32 %v2881_v29, %v2818_v50 }
 0xfe5   : > { %v3488_v14 = vpop.f32.mrf.mxu0 }
 0xfe6   : > { %v2890_v55 = vmul.f32 0.044715, %v2882_v16  ;;  %v2888_v52 = vmul.f32 0.5, %v2882_v16 }
 0xfe7   : > { %v2884_v56 = vpop.f32.mrf.mxu0 }
 0xfe8   : > { %v2892_v36 = vmul.f32 %v2890_v55, %v2882_v16  ;;  %v2885_v37 = vadd.f32 %v2884_v56, %v2819_v23 }
 0xfe9   : > { %v3489_v38 = vpop.f32.mrf.mxu0 }
 0xfea   : > { %v2891_v41 = vmul.f32 0.044715, %v2885_v37  ;;  %v2894_v42 = vmul.f32 %v2892_v36, %v2882_v16  ;;  %v2889_v61 = vmul.f32 0.5, %v2885_v37 }
 0xfec   : > { %v2893_v19 = vmul.f32 %v2891_v41, %v2885_v37  ;;  %v2896_v45 = vadd.f32 %v2894_v42, %v2882_v16  ;;  %v3590_v41 = vld [vmem:[%s4644_s22 + $0x18] sm:$0xff]   ;;  %v3591_v42 = vld [vmem:[%s4644_s22 + $0x10] sm:$0xff]  }
 0xfee   : > { %v2898_v21 = vmul.f32 0.7978846, %v2896_v45  ;;  %v2895_v49 = vmul.f32 %v2893_v19, %v2885_v37 }
 0xff0   : > { %3614 = vtanh.f32 %v2898_v21  ;;  %v2897_v57 = vadd.f32 %v2895_v49, %v2885_v37 }
 0xff2   : > { %v2899_v53 = vmul.f32 0.7978846, %v2897_v57 }
 0xff4   : > { %3616 = vtanh.f32 %v2899_v53 }
 0xffd   : > { %v3615_v58 = vpop.eup %3614 }
 0xffe   : > { %v2902_v59 = vadd.f32 1.0, %v3615_v58 }
0x1000   : > { %v2904_v9 = vmul.f32 %v2902_v59, %v2888_v52 }
0x1001   : > { %v3617_v60 = vpop.eup %3616 }
0x1002   : > { %v2906_v35 = vadd.f32 %v2904_v9, %v4279_v6  ;;  %v2903_v20 = vadd.f32 1.0, %v3617_v60 }
0x1004   : > { %v2912_v62 = vsel %vm878_vm3, %v2906_v35, 0.0  ;;  %v2905_v43 = vmul.f32 %v2903_v20, %v2889_v61  ;;  %v3592_v20 = vld [vmem:[%s4645_s23 + $0x8] sm:$0xff]  }
0x1005   : > { %2913 = vadd.xlane.f32.xlu1 %v2912_v62  ;;  %3507 = vmatpush3.bf16.msra.mxu0 %v3592_v20  ;;  %v3593_v62 = vld [vmem:[%s4645_s23] sm:$0xff]  }
0x1006   : > { %v2907_v1 = vadd.f32 %v2905_v43, %v4281_v0  ;;  %v3588_v0 = vld [vmem:[%s4643_s21 + $0x18] sm:$0xff]   ;;  %3508 = vmatprep.subr.bf16.mxu0 %v3634_v3 }
0x1007   : > { %3491 = vmatpush3.bf16.msra.mxu1 %v3588_v0 }
0x1008   : > { %v2915_v2 = vsel %vm878_vm3, %v2907_v1, 0.0  ;;  %3492 = vmatprep.subr.bf16.mxu1 %v3634_v3 }
0x1009   : > { %2916 = vadd.xlane.f32.xlu0 %v2915_v2  ;;  %3509 = vmatpush3.bf16.msra.mxu0 %v3593_v62 }
0x100b   : > { %3493 = vmatpush3.bf16.msra.mxu1 %v3589_v24 }
0x100c   : > { %3498 = vmatprep.subr.bf16.mxu1 %v3634_v3 }
0x108e   : > { %v2914_v4 = vpop.xlane.xlu1 %2913 }
0x108f   : > { %v2918_v5 = vmul.f32 0.03125, %v2914_v4 }
0x1091   : > { %v2920_v63 = vsub.f32 %v2906_v35, %v2918_v5 }
0x1092   : > { %v2917_v44 = vpop.xlane.xlu0 %2916 }
0x1093   : > { %v2919_v7 = vmul.f32 0.03125, %v2917_v44  ;;  %v2922_v27 = vmul.f32 %v2920_v63, %v2920_v63 }
0x1095   : > { %v2921_v47 = vsub.f32 %v2907_v1, %v2919_v7  ;;  %v2924_v6 = vsel %vm878_vm3, %v2922_v27, 0.0  ;;  %v3344_v27 = vld [vmem:[%s4646_s24] ss:$0 sm:$0xff] }
0x1096   : > { %2925 = vadd.xlane.f32.xlu0 %v2924_v6 }
0x1097   : > { %v2923_v25 = vmul.f32 %v2921_v47, %v2921_v47 }
0x1099   : > { %v2927_v40 = vsel %vm878_vm3, %v2923_v25, 0.0 }
0x109a   : > { %2928 = vadd.xlane.f32.xlu1 %v2927_v40 }
0x111f   : > { %v2926_v46 = vpop.xlane.xlu0 %2925 }
0x1120   : > { %v2930_v48 = vmul.f32 0.03125, %v2926_v46 }
0x1122   : > { %v2932_v11 = vadd.f32 1e-05, %v2930_v48 }
0x1123   : > { %v2929_v12 = vpop.xlane.xlu1 %2928 }
0x1124   : > { %3618 = vrsqrt.f32 %v2932_v11  ;;  %v2931_v13 = vmul.f32 0.03125, %v2929_v12 }
0x1126   : > { %v2933_v31 = vadd.f32 1e-05, %v2931_v13 }
0x1128   : > { %3620 = vrsqrt.f32 %v2933_v31 }
0x1131   : > { %v3619_v8 = vpop.eup %3618 }
0x1132   : > { %v2936_v15 = vmul.f32 %v3619_v8, %v2920_v63 }
0x1134   : > { %v2944_v39 = vmul.f32 %v3328_v18, %v2936_v15 }
0x1135   : > { %v3621_v32 = vpop.eup %3620 }
0x1136   : > { %v2937_v51 = vmul.f32 %v3621_v32, %v2921_v47  ;;  %v2952_v28 = vadd.f32 %v3329_v54, %v2944_v39 }
0x1138   : > { %v2945_v26 = vmul.f32 %v3328_v18, %v2937_v51 }
0x113a   : > { %v2953_v30 = vadd.f32 %v3329_v54, %v2945_v26 }
0x113c   : > { %v2954_v17 = vpack.c.bf16 %v2953_v30, %v2952_v28 }
0x113e   : > { %3495 = vmatmul.mubr.msk.bf16.vlgmr.msra.gmra.mxu1 %vm878_vm3, %v2954_v17 }
0x113f   : > { %3502 = vmatprep.mubr.msk.bf16.mxu1 %vm3639_vm6, %v3634_v3  ;;  %3499 = vmatpush3.bf16.msra.mxu1 %v3590_v41 }
0x1140   : > { %3500 = vmatprep.subr.bf16.mxu1 %v3634_v3 }
0x1143   : > { %3501 = vmatpush3.bf16.msra.mxu1 %v3591_v42 }
0x11fe   : > { %v3009_v10 = vpop.f32.mrf.mxu1 }
0x11ff   : > { %v3018_v33 = vmul.f32 0.044715, %v3009_v10  ;;  %v3016_v45 = vmul.f32 0.5, %v3009_v10 }
0x1200   : > { %v3496_v22 = vpop.f32.mrf.mxu1 }
0x1201   : > { %v3020_v34 = vmul.f32 %v3018_v33, %v3009_v10 }
0x1202   : > { %v3012_v50 = vpop.f32.mrf.mxu1 }
0x1203   : > { %v3022_v29 = vmul.f32 %v3020_v34, %v3009_v10  ;;  %v3019_v16 = vmul.f32 0.044715, %v3012_v50  ;;  %v3017_v53 = vmul.f32 0.5, %v3012_v50 }
0x1204   : > { %v3497_v14 = vpop.f32.mrf.mxu1 }
0x1205   : > { %v3021_v55 = vmul.f32 %v3019_v16, %v3012_v50  ;;  %v3024_v23 = vadd.f32 %v3022_v29, %v3009_v10 }
0x1207   : > { %v3023_v56 = vmul.f32 %v3021_v55, %v3012_v50  ;;  %v3026_v36 = vmul.f32 0.7978846, %v3024_v23 }
0x1209   : > { %3622 = vtanh.f32 %v3026_v36  ;;  %v3025_v37 = vadd.f32 %v3023_v56, %v3012_v50 }
0x120b   : > { %v3027_v38 = vmul.f32 0.7978846, %v3025_v37 }
0x120d   : > { %3624 = vtanh.f32 %v3027_v38 }
0x1216   : > { %v3623_v19 = vpop.eup %3622 }
0x1217   : > { %v3030_v21 = vadd.f32 1.0, %v3623_v19 }
0x1219   : > { %v3032_v49 = vmul.f32 %v3030_v21, %v3016_v45 }
0x121a   : > { %v3625_v57 = vpop.eup %3624 }
0x121b   : > { %3036 = vrot.lane.b32.xlu0 %v3032_v49, %s3636_s5  ;;  %v3031_v58 = vadd.f32 1.0, %v3625_v57 }
0x121d   : > { %v3033_v52 = vmul.f32 %v3031_v58, %v3017_v53 }
0x121f   : > { %3038 = vrot.lane.b32.xlu1 %v3033_v52, %s3636_s5 }
0x128d   : > { %v3037_v59 = vpop.permute.xlu0 %3036 }
0x128e   : > { %v3042_v60 = vmul.f32 %v3037_v59, %v3009_v10 }
0x1291   : > { %v3039_v9 = vpop.permute.xlu1 %3038 }
0x1292   : > { %v3043_v35 = vmul.f32 %v3039_v9, %v3012_v50 }
0x1294   : > { %v3044_v61 = vpack.c.bf16 %v3043_v35, %v3042_v60 }
0x1296   : > { %3503 = vmatmul.mubr.msk.bf16.vlgmr.msra.gmra.mxu1 %vm878_vm3, %v3044_v61 }
0x1356   : > { %v3099_v43 = vpop.f32.mrf.mxu1 }
0x1357   : > { %v3100_v4 = vadd.f32 %v3099_v43, %v2952_v28 }
0x1358   : > { %v3504_v1 = vpop.f32.mrf.mxu1 }
0x135a   : > { %v3102_v2 = vpop.f32.mrf.mxu1 }
0x135b   : > { %v3103_v5 = vadd.f32 %v3102_v2, %v2953_v30 }
0x135c   : > { %v3505_v63 = vpop.f32.mrf.mxu1 }
0x135d   : > { %v3106_v44 = vpack.c.bf16 %v3103_v5, %v3100_v4 }
0x135f   : > { %3511 = vmatmul.mubr.msk.bf16.vlgmr.msra.gmra.mxu0 %vm878_vm3, %v3106_v44 }
0x141f   : > { %v3167_v7 = vpop.f32.mrf.mxu0 }
0x1420   : > { %v3168_v6 = vadd.f32 %v3344_v27, %v3167_v7 }
0x1421   : > { %v3512_v3 = vpop.f32.mrf.mxu0 }
0x1423   : > { %v3170_v47 = vpop.f32.mrf.mxu0 }
0x1424   : > { %v3171_v25 = vadd.f32 %v3344_v27, %v3170_v47 }
0x1425   : > { %v3513_v40 = vpop.f32.mrf.mxu0 }
0x1426   : > { %v3359_v0 = vpack.c.bf16 %v3171_v25, %v3168_v6 }
0x1428   : > { %3360 = vst [vmem:[%s764_s27] sm:$0xff] %v3359_v0  }
0x1429 PF: > { %s35_s29 = sadd.s32 1, %s3632_s29  }
0x142a   : > { %p32_p4 = scmp.ge.s32.totalorder %s35_s29, 4  }
0x142c   :  { %34 = sbr.rel (!%p32_p4) target bundleno = 11 (0xb), region = 161 }

</bundles_post_ra>
